<compile_context>
chip_gen: v7x
topology: tpu7x:2x2x1
jax: 0.10.0
libtpu: 0.0.40
codegen_flags: <defaults>
</compile_context>

<pallas_src>
import jax
import jax.numpy as jnp
from jax import lax
from jax.experimental import pallas as pl
from jax.experimental.pallas import tpu as pltpu


# ----------------------------- Pallas kernel --------------------------------

def _doc_encoder_kernel(
    x_ref,       # (T, Bp, Ip)   time-major, zero-padded input
    h0_ref,      # (Bp, 2Hp)     initial hidden [fwd | bwd]
    wih_ref,     # (Ip, 6Hp)     [fwd r,z,n | bwd r,z,n] input weights (pre-transposed)
    whh_f_ref,   # (Hp, 3Hp)     forward recurrent weights
    whh_b_ref,   # (Hp, 3Hp)     backward recurrent weights
    gib_ref,     # (1, 6Hp)      b_ih (all gates) + b_hh (r,z gates), pre-folded
    bhn_ref,     # (1, 2Hp)      b_hh of the n gate, per direction
    wfc_ref,     # (1, 2Hp)      fc weights (zero in padded columns)
    bfc_ref,     # (1, 1)        fc bias
    y_ref,       # out (T, Bp)   sigmoid(fc(o)) -- squeezed, reshaped in wrapper
    o_ref,       # out (T, Bp, 2Hp)  GRU outputs [fwd | bwd]
    h_out_ref,   # out (Bp, 2Hp) final hidden [fwd | bwd]
    gi_s,        # scratch (T, Bp, 6Hp)  precomputed input projection
    ylf_s,       # scratch (T, Bp, 1)    forward partial logits
    ylb_s,       # scratch (T, Bp, 1)    backward partial logits
):
    T, Bp, Ip = x_ref.shape
    Hp = whh_f_ref.shape[0]

    # ---- input projection hoisted out of the recurrence: one big MXU matmul ----
    gi = jnp.dot(x_ref[...].reshape(T * Bp, Ip), wih_ref[...],
                 preferred_element_type=jnp.float32) + gib_ref[...]
    gi_s[...] = gi.reshape(T, Bp, 6 * Hp)

    # loop-invariant broadcasts hoisted (JAX does not CSE broadcast_in_dim in loops)
    bhn_f = jnp.broadcast_to(bhn_ref[:, 0:Hp], (Bp, Hp))
    bhn_b = jnp.broadcast_to(bhn_ref[:, Hp:2 * Hp], (Bp, Hp))
    wfc_f = jnp.broadcast_to(wfc_ref[:, 0:Hp], (Bp, Hp))
    wfc_b = jnp.broadcast_to(wfc_ref[:, Hp:2 * Hp], (Bp, Hp))

    def step(t, carry):
        hf, hb = carry                                   # (Bp, Hp) each, in vregs
        tb = T - 1 - t
        gi_f = gi_s[t]                                   # (Bp, 6Hp)
        gi_b = gi_s[tb]

        # two back-to-back per-direction recurrent matmuls (they pipeline in the MXU;
        # half the MXU tile-ops / weight bytes of the block-diagonal form)
        gh_f = jnp.dot(hf, whh_f_ref[...], preferred_element_type=jnp.float32)
        gh_b = jnp.dot(hb, whh_b_ref[...], preferred_element_type=jnp.float32)

        # forward direction, time t (gate order r, z, n)
        r_f = jax.nn.sigmoid(gi_f[:, 0:Hp] + gh_f[:, 0:Hp])
        z_f = jax.nn.sigmoid(gi_f[:, Hp:2 * Hp] + gh_f[:, Hp:2 * Hp])
        n_f = jnp.tanh(gi_f[:, 2 * Hp:3 * Hp]
                       + r_f * (gh_f[:, 2 * Hp:3 * Hp] + bhn_f))
        hf_new = (1.0 - z_f) * n_f + z_f * hf

        # backward direction, time T-1-t
        r_b = jax.nn.sigmoid(gi_b[:, 3 * Hp:4 * Hp] + gh_b[:, 0:Hp])
        z_b = jax.nn.sigmoid(gi_b[:, 4 * Hp:5 * Hp] + gh_b[:, Hp:2 * Hp])
        n_b = jnp.tanh(gi_b[:, 5 * Hp:6 * Hp]
                       + r_b * (gh_b[:, 2 * Hp:3 * Hp] + bhn_b))
        hb_new = (1.0 - z_b) * n_b + z_b * hb

        # write GRU outputs in place (no per-direction scratch, no concat)
        o_ref[t, :, 0:Hp] = hf_new
        o_ref[tb, :, Hp:2 * Hp] = hb_new

        # fused fc head: per-direction partial logits; the cross-lane reduce rides
        # the XLU slot, which is idle during the recurrence
        ylf_s[t, :, :] = jnp.sum(hf_new * wfc_f, axis=-1, keepdims=True)
        ylb_s[tb, :, :] = jnp.sum(hb_new * wfc_b, axis=-1, keepdims=True)
        return (hf_new, hb_new)

    hf0 = h0_ref[:, 0:Hp]
    hb0 = h0_ref[:, Hp:2 * Hp]
    # short fixed trip-counts: fully unroll so fwd/bwd chains interleave; for long T
    # use unroll=4 so the LLO scheduler can hide EUP latency without vreg blow-up.
    unroll = True if T <= 32 else 4
    hf_T, hb_T = lax.fori_loop(0, T, step, (hf0, hb0), unroll=unroll)

    h_out_ref[:, 0:Hp] = hf_T
    h_out_ref[:, Hp:2 * Hp] = hb_T

    # tiny epilogue over (T, Bp): combine per-direction partial logits + bias + sigmoid
    ysum = ylf_s[...] + ylb_s[...]                       # (T, Bp, 1)
    y_ref[...] = jax.nn.sigmoid(ysum[:, :, 0] + bfc_ref[...])


# ------------------------------- wrapper -------------------------------------

def _round_up(n, m):
    return ((n + m - 1) // m) * m


def _physical_vmem_bytes():
    """Physical VMEM per TensorCore; conservative fallback if the query fails."""
    default = 64 * 2 ** 20        # v7x per-core VMEM (v5e / v6e have 128 MiB)
    try:
        cap = int(pltpu.get_tpu_info().vmem_capacity_bytes)
        return cap if cap > 0 else default
    except Exception:
        return default


_PHYS_VMEM_BYTES = _physical_vmem_bytes()
_VMEM_HEADROOM = 16 * 2 ** 20     # fixed headroom for compiler-internal scratch


def _vmem_tile_bytes(shape, itemsize=4):
    """f32 VMEM footprint of one buffer, last two dims padded to the (8, 128) tile."""
    shape = tuple(int(s) for s in shape)
    if len(shape) == 1:
        shape = (1,) + shape
    padded = shape[:-2] + (_round_up(shape[-2], 8), _round_up(shape[-1], 128))
    n = 1
    for s in padded:
        n *= s
    return n * itemsize


def pack_params(params):
    """One-time packing of the PyTorch-layout weights into padded TPU tile layouts.

    Call once and reuse: re-packing inside the per-call jit path would re-run all the
    pads / transposes as HBM-side XLA ops on every forward.
    """
    H = params['w_hh_f'].shape[1]
    I = params['w_ih_f'].shape[1]
    Hp = _round_up(H, 128)
    Ip = _round_up(I, 128)
    f32 = jnp.float32

    def pack_w(w, K, Kp):
        # PyTorch layout (3H, K) -> (Kp, 3Hp), transposed, gate blocks padded H -> Hp.
        out = jnp.zeros((Kp, 3 * Hp), f32)
        for g in range(3):
            out = out.at[:K, g * Hp:g * Hp + H].set(w[g * H:(g + 1) * H, :].T.astype(f32))
        return out

    def pack_b(b):
        out = jnp.zeros((3 * Hp,), f32)
        for g in range(3):
            out = out.at[g * Hp:g * Hp + H].set(b[g * H:(g + 1) * H].astype(f32))
        return out

    wih_f = pack_w(params['w_ih_f'], I, Ip)
    wih_b = pack_w(params['w_ih_b'], I, Ip)
    whh_f = pack_w(params['w_hh_f'], H, Hp)
    whh_b = pack_w(params['w_hh_b'], H, Hp)

    bih_f, bhh_f = pack_b(params['b_ih_f']), pack_b(params['b_hh_f'])
    bih_b, bhh_b = pack_b(params['b_ih_b']), pack_b(params['b_hh_b'])

    # fold b_ih (all gates) + b_hh (r, z gates) into the precomputed input projection;
    # only the n-gate b_hh must stay inside the recurrence (it is multiplied by r).
    def fold(bih, bhh):
        return bih.at[0:2 * Hp].add(bhh[0:2 * Hp])

    gib = jnp.concatenate([fold(bih_f, bhh_f), fold(bih_b, bhh_b)])[None, :]   # (1, 6Hp)
    bhn = jnp.concatenate([bhh_f[2 * Hp:], bhh_b[2 * Hp:]])[None, :]           # (1, 2Hp)

    wfc = jnp.zeros((1, 2 * Hp), f32)
    wfc = wfc.at[0, 0:H].set(params['w_fc'][0, 0:H].astype(f32))
    wfc = wfc.at[0, Hp:Hp + H].set(params['w_fc'][0, H:2 * H].astype(f32))
    bfc = params['b_fc'].reshape(1, 1).astype(f32)

    return {
        'wih_cat': jnp.concatenate([wih_f, wih_b], axis=1),   # (Ip, 6Hp)
        'whh_f': whh_f, 'whh_b': whh_b,                       # (Hp, 3Hp) each
        'gib': gib, 'bhn': bhn, 'wfc': wfc, 'bfc': bfc,
    }


@jax.jit
def document_encoder_forward(x, h, packed):
    """x: (B, T, I) f32, h: (2, B, H) f32 (num_directions=2), packed: pack_params()."""
    B, T, I = x.shape
    H = h.shape[2]
    Hp = packed['whh_f'].shape[0]
    Ip = packed['wih_cat'].shape[0]
    Bp = _round_up(B, 8)
    f32 = jnp.float32

    x_tm = jnp.transpose(x, (1, 0, 2)).astype(f32)            # (T, B, I) time-major
    x_p = jnp.pad(x_tm, ((0, 0), (0, Bp - B), (0, Ip - I)))

    h0 = jnp.zeros((Bp, 2 * Hp), f32)
    h0 = h0.at[:B, 0:H].set(h[0].astype(f32))
    h0 = h0.at[:B, Hp:Hp + H].set(h[1].astype(f32))

    # VMEM budget: exact (tile-padded) buffer sum + fixed headroom, clamped to ~90%
    # of this chip's physical per-core VMEM (no grid -> no double-buffering).
    buf_shapes = [
        x_p.shape, h0.shape, packed['wih_cat'].shape, packed['whh_f'].shape,
        packed['whh_b'].shape, packed['gib'].shape, packed['bhn'].shape,
        packed['wfc'].shape, packed['bfc'].shape,
        (T, Bp), (T, Bp, 2 * Hp), (Bp, 2 * Hp),               # outputs y, o, h
        (T, Bp, 6 * Hp), (T, Bp, 1), (T, Bp, 1),              # scratch gi, y-partials
    ]
    data_bytes = sum(_vmem_tile_bytes(s) for s in buf_shapes)
    budget = int(0.9 * _PHYS_VMEM_BYTES)
    if data_bytes > budget:
        # TODO(synk): stream x / gi / o in T-chunks via a grid ("arbitrary" time axis,
        # hidden carried in scratch, a reversed index_map feeding the backward
        # direction) so VMEM use is independent of T.
        raise ValueError(
            f"sequence does not fit in VMEM: needs ~{data_bytes >> 20} MiB of "
            f"buffers, budget is ~{budget >> 20} MiB")
    vmem_limit = int(min(budget, data_bytes + _VMEM_HEADROOM))

    vmem = pl.BlockSpec(memory_space=pltpu.MemorySpace.VMEM)

    # TODO(synk): on v7x (2 TensorCores) split the two directions across cores with a
    # 2-wide "parallel" grid / core_map; kept as one fused program here so the fwd/bwd
    # chains interleave and hide EUP latency on the 1-TC chips (v5e / v6e).
    y_tm, o_tm, h_cat = pl.pallas_call(
        _doc_encoder_kernel,
        out_shape=(
            jax.ShapeDtypeStruct((T, Bp), f32),               # y (time-major, squeezed)
            jax.ShapeDtypeStruct((T, Bp, 2 * Hp), f32),       # o (time-major, padded)
            jax.ShapeDtypeStruct((Bp, 2 * Hp), f32),          # final hidden [fwd | bwd]
        ),
        in_specs=[vmem] * 9,
        out_specs=(vmem, vmem, vmem),
        scratch_shapes=[
            pltpu.VMEM((T, Bp, 6 * Hp), f32),                 # hoisted input projection
            pltpu.VMEM((T, Bp, 1), f32),                      # fwd partial logits
            pltpu.VMEM((T, Bp, 1), f32),                      # bwd partial logits
        ],
        compiler_params=pltpu.CompilerParams(vmem_limit_bytes=vmem_limit),
    )(x_p, h0, packed['wih_cat'], packed['whh_f'], packed['whh_b'],
      packed['gib'], packed['bhn'], packed['wfc'], packed['bfc'])

    # strip padding back out and restore the PyTorch (batch_first) layout
    y = jnp.transpose(y_tm[:, :B])[:, :, None]                # (B, T, 1)
    if Hp == H and Bp == B:
        o = jnp.transpose(o_tm, (1, 0, 2))                    # padding strips are no-ops
    else:
        o = jnp.transpose(
            jnp.concatenate([o_tm[:, :B, 0:H], o_tm[:, :B, Hp:Hp + H]], axis=-1),
            (1, 0, 2))                                        # (B, T, 2H)
    h_out = jnp.stack([h_cat[:B, 0:H], h_cat[:B, Hp:Hp + H]], axis=0)   # (2, B, H)
    return y, o, h_out


# ----------------------------- pure-JAX reference ----------------------------

def _ref_forward(x, h, params):
    B, T, I = x.shape
    H = params['w_hh_f'].shape[1]

    def run_dir(wih, whh, bih, bhh, h0, reverse):
        outs = [None] * T
        hcur = h0
        order = range(T - 1, -1, -1) if reverse else range(T)
        for t in order:
            x_t = x[:, t, :]
            gi = x_t @ wih.T + bih
            gh = hcur @ whh.T + bhh
            r = jax.nn.sigmoid(gi[:, 0:H] + gh[:, 0:H])
            z = jax.nn.sigmoid(gi[:, H:2 * H] + gh[:, H:2 * H])
            n = jnp.tanh(gi[:, 2 * H:] + r * gh[:, 2 * H:])
            hcur = (1.0 - z) * n + z * hcur
            outs[t] = hcur
        return jnp.stack(outs, axis=1), hcur

    o_f, h_f = run_dir(params['w_ih_f'], params['w_hh_f'],
                       params['b_ih_f'], params['b_hh_f'], h[0], False)
    o_b, h_b = run_dir(params['w_ih_b'], params['w_hh_b'],
                       params['b_ih_b'], params['b_hh_b'], h[1], True)
    o = jnp.concatenate([o_f, o_b], axis=-1)
    y = jax.nn.sigmoid(o @ params['w_fc'].T + params['b_fc'])
    return y, o, jnp.stack([h_f, h_b], axis=0)


# --------------------------------- main ---------------------------------------

if __name__ == "__main__":
    # Small shapes consistent with the module (bidirectional GRU so fc input is 2H).
    B, T, I, H = 2, 6, 8, 16

    key = jax.random.PRNGKey(0)
    ks = jax.random.split(key, 16)
    bound = 1.0 / jnp.sqrt(H)

    def u(k, shape):
        return jax.random.uniform(k, shape, jnp.float32, -bound, bound)

    params = {
        'w_ih_f': u(ks[0], (3 * H, I)), 'w_hh_f': u(ks[1], (3 * H, H)),
        'b_ih_f': u(ks[2], (3 * H,)),   'b_hh_f': u(ks[3], (3 * H,)),
        'w_ih_b': u(ks[4], (3 * H, I)), 'w_hh_b': u(ks[5], (3 * H, H)),
        'b_ih_b': u(ks[6], (3 * H,)),   'b_hh_b': u(ks[7], (3 * H,)),
        'w_fc':   u(ks[8], (1, 2 * H)), 'b_fc':   u(ks[9], (1,)),
    }

    x = jax.random.normal(ks[10], (B, T, I), jnp.float32)
    h0 = jax.random.normal(ks[11], (2, B, H), jnp.float32)

    packed = pack_params(params)                 # one-time weight packing (not per call)
    y, o, h_out = document_encoder_forward(x, h0, packed)
    jax.block_until_ready((y, o, h_out))

    # correctness check against a pure-JAX reference of the PyTorch semantics
    y_r, o_r, h_r = _ref_forward(x, h0, params)
    assert y.shape == (B, T, 1) and o.shape == (B, T, 2 * H) and h_out.shape == (2, B, H)
    assert jnp.allclose(y, y_r, atol=1e-4, rtol=1e-4)
    assert jnp.allclose(o, o_r, atol=1e-4, rtol=1e-4)
    assert jnp.allclose(h_out, h_r, atol=1e-4, rtol=1e-4)

    print("KERNEL_OK")
</pallas_src>

<mosaic_0001>
module attributes {stable_mosaic.version = 11 : i64} {
  func.func @_doc_encoder_kernel(%arg0: memref<6x8x128xf32, #tpu.memory_space<vmem>>, %arg1: memref<8x256xf32, #tpu.memory_space<vmem>>, %arg2: memref<128x768xf32, #tpu.memory_space<vmem>>, %arg3: memref<128x384xf32, #tpu.memory_space<vmem>>, %arg4: memref<128x384xf32, #tpu.memory_space<vmem>>, %arg5: memref<1x768xf32, #tpu.memory_space<vmem>>, %arg6: memref<1x256xf32, #tpu.memory_space<vmem>>, %arg7: memref<1x256xf32, #tpu.memory_space<vmem>>, %arg8: memref<1x1xf32, #tpu.memory_space<vmem>>, %arg9: memref<6x8xf32, #tpu.memory_space<vmem>>, %arg10: memref<6x8x256xf32, #tpu.memory_space<vmem>>, %arg11: memref<8x256xf32, #tpu.memory_space<vmem>>, %arg12: memref<6x8x768xf32, #tpu.memory_space<vmem>>, %arg13: memref<6x8x1xf32, #tpu.memory_space<vmem>>, %arg14: memref<6x8x1xf32, #tpu.memory_space<vmem>>) attributes {dimension_semantics = [], scalar_prefetch = 0 : i64, scratch_operands = 3 : i64, tpu.core_type = #tpu.core_type<tc>} {
    %c0 = arith.constant 0 : index
    %c0_0 = arith.constant 0 : index
    %c0_1 = arith.constant 0 : index
    %0 = vector.load %arg0[%c0, %c0_0, %c0_1] : memref<6x8x128xf32, #tpu.memory_space<vmem>>, vector<6x8x128xf32>
    %1 = vector.shape_cast %0 : vector<6x8x128xf32> to vector<48x128xf32>
    %c0_2 = arith.constant 0 : index
    %c0_3 = arith.constant 0 : index
    %2 = vector.load %arg2[%c0_2, %c0_3] : memref<128x768xf32, #tpu.memory_space<vmem>>, vector<128x768xf32>
    %cst = arith.constant dense<0.000000e+00> : vector<48x768xf32>
    %3 = tpu.matmul %1, %2, %cst {dimension_numbers = #tpu.dot_dimension_numbers<[1], [0], [0], [1], [0, 0, 1, 1], [], []>} : vector<48x128xf32>, vector<128x768xf32>, vector<48x768xf32> -> vector<48x768xf32>
    %c0_4 = arith.constant 0 : index
    %c0_5 = arith.constant 0 : index
    %4 = vector.load %arg5[%c0_4, %c0_5] : memref<1x768xf32, #tpu.memory_space<vmem>>, vector<1x768xf32>
    %5 = vector.broadcast %4 : vector<1x768xf32> to vector<48x768xf32>
    %6 = arith.addf %3, %5 : vector<48x768xf32>
    %7 = vector.shape_cast %6 : vector<48x768xf32> to vector<6x8x768xf32>
    %c0_6 = arith.constant 0 : index
    %c0_7 = arith.constant 0 : index
    %c0_8 = arith.constant 0 : index
    %8 = vector.load %arg12[%c0_6, %c0_7, %c0_8] : memref<6x8x768xf32, #tpu.memory_space<vmem>>, vector<6x8x768xf32>
    tpu.vector_store %arg12[%c0_6, %c0_7, %c0_8], %7 {strides = array<i32>} : memref<6x8x768xf32, #tpu.memory_space<vmem>>, vector<6x8x768xf32>,
    %c0_9 = arith.constant 0 : index
    %c0_10 = arith.constant 0 : index
    %9 = vector.load %arg6[%c0_9, %c0_10] : memref<1x256xf32, #tpu.memory_space<vmem>>, vector<1x128xf32>
    %10 = vector.shape_cast %9 : vector<1x128xf32> to vector<1x128xf32>
    %11 = vector.broadcast %10 : vector<1x128xf32> to vector<8x128xf32>
    %c0_11 = arith.constant 0 : index
    %c128 = arith.constant 128 : index
    %12 = vector.load %arg6[%c0_11, %c128] : memref<1x256xf32, #tpu.memory_space<vmem>>, vector<1x128xf32>
    %13 = vector.shape_cast %12 : vector<1x128xf32> to vector<1x128xf32>
    %14 = vector.broadcast %13 : vector<1x128xf32> to vector<8x128xf32>
    %c0_12 = arith.constant 0 : index
    %c0_13 = arith.constant 0 : index
    %15 = vector.load %arg7[%c0_12, %c0_13] : memref<1x256xf32, #tpu.memory_space<vmem>>, vector<1x128xf32>
    %16 = vector.shape_cast %15 : vector<1x128xf32> to vector<1x128xf32>
    %17 = vector.broadcast %16 : vector<1x128xf32> to vector<8x128xf32>
    %c0_14 = arith.constant 0 : index
    %c128_15 = arith.constant 128 : index
    %18 = vector.load %arg7[%c0_14, %c128_15] : memref<1x256xf32, #tpu.memory_space<vmem>>, vector<1x128xf32>
    %19 = vector.shape_cast %18 : vector<1x128xf32> to vector<1x128xf32>
    %20 = vector.broadcast %19 : vector<1x128xf32> to vector<8x128xf32>
    %c0_16 = arith.constant 0 : index
    %c0_17 = arith.constant 0 : index
    %21 = vector.load %arg1[%c0_16, %c0_17] : memref<8x256xf32, #tpu.memory_space<vmem>>, vector<8x128xf32>
    %c0_18 = arith.constant 0 : index
    %c128_19 = arith.constant 128 : index
    %22 = vector.load %arg1[%c0_18, %c128_19] : memref<8x256xf32, #tpu.memory_space<vmem>>, vector<8x128xf32>
    %c0_i32 = arith.constant 0 : i32
    %c5_i32 = arith.constant 5 : i32
    %23 = arith.subi %c5_i32, %c0_i32 : i32
    %24 = arith.index_cast %c0_i32 : i32 to index
    %c0_20 = arith.constant 0 : index
    %c0_21 = arith.constant 0 : index
    %25 = vector.load %arg12[%24, %c0_20, %c0_21] : memref<6x8x768xf32, #tpu.memory_space<vmem>>, vector<1x8x768xf32>
    %26 = vector.shape_cast %25 : vector<1x8x768xf32> to vector<8x768xf32>
    %27 = arith.index_cast %23 : i32 to index
    %c0_22 = arith.constant 0 : index
    %c0_23 = arith.constant 0 : index
    %28 = vector.load %arg12[%27, %c0_22, %c0_23] : memref<6x8x768xf32, #tpu.memory_space<vmem>>, vector<1x8x768xf32>
    %29 = vector.shape_cast %28 : vector<1x8x768xf32> to vector<8x768xf32>
    %c0_24 = arith.constant 0 : index
    %c0_25 = arith.constant 0 : index
    %30 = vector.load %arg3[%c0_24, %c0_25] : memref<128x384xf32, #tpu.memory_space<vmem>>, vector<128x384xf32>
    %cst_26 = arith.constant dense<0.000000e+00> : vector<8x384xf32>
    %31 = tpu.matmul %21, %30, %cst_26 {dimension_numbers = #tpu.dot_dimension_numbers<[1], [0], [0], [1], [0, 0, 1, 1], [], []>} : vector<8x128xf32>, vector<128x384xf32>, vector<8x384xf32> -> vector<8x384xf32>
    %c0_27 = arith.constant 0 : index
    %c0_28 = arith.constant 0 : index
    %32 = vector.load %arg4[%c0_27, %c0_28] : memref<128x384xf32, #tpu.memory_space<vmem>>, vector<128x384xf32>
    %cst_29 = arith.constant dense<0.000000e+00> : vector<8x384xf32>
    %33 = tpu.matmul %22, %32, %cst_29 {dimension_numbers = #tpu.dot_dimension_numbers<[1], [0], [0], [1], [0, 0, 1, 1], [], []>} : vector<8x128xf32>, vector<128x384xf32>, vector<8x384xf32> -> vector<8x384xf32>
    %34 = vector.extract_strided_slice %26 {offsets = [0, 0], sizes = [8, 128], strides = [1, 1]} : vector<8x768xf32> to vector<8x128xf32>
    %35 = vector.extract_strided_slice %31 {offsets = [0, 0], sizes = [8, 128], strides = [1, 1]} : vector<8x384xf32> to vector<8x128xf32>
    %36 = arith.addf %34, %35 : vector<8x128xf32>
    %37 = arith.negf %36 : vector<8x128xf32>
    %38 = math.exp %37 : vector<8x128xf32>
    %cst_30 = arith.constant 1.000000e+00 : f32
    %39 = vector.broadcast %cst_30 : f32 to vector<8x128xf32>
    %40 = arith.addf %39, %38 : vector<8x128xf32>
    %41 = arith.divf %39, %40 : vector<8x128xf32>
    %42 = vector.extract_strided_slice %26 {offsets = [0, 128], sizes = [8, 128], strides = [1, 1]} : vector<8x768xf32> to vector<8x128xf32>
    %43 = vector.extract_strided_slice %31 {offsets = [0, 128], sizes = [8, 128], strides = [1, 1]} : vector<8x384xf32> to vector<8x128xf32>
    %44 = arith.addf %42, %43 : vector<8x128xf32>
    %45 = arith.negf %44 : vector<8x128xf32>
    %46 = math.exp %45 : vector<8x128xf32>
    %cst_31 = arith.constant 1.000000e+00 : f32
    %47 = vector.broadcast %cst_31 : f32 to vector<8x128xf32>
    %48 = arith.addf %47, %46 : vector<8x128xf32>
    %49 = arith.divf %47, %48 : vector<8x128xf32>
    %50 = vector.extract_strided_slice %26 {offsets = [0, 256], sizes = [8, 128], strides = [1, 1]} : vector<8x768xf32> to vector<8x128xf32>
    %51 = vector.extract_strided_slice %31 {offsets = [0, 256], sizes = [8, 128], strides = [1, 1]} : vector<8x384xf32> to vector<8x128xf32>
    %52 = arith.addf %51, %11 : vector<8x128xf32>
    %53 = arith.mulf %41, %52 : vector<8x128xf32>
    %54 = arith.addf %50, %53 : vector<8x128xf32>
    %55 = math.tanh %54 : vector<8x128xf32>
    %cst_32 = arith.constant 1.000000e+00 : f32
    %56 = vector.broadcast %cst_32 : f32 to vector<8x128xf32>
    %57 = arith.subf %56, %49 : vector<8x128xf32>
    %58 = arith.mulf %57, %55 : vector<8x128xf32>
    %59 = arith.mulf %49, %21 : vector<8x128xf32>
    %60 = arith.addf %58, %59 : vector<8x128xf32>
    %61 = vector.extract_strided_slice %29 {offsets = [0, 384], sizes = [8, 128], strides = [1, 1]} : vector<8x768xf32> to vector<8x128xf32>
    %62 = vector.extract_strided_slice %33 {offsets = [0, 0], sizes = [8, 128], strides = [1, 1]} : vector<8x384xf32> to vector<8x128xf32>
    %63 = arith.addf %61, %62 : vector<8x128xf32>
    %64 = arith.negf %63 : vector<8x128xf32>
    %65 = math.exp %64 : vector<8x128xf32>
    %cst_33 = arith.constant 1.000000e+00 : f32
    %66 = vector.broadcast %cst_33 : f32 to vector<8x128xf32>
    %67 = arith.addf %66, %65 : vector<8x128xf32>
    %68 = arith.divf %66, %67 : vector<8x128xf32>
    %69 = vector.extract_strided_slice %29 {offsets = [0, 512], sizes = [8, 128], strides = [1, 1]} : vector<8x768xf32> to vector<8x128xf32>
    %70 = vector.extract_strided_slice %33 {offsets = [0, 128], sizes = [8, 128], strides = [1, 1]} : vector<8x384xf32> to vector<8x128xf32>
    %71 = arith.addf %69, %70 : vector<8x128xf32>
    %72 = arith.negf %71 : vector<8x128xf32>
    %73 = math.exp %72 : vector<8x128xf32>
    %cst_34 = arith.constant 1.000000e+00 : f32
    %74 = vector.broadcast %cst_34 : f32 to vector<8x128xf32>
    %75 = arith.addf %74, %73 : vector<8x128xf32>
    %76 = arith.divf %74, %75 : vector<8x128xf32>
    %77 = vector.extract_strided_slice %29 {offsets = [0, 640], sizes = [8, 128], strides = [1, 1]} : vector<8x768xf32> to vector<8x128xf32>
    %78 = vector.extract_strided_slice %33 {offsets = [0, 256], sizes = [8, 128], strides = [1, 1]} : vector<8x384xf32> to vector<8x128xf32>
    %79 = arith.addf %78, %14 : vector<8x128xf32>
    %80 = arith.mulf %68, %79 : vector<8x128xf32>
    %81 = arith.addf %77, %80 : vector<8x128xf32>
    %82 = math.tanh %81 : vector<8x128xf32>
    %cst_35 = arith.constant 1.000000e+00 : f32
    %83 = vector.broadcast %cst_35 : f32 to vector<8x128xf32>
    %84 = arith.subf %83, %76 : vector<8x128xf32>
    %85 = arith.mulf %84, %82 : vector<8x128xf32>
    %86 = arith.mulf %76, %22 : vector<8x128xf32>
    %87 = arith.addf %85, %86 : vector<8x128xf32>
    %88 = arith.index_cast %c0_i32 : i32 to index
    %c0_36 = arith.constant 0 : index
    %c0_37 = arith.constant 0 : index
    %89 = vector.load %arg10[%88, %c0_36, %c0_37] : memref<6x8x256xf32, #tpu.memory_space<vmem>>, vector<1x8x128xf32>
    %90 = vector.shape_cast %89 : vector<1x8x128xf32> to vector<8x128xf32>
    %91 = vector.shape_cast %60 : vector<8x128xf32> to vector<1x8x128xf32>
    tpu.vector_store %arg10[%88, %c0_36, %c0_37], %91 {strides = array<i32>} : memref<6x8x256xf32, #tpu.memory_space<vmem>>, vector<1x8x128xf32>,
    %92 = arith.index_cast %23 : i32 to index
    %c0_38 = arith.constant 0 : index
    %c128_39 = arith.constant 128 : index
    %93 = vector.load %arg10[%92, %c0_38, %c128_39] : memref<6x8x256xf32, #tpu.memory_space<vmem>>, vector<1x8x128xf32>
    %94 = vector.shape_cast %93 : vector<1x8x128xf32> to vector<8x128xf32>
    %95 = vector.shape_cast %87 : vector<8x128xf32> to vector<1x8x128xf32>
    tpu.vector_store %arg10[%92, %c0_38, %c128_39], %95 {strides = array<i32>} : memref<6x8x256xf32, #tpu.memory_space<vmem>>, vector<1x8x128xf32>,
    %96 = arith.mulf %60, %17 : vector<8x128xf32>
    %cst_40 = arith.constant dense<0.000000e+00> : vector<8xf32>
    %97 = vector.multi_reduction <add>, %96, %cst_40 [1] : vector<8x128xf32> to vector<8xf32>
    %98 = vector.shape_cast %97 : vector<8xf32> to vector<8x1xf32>
    %99 = arith.index_cast %c0_i32 : i32 to index
    %c0_41 = arith.constant 0 : index
    %c0_42 = arith.constant 0 : index
    %100 = vector.load %arg13[%99, %c0_41, %c0_42] : memref<6x8x1xf32, #tpu.memory_space<vmem>>, vector<1x8x1xf32>
    %101 = vector.shape_cast %100 : vector<1x8x1xf32> to vector<8x1xf32>
    %102 = vector.shape_cast %98 : vector<8x1xf32> to vector<1x8x1xf32>
    tpu.vector_store %arg13[%99, %c0_41, %c0_42], %102 {strides = array<i32>} : memref<6x8x1xf32, #tpu.memory_space<vmem>>, vector<1x8x1xf32>,
    %103 = arith.mulf %87, %20 : vector<8x128xf32>
    %cst_43 = arith.constant dense<0.000000e+00> : vector<8xf32>
    %104 = vector.multi_reduction <add>, %103, %cst_43 [1] : vector<8x128xf32> to vector<8xf32>
    %105 = vector.shape_cast %104 : vector<8xf32> to vector<8x1xf32>
    %106 = arith.index_cast %23 : i32 to index
    %c0_44 = arith.constant 0 : index
    %c0_45 = arith.constant 0 : index
    %107 = vector.load %arg14[%106, %c0_44, %c0_45] : memref<6x8x1xf32, #tpu.memory_space<vmem>>, vector<1x8x1xf32>
    %108 = vector.shape_cast %107 : vector<1x8x1xf32> to vector<8x1xf32>
    %109 = vector.shape_cast %105 : vector<8x1xf32> to vector<1x8x1xf32>
    tpu.vector_store %arg14[%106, %c0_44, %c0_45], %109 {strides = array<i32>} : memref<6x8x1xf32, #tpu.memory_space<vmem>>, vector<1x8x1xf32>,
    %c1_i32 = arith.constant 1 : i32
    %c5_i32_46 = arith.constant 5 : i32
    %110 = arith.subi %c5_i32_46, %c1_i32 : i32
    %111 = arith.index_cast %c1_i32 : i32 to index
    %c0_47 = arith.constant 0 : index
    %c0_48 = arith.constant 0 : index
    %112 = vector.load %arg12[%111, %c0_47, %c0_48] : memref<6x8x768xf32, #tpu.memory_space<vmem>>, vector<1x8x768xf32>
    %113 = vector.shape_cast %112 : vector<1x8x768xf32> to vector<8x768xf32>
    %114 = arith.index_cast %110 : i32 to index
    %c0_49 = arith.constant 0 : index
    %c0_50 = arith.constant 0 : index
    %115 = vector.load %arg12[%114, %c0_49, %c0_50] : memref<6x8x768xf32, #tpu.memory_space<vmem>>, vector<1x8x768xf32>
    %116 = vector.shape_cast %115 : vector<1x8x768xf32> to vector<8x768xf32>
    %c0_51 = arith.constant 0 : index
    %c0_52 = arith.constant 0 : index
    %117 = vector.load %arg3[%c0_51, %c0_52] : memref<128x384xf32, #tpu.memory_space<vmem>>, vector<128x384xf32>
    %cst_53 = arith.constant dense<0.000000e+00> : vector<8x384xf32>
    %118 = tpu.matmul %60, %117, %cst_53 {dimension_numbers = #tpu.dot_dimension_numbers<[1], [0], [0], [1], [0, 0, 1, 1], [], []>} : vector<8x128xf32>, vector<128x384xf32>, vector<8x384xf32> -> vector<8x384xf32>
    %c0_54 = arith.constant 0 : index
    %c0_55 = arith.constant 0 : index
    %119 = vector.load %arg4[%c0_54, %c0_55] : memref<128x384xf32, #tpu.memory_space<vmem>>, vector<128x384xf32>
    %cst_56 = arith.constant dense<0.000000e+00> : vector<8x384xf32>
    %120 = tpu.matmul %87, %119, %cst_56 {dimension_numbers = #tpu.dot_dimension_numbers<[1], [0], [0], [1], [0, 0, 1, 1], [], []>} : vector<8x128xf32>, vector<128x384xf32>, vector<8x384xf32> -> vector<8x384xf32>
    %121 = vector.extract_strided_slice %113 {offsets = [0, 0], sizes = [8, 128], strides = [1, 1]} : vector<8x768xf32> to vector<8x128xf32>
    %122 = vector.extract_strided_slice %118 {offsets = [0, 0], sizes = [8, 128], strides = [1, 1]} : vector<8x384xf32> to vector<8x128xf32>
    %123 = arith.addf %121, %122 : vector<8x128xf32>
    %124 = arith.negf %123 : vector<8x128xf32>
    %125 = math.exp %124 : vector<8x128xf32>
    %cst_57 = arith.constant 1.000000e+00 : f32
    %126 = vector.broadcast %cst_57 : f32 to vector<8x128xf32>
    %127 = arith.addf %126, %125 : vector<8x128xf32>
    %128 = arith.divf %126, %127 : vector<8x128xf32>
    %129 = vector.extract_strided_slice %113 {offsets = [0, 128], sizes = [8, 128], strides = [1, 1]} : vector<8x768xf32> to vector<8x128xf32>
    %130 = vector.extract_strided_slice %118 {offsets = [0, 128], sizes = [8, 128], strides = [1, 1]} : vector<8x384xf32> to vector<8x128xf32>
    %131 = arith.addf %129, %130 : vector<8x128xf32>
    %132 = arith.negf %131 : vector<8x128xf32>
    %133 = math.exp %132 : vector<8x128xf32>
    %cst_58 = arith.constant 1.000000e+00 : f32
    %134 = vector.broadcast %cst_58 : f32 to vector<8x128xf32>
    %135 = arith.addf %134, %133 : vector<8x128xf32>
    %136 = arith.divf %134, %135 : vector<8x128xf32>
    %137 = vector.extract_strided_slice %113 {offsets = [0, 256], sizes = [8, 128], strides = [1, 1]} : vector<8x768xf32> to vector<8x128xf32>
    %138 = vector.extract_strided_slice %118 {offsets = [0, 256], sizes = [8, 128], strides = [1, 1]} : vector<8x384xf32> to vector<8x128xf32>
    %139 = arith.addf %138, %11 : vector<8x128xf32>
    %140 = arith.mulf %128, %139 : vector<8x128xf32>
    %141 = arith.addf %137, %140 : vector<8x128xf32>
    %142 = math.tanh %141 : vector<8x128xf32>
    %cst_59 = arith.constant 1.000000e+00 : f32
    %143 = vector.broadcast %cst_59 : f32 to vector<8x128xf32>
    %144 = arith.subf %143, %136 : vector<8x128xf32>
    %145 = arith.mulf %144, %142 : vector<8x128xf32>
    %146 = arith.mulf %136, %60 : vector<8x128xf32>
    %147 = arith.addf %145, %146 : vector<8x128xf32>
    %148 = vector.extract_strided_slice %116 {offsets = [0, 384], sizes = [8, 128], strides = [1, 1]} : vector<8x768xf32> to vector<8x128xf32>
    %149 = vector.extract_strided_slice %120 {offsets = [0, 0], sizes = [8, 128], strides = [1, 1]} : vector<8x384xf32> to vector<8x128xf32>
    %150 = arith.addf %148, %149 : vector<8x128xf32>
    %151 = arith.negf %150 : vector<8x128xf32>
    %152 = math.exp %151 : vector<8x128xf32>
    %cst_60 = arith.constant 1.000000e+00 : f32
    %153 = vector.broadcast %cst_60 : f32 to vector<8x128xf32>
    %154 = arith.addf %153, %152 : vector<8x128xf32>
    %155 = arith.divf %153, %154 : vector<8x128xf32>
    %156 = vector.extract_strided_slice %116 {offsets = [0, 512], sizes = [8, 128], strides = [1, 1]} : vector<8x768xf32> to vector<8x128xf32>
    %157 = vector.extract_strided_slice %120 {offsets = [0, 128], sizes = [8, 128], strides = [1, 1]} : vector<8x384xf32> to vector<8x128xf32>
    %158 = arith.addf %156, %157 : vector<8x128xf32>
    %159 = arith.negf %158 : vector<8x128xf32>
    %160 = math.exp %159 : vector<8x128xf32>
    %cst_61 = arith.constant 1.000000e+00 : f32
    %161 = vector.broadcast %cst_61 : f32 to vector<8x128xf32>
    %162 = arith.addf %161, %160 : vector<8x128xf32>
    %163 = arith.divf %161, %162 : vector<8x128xf32>
    %164 = vector.extract_strided_slice %116 {offsets = [0, 640], sizes = [8, 128], strides = [1, 1]} : vector<8x768xf32> to vector<8x128xf32>
    %165 = vector.extract_strided_slice %120 {offsets = [0, 256], sizes = [8, 128], strides = [1, 1]} : vector<8x384xf32> to vector<8x128xf32>
    %166 = arith.addf %165, %14 : vector<8x128xf32>
    %167 = arith.mulf %155, %166 : vector<8x128xf32>
    %168 = arith.addf %164, %167 : vector<8x128xf32>
    %169 = math.tanh %168 : vector<8x128xf32>
    %cst_62 = arith.constant 1.000000e+00 : f32
    %170 = vector.broadcast %cst_62 : f32 to vector<8x128xf32>
    %171 = arith.subf %170, %163 : vector<8x128xf32>
    %172 = arith.mulf %171, %169 : vector<8x128xf32>
    %173 = arith.mulf %163, %87 : vector<8x128xf32>
    %174 = arith.addf %172, %173 : vector<8x128xf32>
    %175 = arith.index_cast %c1_i32 : i32 to index
    %c0_63 = arith.constant 0 : index
    %c0_64 = arith.constant 0 : index
    %176 = vector.load %arg10[%175, %c0_63, %c0_64] : memref<6x8x256xf32, #tpu.memory_space<vmem>>, vector<1x8x128xf32>
    %177 = vector.shape_cast %176 : vector<1x8x128xf32> to vector<8x128xf32>
    %178 = vector.shape_cast %147 : vector<8x128xf32> to vector<1x8x128xf32>
    tpu.vector_store %arg10[%175, %c0_63, %c0_64], %178 {strides = array<i32>} : memref<6x8x256xf32, #tpu.memory_space<vmem>>, vector<1x8x128xf32>,
    %179 = arith.index_cast %110 : i32 to index
    %c0_65 = arith.constant 0 : index
    %c128_66 = arith.constant 128 : index
    %180 = vector.load %arg10[%179, %c0_65, %c128_66] : memref<6x8x256xf32, #tpu.memory_space<vmem>>, vector<1x8x128xf32>
    %181 = vector.shape_cast %180 : vector<1x8x128xf32> to vector<8x128xf32>
    %182 = vector.shape_cast %174 : vector<8x128xf32> to vector<1x8x128xf32>
    tpu.vector_store %arg10[%179, %c0_65, %c128_66], %182 {strides = array<i32>} : memref<6x8x256xf32, #tpu.memory_space<vmem>>, vector<1x8x128xf32>,
    %183 = arith.mulf %147, %17 : vector<8x128xf32>
    %cst_67 = arith.constant dense<0.000000e+00> : vector<8xf32>
    %184 = vector.multi_reduction <add>, %183, %cst_67 [1] : vector<8x128xf32> to vector<8xf32>
    %185 = vector.shape_cast %184 : vector<8xf32> to vector<8x1xf32>
    %186 = arith.index_cast %c1_i32 : i32 to index
    %c0_68 = arith.constant 0 : index
    %c0_69 = arith.constant 0 : index
    %187 = vector.load %arg13[%186, %c0_68, %c0_69] : memref<6x8x1xf32, #tpu.memory_space<vmem>>, vector<1x8x1xf32>
    %188 = vector.shape_cast %187 : vector<1x8x1xf32> to vector<8x1xf32>
    %189 = vector.shape_cast %185 : vector<8x1xf32> to vector<1x8x1xf32>
    tpu.vector_store %arg13[%186, %c0_68, %c0_69], %189 {strides = array<i32>} : memref<6x8x1xf32, #tpu.memory_space<vmem>>, vector<1x8x1xf32>,
    %190 = arith.mulf %174, %20 : vector<8x128xf32>
    %cst_70 = arith.constant dense<0.000000e+00> : vector<8xf32>
    %191 = vector.multi_reduction <add>, %190, %cst_70 [1] : vector<8x128xf32> to vector<8xf32>
    %192 = vector.shape_cast %191 : vector<8xf32> to vector<8x1xf32>
    %193 = arith.index_cast %110 : i32 to index
    %c0_71 = arith.constant 0 : index
    %c0_72 = arith.constant 0 : index
    %194 = vector.load %arg14[%193, %c0_71, %c0_72] : memref<6x8x1xf32, #tpu.memory_space<vmem>>, vector<1x8x1xf32>
    %195 = vector.shape_cast %194 : vector<1x8x1xf32> to vector<8x1xf32>
    %196 = vector.shape_cast %192 : vector<8x1xf32> to vector<1x8x1xf32>
    tpu.vector_store %arg14[%193, %c0_71, %c0_72], %196 {strides = array<i32>} : memref<6x8x1xf32, #tpu.memory_space<vmem>>, vector<1x8x1xf32>,
    %c2_i32 = arith.constant 2 : i32
    %c5_i32_73 = arith.constant 5 : i32
    %197 = arith.subi %c5_i32_73, %c2_i32 : i32
    %198 = arith.index_cast %c2_i32 : i32 to index
    %c0_74 = arith.constant 0 : index
    %c0_75 = arith.constant 0 : index
    %199 = vector.load %arg12[%198, %c0_74, %c0_75] : memref<6x8x768xf32, #tpu.memory_space<vmem>>, vector<1x8x768xf32>
    %200 = vector.shape_cast %199 : vector<1x8x768xf32> to vector<8x768xf32>
    %201 = arith.index_cast %197 : i32 to index
    %c0_76 = arith.constant 0 : index
    %c0_77 = arith.constant 0 : index
    %202 = vector.load %arg12[%201, %c0_76, %c0_77] : memref<6x8x768xf32, #tpu.memory_space<vmem>>, vector<1x8x768xf32>
    %203 = vector.shape_cast %202 : vector<1x8x768xf32> to vector<8x768xf32>
    %c0_78 = arith.constant 0 : index
    %c0_79 = arith.constant 0 : index
    %204 = vector.load %arg3[%c0_78, %c0_79] : memref<128x384xf32, #tpu.memory_space<vmem>>, vector<128x384xf32>
    %cst_80 = arith.constant dense<0.000000e+00> : vector<8x384xf32>
    %205 = tpu.matmul %147, %204, %cst_80 {dimension_numbers = #tpu.dot_dimension_numbers<[1], [0], [0], [1], [0, 0, 1, 1], [], []>} : vector<8x128xf32>, vector<128x384xf32>, vector<8x384xf32> -> vector<8x384xf32>
    %c0_81 = arith.constant 0 : index
    %c0_82 = arith.constant 0 : index
    %206 = vector.load %arg4[%c0_81, %c0_82] : memref<128x384xf32, #tpu.memory_space<vmem>>, vector<128x384xf32>
    %cst_83 = arith.constant dense<0.000000e+00> : vector<8x384xf32>
    %207 = tpu.matmul %174, %206, %cst_83 {dimension_numbers = #tpu.dot_dimension_numbers<[1], [0], [0], [1], [0, 0, 1, 1], [], []>} : vector<8x128xf32>, vector<128x384xf32>, vector<8x384xf32> -> vector<8x384xf32>
    %208 = vector.extract_strided_slice %200 {offsets = [0, 0], sizes = [8, 128], strides = [1, 1]} : vector<8x768xf32> to vector<8x128xf32>
    %209 = vector.extract_strided_slice %205 {offsets = [0, 0], sizes = [8, 128], strides = [1, 1]} : vector<8x384xf32> to vector<8x128xf32>
    %210 = arith.addf %208, %209 : vector<8x128xf32>
    %211 = arith.negf %210 : vector<8x128xf32>
    %212 = math.exp %211 : vector<8x128xf32>
    %cst_84 = arith.constant 1.000000e+00 : f32
    %213 = vector.broadcast %cst_84 : f32 to vector<8x128xf32>
    %214 = arith.addf %213, %212 : vector<8x128xf32>
    %215 = arith.divf %213, %214 : vector<8x128xf32>
    %216 = vector.extract_strided_slice %200 {offsets = [0, 128], sizes = [8, 128], strides = [1, 1]} : vector<8x768xf32> to vector<8x128xf32>
    %217 = vector.extract_strided_slice %205 {offsets = [0, 128], sizes = [8, 128], strides = [1, 1]} : vector<8x384xf32> to vector<8x128xf32>
    %218 = arith.addf %216, %217 : vector<8x128xf32>
    %219 = arith.negf %218 : vector<8x128xf32>
    %220 = math.exp %219 : vector<8x128xf32>
    %cst_85 = arith.constant 1.000000e+00 : f32
    %221 = vector.broadcast %cst_85 : f32 to vector<8x128xf32>
    %222 = arith.addf %221, %220 : vector<8x128xf32>
    %223 = arith.divf %221, %222 : vector<8x128xf32>
    %224 = vector.extract_strided_slice %200 {offsets = [0, 256], sizes = [8, 128], strides = [1, 1]} : vector<8x768xf32> to vector<8x128xf32>
    %225 = vector.extract_strided_slice %205 {offsets = [0, 256], sizes = [8, 128], strides = [1, 1]} : vector<8x384xf32> to vector<8x128xf32>
    %226 = arith.addf %225, %11 : vector<8x128xf32>
    %227 = arith.mulf %215, %226 : vector<8x128xf32>
    %228 = arith.addf %224, %227 : vector<8x128xf32>
    %229 = math.tanh %228 : vector<8x128xf32>
    %cst_86 = arith.constant 1.000000e+00 : f32
    %230 = vector.broadcast %cst_86 : f32 to vector<8x128xf32>
    %231 = arith.subf %230, %223 : vector<8x128xf32>
    %232 = arith.mulf %231, %229 : vector<8x128xf32>
    %233 = arith.mulf %223, %147 : vector<8x128xf32>
    %234 = arith.addf %232, %233 : vector<8x128xf32>
    %235 = vector.extract_strided_slice %203 {offsets = [0, 384], sizes = [8, 128], strides = [1, 1]} : vector<8x768xf32> to vector<8x128xf32>
    %236 = vector.extract_strided_slice %207 {offsets = [0, 0], sizes = [8, 128], strides = [1, 1]} : vector<8x384xf32> to vector<8x128xf32>
    %237 = arith.addf %235, %236 : vector<8x128xf32>
    %238 = arith.negf %237 : vector<8x128xf32>
    %239 = math.exp %238 : vector<8x128xf32>
    %cst_87 = arith.constant 1.000000e+00 : f32
    %240 = vector.broadcast %cst_87 : f32 to vector<8x128xf32>
    %241 = arith.addf %240, %239 : vector<8x128xf32>
    %242 = arith.divf %240, %241 : vector<8x128xf32>
    %243 = vector.extract_strided_slice %203 {offsets = [0, 512], sizes = [8, 128], strides = [1, 1]} : vector<8x768xf32> to vector<8x128xf32>
    %244 = vector.extract_strided_slice %207 {offsets = [0, 128], sizes = [8, 128], strides = [1, 1]} : vector<8x384xf32> to vector<8x128xf32>
    %245 = arith.addf %243, %244 : vector<8x128xf32>
    %246 = arith.negf %245 : vector<8x128xf32>
    %247 = math.exp %246 : vector<8x128xf32>
    %cst_88 = arith.constant 1.000000e+00 : f32
    %248 = vector.broadcast %cst_88 : f32 to vector<8x128xf32>
    %249 = arith.addf %248, %247 : vector<8x128xf32>
    %250 = arith.divf %248, %249 : vector<8x128xf32>
    %251 = vector.extract_strided_slice %203 {offsets = [0, 640], sizes = [8, 128], strides = [1, 1]} : vector<8x768xf32> to vector<8x128xf32>
    %252 = vector.extract_strided_slice %207 {offsets = [0, 256], sizes = [8, 128], strides = [1, 1]} : vector<8x384xf32> to vector<8x128xf32>
    %253 = arith.addf %252, %14 : vector<8x128xf32>
    %254 = arith.mulf %242, %253 : vector<8x128xf32>
    %255 = arith.addf %251, %254 : vector<8x128xf32>
    %256 = math.tanh %255 : vector<8x128xf32>
    %cst_89 = arith.constant 1.000000e+00 : f32
    %257 = vector.broadcast %cst_89 : f32 to vector<8x128xf32>
    %258 = arith.subf %257, %250 : vector<8x128xf32>
    %259 = arith.mulf %258, %256 : vector<8x128xf32>
    %260 = arith.mulf %250, %174 : vector<8x128xf32>
    %261 = arith.addf %259, %260 : vector<8x128xf32>
    %262 = arith.index_cast %c2_i32 : i32 to index
    %c0_90 = arith.constant 0 : index
    %c0_91 = arith.constant 0 : index
    %263 = vector.load %arg10[%262, %c0_90, %c0_91] : memref<6x8x256xf32, #tpu.memory_space<vmem>>, vector<1x8x128xf32>
    %264 = vector.shape_cast %263 : vector<1x8x128xf32> to vector<8x128xf32>
    %265 = vector.shape_cast %234 : vector<8x128xf32> to vector<1x8x128xf32>
    tpu.vector_store %arg10[%262, %c0_90, %c0_91], %265 {strides = array<i32>} : memref<6x8x256xf32, #tpu.memory_space<vmem>>, vector<1x8x128xf32>,
    %266 = arith.index_cast %197 : i32 to index
    %c0_92 = arith.constant 0 : index
    %c128_93 = arith.constant 128 : index
    %267 = vector.load %arg10[%266, %c0_92, %c128_93] : memref<6x8x256xf32, #tpu.memory_space<vmem>>, vector<1x8x128xf32>
    %268 = vector.shape_cast %267 : vector<1x8x128xf32> to vector<8x128xf32>
    %269 = vector.shape_cast %261 : vector<8x128xf32> to vector<1x8x128xf32>
    tpu.vector_store %arg10[%266, %c0_92, %c128_93], %269 {strides = array<i32>} : memref<6x8x256xf32, #tpu.memory_space<vmem>>, vector<1x8x128xf32>,
    %270 = arith.mulf %234, %17 : vector<8x128xf32>
    %cst_94 = arith.constant dense<0.000000e+00> : vector<8xf32>
    %271 = vector.multi_reduction <add>, %270, %cst_94 [1] : vector<8x128xf32> to vector<8xf32>
    %272 = vector.shape_cast %271 : vector<8xf32> to vector<8x1xf32>
    %273 = arith.index_cast %c2_i32 : i32 to index
    %c0_95 = arith.constant 0 : index
    %c0_96 = arith.constant 0 : index
    %274 = vector.load %arg13[%273, %c0_95, %c0_96] : memref<6x8x1xf32, #tpu.memory_space<vmem>>, vector<1x8x1xf32>
    %275 = vector.shape_cast %274 : vector<1x8x1xf32> to vector<8x1xf32>
    %276 = vector.shape_cast %272 : vector<8x1xf32> to vector<1x8x1xf32>
    tpu.vector_store %arg13[%273, %c0_95, %c0_96], %276 {strides = array<i32>} : memref<6x8x1xf32, #tpu.memory_space<vmem>>, vector<1x8x1xf32>,
    %277 = arith.mulf %261, %20 : vector<8x128xf32>
    %cst_97 = arith.constant dense<0.000000e+00> : vector<8xf32>
    %278 = vector.multi_reduction <add>, %277, %cst_97 [1] : vector<8x128xf32> to vector<8xf32>
    %279 = vector.shape_cast %278 : vector<8xf32> to vector<8x1xf32>
    %280 = arith.index_cast %197 : i32 to index
    %c0_98 = arith.constant 0 : index
    %c0_99 = arith.constant 0 : index
    %281 = vector.load %arg14[%280, %c0_98, %c0_99] : memref<6x8x1xf32, #tpu.memory_space<vmem>>, vector<1x8x1xf32>
    %282 = vector.shape_cast %281 : vector<1x8x1xf32> to vector<8x1xf32>
    %283 = vector.shape_cast %279 : vector<8x1xf32> to vector<1x8x1xf32>
    tpu.vector_store %arg14[%280, %c0_98, %c0_99], %283 {strides = array<i32>} : memref<6x8x1xf32, #tpu.memory_space<vmem>>, vector<1x8x1xf32>,
    %c3_i32 = arith.constant 3 : i32
    %c5_i32_100 = arith.constant 5 : i32
    %284 = arith.subi %c5_i32_100, %c3_i32 : i32
    %285 = arith.index_cast %c3_i32 : i32 to index
    %c0_101 = arith.constant 0 : index
    %c0_102 = arith.constant 0 : index
    %286 = vector.load %arg12[%285, %c0_101, %c0_102] : memref<6x8x768xf32, #tpu.memory_space<vmem>>, vector<1x8x768xf32>
    %287 = vector.shape_cast %286 : vector<1x8x768xf32> to vector<8x768xf32>
    %288 = arith.index_cast %284 : i32 to index
    %c0_103 = arith.constant 0 : index
    %c0_104 = arith.constant 0 : index
    %289 = vector.load %arg12[%288, %c0_103, %c0_104] : memref<6x8x768xf32, #tpu.memory_space<vmem>>, vector<1x8x768xf32>
    %290 = vector.shape_cast %289 : vector<1x8x768xf32> to vector<8x768xf32>
    %c0_105 = arith.constant 0 : index
    %c0_106 = arith.constant 0 : index
    %291 = vector.load %arg3[%c0_105, %c0_106] : memref<128x384xf32, #tpu.memory_space<vmem>>, vector<128x384xf32>
    %cst_107 = arith.constant dense<0.000000e+00> : vector<8x384xf32>
    %292 = tpu.matmul %234, %291, %cst_107 {dimension_numbers = #tpu.dot_dimension_numbers<[1], [0], [0], [1], [0, 0, 1, 1], [], []>} : vector<8x128xf32>, vector<128x384xf32>, vector<8x384xf32> -> vector<8x384xf32>
    %c0_108 = arith.constant 0 : index
    %c0_109 = arith.constant 0 : index
    %293 = vector.load %arg4[%c0_108, %c0_109] : memref<128x384xf32, #tpu.memory_space<vmem>>, vector<128x384xf32>
    %cst_110 = arith.constant dense<0.000000e+00> : vector<8x384xf32>
    %294 = tpu.matmul %261, %293, %cst_110 {dimension_numbers = #tpu.dot_dimension_numbers<[1], [0], [0], [1], [0, 0, 1, 1], [], []>} : vector<8x128xf32>, vector<128x384xf32>, vector<8x384xf32> -> vector<8x384xf32>
    %295 = vector.extract_strided_slice %287 {offsets = [0, 0], sizes = [8, 128], strides = [1, 1]} : vector<8x768xf32> to vector<8x128xf32>
    %296 = vector.extract_strided_slice %292 {offsets = [0, 0], sizes = [8, 128], strides = [1, 1]} : vector<8x384xf32> to vector<8x128xf32>
    %297 = arith.addf %295, %296 : vector<8x128xf32>
    %298 = arith.negf %297 : vector<8x128xf32>
    %299 = math.exp %298 : vector<8x128xf32>
    %cst_111 = arith.constant 1.000000e+00 : f32
    %300 = vector.broadcast %cst_111 : f32 to vector<8x128xf32>
    %301 = arith.addf %300, %299 : vector<8x128xf32>
    %302 = arith.divf %300, %301 : vector<8x128xf32>
    %303 = vector.extract_strided_slice %287 {offsets = [0, 128], sizes = [8, 128], strides = [1, 1]} : vector<8x768xf32> to vector<8x128xf32>
    %304 = vector.extract_strided_slice %292 {offsets = [0, 128], sizes = [8, 128], strides = [1, 1]} : vector<8x384xf32> to vector<8x128xf32>
    %305 = arith.addf %303, %304 : vector<8x128xf32>
    %306 = arith.negf %305 : vector<8x128xf32>
    %307 = math.exp %306 : vector<8x128xf32>
    %cst_112 = arith.constant 1.000000e+00 : f32
    %308 = vector.broadcast %cst_112 : f32 to vector<8x128xf32>
    %309 = arith.addf %308, %307 : vector<8x128xf32>
    %310 = arith.divf %308, %309 : vector<8x128xf32>
    %311 = vector.extract_strided_slice %287 {offsets = [0, 256], sizes = [8, 128], strides = [1, 1]} : vector<8x768xf32> to vector<8x128xf32>
    %312 = vector.extract_strided_slice %292 {offsets = [0, 256], sizes = [8, 128], strides = [1, 1]} : vector<8x384xf32> to vector<8x128xf32>
    %313 = arith.addf %312, %11 : vector<8x128xf32>
    %314 = arith.mulf %302, %313 : vector<8x128xf32>
    %315 = arith.addf %311, %314 : vector<8x128xf32>
    %316 = math.tanh %315 : vector<8x128xf32>
    %cst_113 = arith.constant 1.000000e+00 : f32
    %317 = vector.broadcast %cst_113 : f32 to vector<8x128xf32>
    %318 = arith.subf %317, %310 : vector<8x128xf32>
    %319 = arith.mulf %318, %316 : vector<8x128xf32>
    %320 = arith.mulf %310, %234 : vector<8x128xf32>
    %321 = arith.addf %319, %320 : vector<8x128xf32>
    %322 = vector.extract_strided_slice %290 {offsets = [0, 384], sizes = [8, 128], strides = [1, 1]} : vector<8x768xf32> to vector<8x128xf32>
    %323 = vector.extract_strided_slice %294 {offsets = [0, 0], sizes = [8, 128], strides = [1, 1]} : vector<8x384xf32> to vector<8x128xf32>
    %324 = arith.addf %322, %323 : vector<8x128xf32>
    %325 = arith.negf %324 : vector<8x128xf32>
    %326 = math.exp %325 : vector<8x128xf32>
    %cst_114 = arith.constant 1.000000e+00 : f32
    %327 = vector.broadcast %cst_114 : f32 to vector<8x128xf32>
    %328 = arith.addf %327, %326 : vector<8x128xf32>
    %329 = arith.divf %327, %328 : vector<8x128xf32>
    %330 = vector.extract_strided_slice %290 {offsets = [0, 512], sizes = [8, 128], strides = [1, 1]} : vector<8x768xf32> to vector<8x128xf32>
    %331 = vector.extract_strided_slice %294 {offsets = [0, 128], sizes = [8, 128], strides = [1, 1]} : vector<8x384xf32> to vector<8x128xf32>
    %332 = arith.addf %330, %331 : vector<8x128xf32>
    %333 = arith.negf %332 : vector<8x128xf32>
    %334 = math.exp %333 : vector<8x128xf32>
    %cst_115 = arith.constant 1.000000e+00 : f32
    %335 = vector.broadcast %cst_115 : f32 to vector<8x128xf32>
    %336 = arith.addf %335, %334 : vector<8x128xf32>
    %337 = arith.divf %335, %336 : vector<8x128xf32>
    %338 = vector.extract_strided_slice %290 {offsets = [0, 640], sizes = [8, 128], strides = [1, 1]} : vector<8x768xf32> to vector<8x128xf32>
    %339 = vector.extract_strided_slice %294 {offsets = [0, 256], sizes = [8, 128], strides = [1, 1]} : vector<8x384xf32> to vector<8x128xf32>
    %340 = arith.addf %339, %14 : vector<8x128xf32>
    %341 = arith.mulf %329, %340 : vector<8x128xf32>
    %342 = arith.addf %338, %341 : vector<8x128xf32>
    %343 = math.tanh %342 : vector<8x128xf32>
    %cst_116 = arith.constant 1.000000e+00 : f32
    %344 = vector.broadcast %cst_116 : f32 to vector<8x128xf32>
    %345 = arith.subf %344, %337 : vector<8x128xf32>
    %346 = arith.mulf %345, %343 : vector<8x128xf32>
    %347 = arith.mulf %337, %261 : vector<8x128xf32>
    %348 = arith.addf %346, %347 : vector<8x128xf32>
    %349 = arith.index_cast %c3_i32 : i32 to index
    %c0_117 = arith.constant 0 : index
    %c0_118 = arith.constant 0 : index
    %350 = vector.load %arg10[%349, %c0_117, %c0_118] : memref<6x8x256xf32, #tpu.memory_space<vmem>>, vector<1x8x128xf32>
    %351 = vector.shape_cast %350 : vector<1x8x128xf32> to vector<8x128xf32>
    %352 = vector.shape_cast %321 : vector<8x128xf32> to vector<1x8x128xf32>
    tpu.vector_store %arg10[%349, %c0_117, %c0_118], %352 {strides = array<i32>} : memref<6x8x256xf32, #tpu.memory_space<vmem>>, vector<1x8x128xf32>,
    %353 = arith.index_cast %284 : i32 to index
    %c0_119 = arith.constant 0 : index
    %c128_120 = arith.constant 128 : index
    %354 = vector.load %arg10[%353, %c0_119, %c128_120] : memref<6x8x256xf32, #tpu.memory_space<vmem>>, vector<1x8x128xf32>
    %355 = vector.shape_cast %354 : vector<1x8x128xf32> to vector<8x128xf32>
    %356 = vector.shape_cast %348 : vector<8x128xf32> to vector<1x8x128xf32>
    tpu.vector_store %arg10[%353, %c0_119, %c128_120], %356 {strides = array<i32>} : memref<6x8x256xf32, #tpu.memory_space<vmem>>, vector<1x8x128xf32>,
    %357 = arith.mulf %321, %17 : vector<8x128xf32>
    %cst_121 = arith.constant dense<0.000000e+00> : vector<8xf32>
    %358 = vector.multi_reduction <add>, %357, %cst_121 [1] : vector<8x128xf32> to vector<8xf32>
    %359 = vector.shape_cast %358 : vector<8xf32> to vector<8x1xf32>
    %360 = arith.index_cast %c3_i32 : i32 to index
    %c0_122 = arith.constant 0 : index
    %c0_123 = arith.constant 0 : index
    %361 = vector.load %arg13[%360, %c0_122, %c0_123] : memref<6x8x1xf32, #tpu.memory_space<vmem>>, vector<1x8x1xf32>
    %362 = vector.shape_cast %361 : vector<1x8x1xf32> to vector<8x1xf32>
    %363 = vector.shape_cast %359 : vector<8x1xf32> to vector<1x8x1xf32>
    tpu.vector_store %arg13[%360, %c0_122, %c0_123], %363 {strides = array<i32>} : memref<6x8x1xf32, #tpu.memory_space<vmem>>, vector<1x8x1xf32>,
    %364 = arith.mulf %348, %20 : vector<8x128xf32>
    %cst_124 = arith.constant dense<0.000000e+00> : vector<8xf32>
    %365 = vector.multi_reduction <add>, %364, %cst_124 [1] : vector<8x128xf32> to vector<8xf32>
    %366 = vector.shape_cast %365 : vector<8xf32> to vector<8x1xf32>
    %367 = arith.index_cast %284 : i32 to index
    %c0_125 = arith.constant 0 : index
    %c0_126 = arith.constant 0 : index
    %368 = vector.load %arg14[%367, %c0_125, %c0_126] : memref<6x8x1xf32, #tpu.memory_space<vmem>>, vector<1x8x1xf32>
    %369 = vector.shape_cast %368 : vector<1x8x1xf32> to vector<8x1xf32>
    %370 = vector.shape_cast %366 : vector<8x1xf32> to vector<1x8x1xf32>
    tpu.vector_store %arg14[%367, %c0_125, %c0_126], %370 {strides = array<i32>} : memref<6x8x1xf32, #tpu.memory_space<vmem>>, vector<1x8x1xf32>,
    %c4_i32 = arith.constant 4 : i32
    %c5_i32_127 = arith.constant 5 : i32
    %371 = arith.subi %c5_i32_127, %c4_i32 : i32
    %372 = arith.index_cast %c4_i32 : i32 to index
    %c0_128 = arith.constant 0 : index
    %c0_129 = arith.constant 0 : index
    %373 = vector.load %arg12[%372, %c0_128, %c0_129] : memref<6x8x768xf32, #tpu.memory_space<vmem>>, vector<1x8x768xf32>
    %374 = vector.shape_cast %373 : vector<1x8x768xf32> to vector<8x768xf32>
    %375 = arith.index_cast %371 : i32 to index
    %c0_130 = arith.constant 0 : index
    %c0_131 = arith.constant 0 : index
    %376 = vector.load %arg12[%375, %c0_130, %c0_131] : memref<6x8x768xf32, #tpu.memory_space<vmem>>, vector<1x8x768xf32>
    %377 = vector.shape_cast %376 : vector<1x8x768xf32> to vector<8x768xf32>
    %c0_132 = arith.constant 0 : index
    %c0_133 = arith.constant 0 : index
    %378 = vector.load %arg3[%c0_132, %c0_133] : memref<128x384xf32, #tpu.memory_space<vmem>>, vector<128x384xf32>
    %cst_134 = arith.constant dense<0.000000e+00> : vector<8x384xf32>
    %379 = tpu.matmul %321, %378, %cst_134 {dimension_numbers = #tpu.dot_dimension_numbers<[1], [0], [0], [1], [0, 0, 1, 1], [], []>} : vector<8x128xf32>, vector<128x384xf32>, vector<8x384xf32> -> vector<8x384xf32>
    %c0_135 = arith.constant 0 : index
    %c0_136 = arith.constant 0 : index
    %380 = vector.load %arg4[%c0_135, %c0_136] : memref<128x384xf32, #tpu.memory_space<vmem>>, vector<128x384xf32>
    %cst_137 = arith.constant dense<0.000000e+00> : vector<8x384xf32>
    %381 = tpu.matmul %348, %380, %cst_137 {dimension_numbers = #tpu.dot_dimension_numbers<[1], [0], [0], [1], [0, 0, 1, 1], [], []>} : vector<8x128xf32>, vector<128x384xf32>, vector<8x384xf32> -> vector<8x384xf32>
    %382 = vector.extract_strided_slice %374 {offsets = [0, 0], sizes = [8, 128], strides = [1, 1]} : vector<8x768xf32> to vector<8x128xf32>
    %383 = vector.extract_strided_slice %379 {offsets = [0, 0], sizes = [8, 128], strides = [1, 1]} : vector<8x384xf32> to vector<8x128xf32>
    %384 = arith.addf %382, %383 : vector<8x128xf32>
    %385 = arith.negf %384 : vector<8x128xf32>
    %386 = math.exp %385 : vector<8x128xf32>
    %cst_138 = arith.constant 1.000000e+00 : f32
    %387 = vector.broadcast %cst_138 : f32 to vector<8x128xf32>
    %388 = arith.addf %387, %386 : vector<8x128xf32>
    %389 = arith.divf %387, %388 : vector<8x128xf32>
    %390 = vector.extract_strided_slice %374 {offsets = [0, 128], sizes = [8, 128], strides = [1, 1]} : vector<8x768xf32> to vector<8x128xf32>
    %391 = vector.extract_strided_slice %379 {offsets = [0, 128], sizes = [8, 128], strides = [1, 1]} : vector<8x384xf32> to vector<8x128xf32>
    %392 = arith.addf %390, %391 : vector<8x128xf32>
    %393 = arith.negf %392 : vector<8x128xf32>
    %394 = math.exp %393 : vector<8x128xf32>
    %cst_139 = arith.constant 1.000000e+00 : f32
    %395 = vector.broadcast %cst_139 : f32 to vector<8x128xf32>
    %396 = arith.addf %395, %394 : vector<8x128xf32>
    %397 = arith.divf %395, %396 : vector<8x128xf32>
    %398 = vector.extract_strided_slice %374 {offsets = [0, 256], sizes = [8, 128], strides = [1, 1]} : vector<8x768xf32> to vector<8x128xf32>
    %399 = vector.extract_strided_slice %379 {offsets = [0, 256], sizes = [8, 128], strides = [1, 1]} : vector<8x384xf32> to vector<8x128xf32>
    %400 = arith.addf %399, %11 : vector<8x128xf32>
    %401 = arith.mulf %389, %400 : vector<8x128xf32>
    %402 = arith.addf %398, %401 : vector<8x128xf32>
    %403 = math.tanh %402 : vector<8x128xf32>
    %cst_140 = arith.constant 1.000000e+00 : f32
    %404 = vector.broadcast %cst_140 : f32 to vector<8x128xf32>
    %405 = arith.subf %404, %397 : vector<8x128xf32>
    %406 = arith.mulf %405, %403 : vector<8x128xf32>
    %407 = arith.mulf %397, %321 : vector<8x128xf32>
    %408 = arith.addf %406, %407 : vector<8x128xf32>
    %409 = vector.extract_strided_slice %377 {offsets = [0, 384], sizes = [8, 128], strides = [1, 1]} : vector<8x768xf32> to vector<8x128xf32>
    %410 = vector.extract_strided_slice %381 {offsets = [0, 0], sizes = [8, 128], strides = [1, 1]} : vector<8x384xf32> to vector<8x128xf32>
    %411 = arith.addf %409, %410 : vector<8x128xf32>
    %412 = arith.negf %411 : vector<8x128xf32>
    %413 = math.exp %412 : vector<8x128xf32>
    %cst_141 = arith.constant 1.000000e+00 : f32
    %414 = vector.broadcast %cst_141 : f32 to vector<8x128xf32>
    %415 = arith.addf %414, %413 : vector<8x128xf32>
    %416 = arith.divf %414, %415 : vector<8x128xf32>
    %417 = vector.extract_strided_slice %377 {offsets = [0, 512], sizes = [8, 128], strides = [1, 1]} : vector<8x768xf32> to vector<8x128xf32>
    %418 = vector.extract_strided_slice %381 {offsets = [0, 128], sizes = [8, 128], strides = [1, 1]} : vector<8x384xf32> to vector<8x128xf32>
    %419 = arith.addf %417, %418 : vector<8x128xf32>
    %420 = arith.negf %419 : vector<8x128xf32>
    %421 = math.exp %420 : vector<8x128xf32>
    %cst_142 = arith.constant 1.000000e+00 : f32
    %422 = vector.broadcast %cst_142 : f32 to vector<8x128xf32>
    %423 = arith.addf %422, %421 : vector<8x128xf32>
    %424 = arith.divf %422, %423 : vector<8x128xf32>
    %425 = vector.extract_strided_slice %377 {offsets = [0, 640], sizes = [8, 128], strides = [1, 1]} : vector<8x768xf32> to vector<8x128xf32>
    %426 = vector.extract_strided_slice %381 {offsets = [0, 256], sizes = [8, 128], strides = [1, 1]} : vector<8x384xf32> to vector<8x128xf32>
    %427 = arith.addf %426, %14 : vector<8x128xf32>
    %428 = arith.mulf %416, %427 : vector<8x128xf32>
    %429 = arith.addf %425, %428 : vector<8x128xf32>
    %430 = math.tanh %429 : vector<8x128xf32>
    %cst_143 = arith.constant 1.000000e+00 : f32
    %431 = vector.broadcast %cst_143 : f32 to vector<8x128xf32>
    %432 = arith.subf %431, %424 : vector<8x128xf32>
    %433 = arith.mulf %432, %430 : vector<8x128xf32>
    %434 = arith.mulf %424, %348 : vector<8x128xf32>
    %435 = arith.addf %433, %434 : vector<8x128xf32>
    %436 = arith.index_cast %c4_i32 : i32 to index
    %c0_144 = arith.constant 0 : index
    %c0_145 = arith.constant 0 : index
    %437 = vector.load %arg10[%436, %c0_144, %c0_145] : memref<6x8x256xf32, #tpu.memory_space<vmem>>, vector<1x8x128xf32>
    %438 = vector.shape_cast %437 : vector<1x8x128xf32> to vector<8x128xf32>
    %439 = vector.shape_cast %408 : vector<8x128xf32> to vector<1x8x128xf32>
    tpu.vector_store %arg10[%436, %c0_144, %c0_145], %439 {strides = array<i32>} : memref<6x8x256xf32, #tpu.memory_space<vmem>>, vector<1x8x128xf32>,
    %440 = arith.index_cast %371 : i32 to index
    %c0_146 = arith.constant 0 : index
    %c128_147 = arith.constant 128 : index
    %441 = vector.load %arg10[%440, %c0_146, %c128_147] : memref<6x8x256xf32, #tpu.memory_space<vmem>>, vector<1x8x128xf32>
    %442 = vector.shape_cast %441 : vector<1x8x128xf32> to vector<8x128xf32>
    %443 = vector.shape_cast %435 : vector<8x128xf32> to vector<1x8x128xf32>
    tpu.vector_store %arg10[%440, %c0_146, %c128_147], %443 {strides = array<i32>} : memref<6x8x256xf32, #tpu.memory_space<vmem>>, vector<1x8x128xf32>,
    %444 = arith.mulf %408, %17 : vector<8x128xf32>
    %cst_148 = arith.constant dense<0.000000e+00> : vector<8xf32>
    %445 = vector.multi_reduction <add>, %444, %cst_148 [1] : vector<8x128xf32> to vector<8xf32>
    %446 = vector.shape_cast %445 : vector<8xf32> to vector<8x1xf32>
    %447 = arith.index_cast %c4_i32 : i32 to index
    %c0_149 = arith.constant 0 : index
    %c0_150 = arith.constant 0 : index
    %448 = vector.load %arg13[%447, %c0_149, %c0_150] : memref<6x8x1xf32, #tpu.memory_space<vmem>>, vector<1x8x1xf32>
    %449 = vector.shape_cast %448 : vector<1x8x1xf32> to vector<8x1xf32>
    %450 = vector.shape_cast %446 : vector<8x1xf32> to vector<1x8x1xf32>
    tpu.vector_store %arg13[%447, %c0_149, %c0_150], %450 {strides = array<i32>} : memref<6x8x1xf32, #tpu.memory_space<vmem>>, vector<1x8x1xf32>,
    %451 = arith.mulf %435, %20 : vector<8x128xf32>
    %cst_151 = arith.constant dense<0.000000e+00> : vector<8xf32>
    %452 = vector.multi_reduction <add>, %451, %cst_151 [1] : vector<8x128xf32> to vector<8xf32>
    %453 = vector.shape_cast %452 : vector<8xf32> to vector<8x1xf32>
    %454 = arith.index_cast %371 : i32 to index
    %c0_152 = arith.constant 0 : index
    %c0_153 = arith.constant 0 : index
    %455 = vector.load %arg14[%454, %c0_152, %c0_153] : memref<6x8x1xf32, #tpu.memory_space<vmem>>, vector<1x8x1xf32>
    %456 = vector.shape_cast %455 : vector<1x8x1xf32> to vector<8x1xf32>
    %457 = vector.shape_cast %453 : vector<8x1xf32> to vector<1x8x1xf32>
    tpu.vector_store %arg14[%454, %c0_152, %c0_153], %457 {strides = array<i32>} : memref<6x8x1xf32, #tpu.memory_space<vmem>>, vector<1x8x1xf32>,
    %c5_i32_154 = arith.constant 5 : i32
    %c5_i32_155 = arith.constant 5 : i32
    %458 = arith.subi %c5_i32_155, %c5_i32_154 : i32
    %459 = arith.index_cast %c5_i32_154 : i32 to index
    %c0_156 = arith.constant 0 : index
    %c0_157 = arith.constant 0 : index
    %460 = vector.load %arg12[%459, %c0_156, %c0_157] : memref<6x8x768xf32, #tpu.memory_space<vmem>>, vector<1x8x768xf32>
    %461 = vector.shape_cast %460 : vector<1x8x768xf32> to vector<8x768xf32>
    %462 = arith.index_cast %458 : i32 to index
    %c0_158 = arith.constant 0 : index
    %c0_159 = arith.constant 0 : index
    %463 = vector.load %arg12[%462, %c0_158, %c0_159] : memref<6x8x768xf32, #tpu.memory_space<vmem>>, vector<1x8x768xf32>
    %464 = vector.shape_cast %463 : vector<1x8x768xf32> to vector<8x768xf32>
    %c0_160 = arith.constant 0 : index
    %c0_161 = arith.constant 0 : index
    %465 = vector.load %arg3[%c0_160, %c0_161] : memref<128x384xf32, #tpu.memory_space<vmem>>, vector<128x384xf32>
    %cst_162 = arith.constant dense<0.000000e+00> : vector<8x384xf32>
    %466 = tpu.matmul %408, %465, %cst_162 {dimension_numbers = #tpu.dot_dimension_numbers<[1], [0], [0], [1], [0, 0, 1, 1], [], []>} : vector<8x128xf32>, vector<128x384xf32>, vector<8x384xf32> -> vector<8x384xf32>
    %c0_163 = arith.constant 0 : index
    %c0_164 = arith.constant 0 : index
    %467 = vector.load %arg4[%c0_163, %c0_164] : memref<128x384xf32, #tpu.memory_space<vmem>>, vector<128x384xf32>
    %cst_165 = arith.constant dense<0.000000e+00> : vector<8x384xf32>
    %468 = tpu.matmul %435, %467, %cst_165 {dimension_numbers = #tpu.dot_dimension_numbers<[1], [0], [0], [1], [0, 0, 1, 1], [], []>} : vector<8x128xf32>, vector<128x384xf32>, vector<8x384xf32> -> vector<8x384xf32>
    %469 = vector.extract_strided_slice %461 {offsets = [0, 0], sizes = [8, 128], strides = [1, 1]} : vector<8x768xf32> to vector<8x128xf32>
    %470 = vector.extract_strided_slice %466 {offsets = [0, 0], sizes = [8, 128], strides = [1, 1]} : vector<8x384xf32> to vector<8x128xf32>
    %471 = arith.addf %469, %470 : vector<8x128xf32>
    %472 = arith.negf %471 : vector<8x128xf32>
    %473 = math.exp %472 : vector<8x128xf32>
    %cst_166 = arith.constant 1.000000e+00 : f32
    %474 = vector.broadcast %cst_166 : f32 to vector<8x128xf32>
    %475 = arith.addf %474, %473 : vector<8x128xf32>
    %476 = arith.divf %474, %475 : vector<8x128xf32>
    %477 = vector.extract_strided_slice %461 {offsets = [0, 128], sizes = [8, 128], strides = [1, 1]} : vector<8x768xf32> to vector<8x128xf32>
    %478 = vector.extract_strided_slice %466 {offsets = [0, 128], sizes = [8, 128], strides = [1, 1]} : vector<8x384xf32> to vector<8x128xf32>
    %479 = arith.addf %477, %478 : vector<8x128xf32>
    %480 = arith.negf %479 : vector<8x128xf32>
    %481 = math.exp %480 : vector<8x128xf32>
    %cst_167 = arith.constant 1.000000e+00 : f32
    %482 = vector.broadcast %cst_167 : f32 to vector<8x128xf32>
    %483 = arith.addf %482, %481 : vector<8x128xf32>
    %484 = arith.divf %482, %483 : vector<8x128xf32>
    %485 = vector.extract_strided_slice %461 {offsets = [0, 256], sizes = [8, 128], strides = [1, 1]} : vector<8x768xf32> to vector<8x128xf32>
    %486 = vector.extract_strided_slice %466 {offsets = [0, 256], sizes = [8, 128], strides = [1, 1]} : vector<8x384xf32> to vector<8x128xf32>
    %487 = arith.addf %486, %11 : vector<8x128xf32>
    %488 = arith.mulf %476, %487 : vector<8x128xf32>
    %489 = arith.addf %485, %488 : vector<8x128xf32>
    %490 = math.tanh %489 : vector<8x128xf32>
    %cst_168 = arith.constant 1.000000e+00 : f32
    %491 = vector.broadcast %cst_168 : f32 to vector<8x128xf32>
    %492 = arith.subf %491, %484 : vector<8x128xf32>
    %493 = arith.mulf %492, %490 : vector<8x128xf32>
    %494 = arith.mulf %484, %408 : vector<8x128xf32>
    %495 = arith.addf %493, %494 : vector<8x128xf32>
    %496 = vector.extract_strided_slice %464 {offsets = [0, 384], sizes = [8, 128], strides = [1, 1]} : vector<8x768xf32> to vector<8x128xf32>
    %497 = vector.extract_strided_slice %468 {offsets = [0, 0], sizes = [8, 128], strides = [1, 1]} : vector<8x384xf32> to vector<8x128xf32>
    %498 = arith.addf %496, %497 : vector<8x128xf32>
    %499 = arith.negf %498 : vector<8x128xf32>
    %500 = math.exp %499 : vector<8x128xf32>
    %cst_169 = arith.constant 1.000000e+00 : f32
    %501 = vector.broadcast %cst_169 : f32 to vector<8x128xf32>
    %502 = arith.addf %501, %500 : vector<8x128xf32>
    %503 = arith.divf %501, %502 : vector<8x128xf32>
    %504 = vector.extract_strided_slice %464 {offsets = [0, 512], sizes = [8, 128], strides = [1, 1]} : vector<8x768xf32> to vector<8x128xf32>
    %505 = vector.extract_strided_slice %468 {offsets = [0, 128], sizes = [8, 128], strides = [1, 1]} : vector<8x384xf32> to vector<8x128xf32>
    %506 = arith.addf %504, %505 : vector<8x128xf32>
    %507 = arith.negf %506 : vector<8x128xf32>
    %508 = math.exp %507 : vector<8x128xf32>
    %cst_170 = arith.constant 1.000000e+00 : f32
    %509 = vector.broadcast %cst_170 : f32 to vector<8x128xf32>
    %510 = arith.addf %509, %508 : vector<8x128xf32>
    %511 = arith.divf %509, %510 : vector<8x128xf32>
    %512 = vector.extract_strided_slice %464 {offsets = [0, 640], sizes = [8, 128], strides = [1, 1]} : vector<8x768xf32> to vector<8x128xf32>
    %513 = vector.extract_strided_slice %468 {offsets = [0, 256], sizes = [8, 128], strides = [1, 1]} : vector<8x384xf32> to vector<8x128xf32>
    %514 = arith.addf %513, %14 : vector<8x128xf32>
    %515 = arith.mulf %503, %514 : vector<8x128xf32>
    %516 = arith.addf %512, %515 : vector<8x128xf32>
    %517 = math.tanh %516 : vector<8x128xf32>
    %cst_171 = arith.constant 1.000000e+00 : f32
    %518 = vector.broadcast %cst_171 : f32 to vector<8x128xf32>
    %519 = arith.subf %518, %511 : vector<8x128xf32>
    %520 = arith.mulf %519, %517 : vector<8x128xf32>
    %521 = arith.mulf %511, %435 : vector<8x128xf32>
    %522 = arith.addf %520, %521 : vector<8x128xf32>
    %523 = arith.index_cast %c5_i32_154 : i32 to index
    %c0_172 = arith.constant 0 : index
    %c0_173 = arith.constant 0 : index
    %524 = vector.load %arg10[%523, %c0_172, %c0_173] : memref<6x8x256xf32, #tpu.memory_space<vmem>>, vector<1x8x128xf32>
    %525 = vector.shape_cast %524 : vector<1x8x128xf32> to vector<8x128xf32>
    %526 = vector.shape_cast %495 : vector<8x128xf32> to vector<1x8x128xf32>
    tpu.vector_store %arg10[%523, %c0_172, %c0_173], %526 {strides = array<i32>} : memref<6x8x256xf32, #tpu.memory_space<vmem>>, vector<1x8x128xf32>,
    %527 = arith.index_cast %458 : i32 to index
    %c0_174 = arith.constant 0 : index
    %c128_175 = arith.constant 128 : index
    %528 = vector.load %arg10[%527, %c0_174, %c128_175] : memref<6x8x256xf32, #tpu.memory_space<vmem>>, vector<1x8x128xf32>
    %529 = vector.shape_cast %528 : vector<1x8x128xf32> to vector<8x128xf32>
    %530 = vector.shape_cast %522 : vector<8x128xf32> to vector<1x8x128xf32>
    tpu.vector_store %arg10[%527, %c0_174, %c128_175], %530 {strides = array<i32>} : memref<6x8x256xf32, #tpu.memory_space<vmem>>, vector<1x8x128xf32>,
    %531 = arith.mulf %495, %17 : vector<8x128xf32>
    %cst_176 = arith.constant dense<0.000000e+00> : vector<8xf32>
    %532 = vector.multi_reduction <add>, %531, %cst_176 [1] : vector<8x128xf32> to vector<8xf32>
    %533 = vector.shape_cast %532 : vector<8xf32> to vector<8x1xf32>
    %534 = arith.index_cast %c5_i32_154 : i32 to index
    %c0_177 = arith.constant 0 : index
    %c0_178 = arith.constant 0 : index
    %535 = vector.load %arg13[%534, %c0_177, %c0_178] : memref<6x8x1xf32, #tpu.memory_space<vmem>>, vector<1x8x1xf32>
    %536 = vector.shape_cast %535 : vector<1x8x1xf32> to vector<8x1xf32>
    %537 = vector.shape_cast %533 : vector<8x1xf32> to vector<1x8x1xf32>
    tpu.vector_store %arg13[%534, %c0_177, %c0_178], %537 {strides = array<i32>} : memref<6x8x1xf32, #tpu.memory_space<vmem>>, vector<1x8x1xf32>,
    %538 = arith.mulf %522, %20 : vector<8x128xf32>
    %cst_179 = arith.constant dense<0.000000e+00> : vector<8xf32>
    %539 = vector.multi_reduction <add>, %538, %cst_179 [1] : vector<8x128xf32> to vector<8xf32>
    %540 = vector.shape_cast %539 : vector<8xf32> to vector<8x1xf32>
    %541 = arith.index_cast %458 : i32 to index
    %c0_180 = arith.constant 0 : index
    %c0_181 = arith.constant 0 : index
    %542 = vector.load %arg14[%541, %c0_180, %c0_181] : memref<6x8x1xf32, #tpu.memory_space<vmem>>, vector<1x8x1xf32>
    %543 = vector.shape_cast %542 : vector<1x8x1xf32> to vector<8x1xf32>
    %544 = vector.shape_cast %540 : vector<8x1xf32> to vector<1x8x1xf32>
    tpu.vector_store %arg14[%541, %c0_180, %c0_181], %544 {strides = array<i32>} : memref<6x8x1xf32, #tpu.memory_space<vmem>>, vector<1x8x1xf32>,
    %c6_i32 = arith.constant 6 : i32
    %c0_182 = arith.constant 0 : index
    %c0_183 = arith.constant 0 : index
    %545 = vector.load %arg11[%c0_182, %c0_183] : memref<8x256xf32, #tpu.memory_space<vmem>>, vector<8x128xf32>
    tpu.vector_store %arg11[%c0_182, %c0_183], %495 {strides = array<i32>} : memref<8x256xf32, #tpu.memory_space<vmem>>, vector<8x128xf32>,
    %c0_184 = arith.constant 0 : index
    %c128_185 = arith.constant 128 : index
    %546 = vector.load %arg11[%c0_184, %c128_185] : memref<8x256xf32, #tpu.memory_space<vmem>>, vector<8x128xf32>
    tpu.vector_store %arg11[%c0_184, %c128_185], %522 {strides = array<i32>} : memref<8x256xf32, #tpu.memory_space<vmem>>, vector<8x128xf32>,
    %c0_186 = arith.constant 0 : index
    %c0_187 = arith.constant 0 : index
    %c0_188 = arith.constant 0 : index
    %547 = vector.load %arg13[%c0_186, %c0_187, %c0_188] : memref<6x8x1xf32, #tpu.memory_space<vmem>>, vector<6x8x1xf32>
    %c0_189 = arith.constant 0 : index
    %c0_190 = arith.constant 0 : index
    %c0_191 = arith.constant 0 : index
    %548 = vector.load %arg14[%c0_189, %c0_190, %c0_191] : memref<6x8x1xf32, #tpu.memory_space<vmem>>, vector<6x8x1xf32>
    %549 = arith.addf %547, %548 : vector<6x8x1xf32>
    %550 = vector.shape_cast %549 : vector<6x8x1xf32> to vector<6x8xf32>
    %c0_192 = arith.constant 0 : index
    %c0_193 = arith.constant 0 : index
    %551 = vector.load %arg8[%c0_192, %c0_193] : memref<1x1xf32, #tpu.memory_space<vmem>>, vector<1x1xf32>
    %552 = vector.broadcast %551 : vector<1x1xf32> to vector<6x8xf32>
    %553 = arith.addf %550, %552 : vector<6x8xf32>
    %554 = arith.negf %553 : vector<6x8xf32>
    %555 = math.exp %554 : vector<6x8xf32>
    %cst_194 = arith.constant 1.000000e+00 : f32
    %556 = vector.broadcast %cst_194 : f32 to vector<6x8xf32>
    %557 = arith.addf %556, %555 : vector<6x8xf32>
    %558 = arith.divf %556, %557 : vector<6x8xf32>
    %c0_195 = arith.constant 0 : index
    %c0_196 = arith.constant 0 : index
    %559 = vector.load %arg9[%c0_195, %c0_196] : memref<6x8xf32, #tpu.memory_space<vmem>>, vector<6x8xf32>
    tpu.vector_store %arg9[%c0_195, %c0_196], %558 {strides = array<i32>} : memref<6x8xf32, #tpu.memory_space<vmem>>, vector<6x8xf32>,
    return
  }
}

</mosaic_0001>

<bundles_post_ra>
// kernel: document_encoder_forward.1
= control target key start
LH: loop header
LB: loop body
LE: loop exit
PB: predicated region body
PF: predicated region fallthrough
CT: control target
= control target key end

     0   :  { %s6291_s0 = inlined_call_operand.vmem [shape: f32[6,8,128], index: 0, kind: input, shape index: {}]   ;;  %s6292_s1 = inlined_call_operand.vmem [shape: f32[8,256], index: 1, kind: input, shape index: {}]   ;;  %s6293_s2 = inlined_call_operand.hbm [shape: f32[128,768], index: 2, kind: input, shape index: {}]   ;;  %s6294_s3 = inlined_call_operand.hbm [shape: f32[128,384], index: 3, kind: input, shape index: {}]   ;;  %s6295_s4 = inlined_call_operand.hbm [shape: f32[128,384], index: 4, kind: input, shape index: {}]   ;;  %s6296_s5 = inlined_call_operand.vmem [shape: f32[1,768], index: 5, kind: input, shape index: {}]   ;;  %s6297_s6 = inlined_call_operand.vmem [shape: f32[1,256], index: 6, kind: input, shape index: {}]   ;;  %s6298_s7 = inlined_call_operand.vmem [shape: f32[1,256], index: 7, kind: input, shape index: {}]   ;;  %s6299_s8 = inlined_call_operand.<no memory space> [shape: f32[1,1], index: 8, kind: input, shape index: {}]   ;;  %s6300_s9 = inlined_call_operand.vmem [shape: f32[6,8], index: 9, kind: output, shape index: {0}]   ;;  %s6301_s10 = inlined_call_operand.vmem [shape: f32[6,8,256], index: 10, kind: output, shape index: {1}]   ;;  %s6302_s11 = inlined_call_operand.vmem [shape: f32[8,256], index: 11, kind: output, shape index: {2}]  }
   0x1   :  { %v17_v0 = vstv %s6299_s8 }
   0x2   :  { %18 = vst [vmem:[#allocation5] sm:$0x1] %v17_v0 }
   0x3   :  { %19 = vsyncpa [#allocation7], 0 }
   0x4   :  { %20 = vsyncpa [#allocation9], 0  ;;  %s5071_s19 = smov [#allocation8]   ;;  %s5001_s23 = scalar_lea.hbm %s6294_s3, 6144 }
   0x5   :  { %s42_s20 = sshll.u32 %s5071_s19, 4  ;;  %p5002_p0 = scmp.ne.s32.totalorder %s6294_s3, %s5001_s23  ;;  %s43_s20 = int_to_ptr.vmem [resolvable:$true] %s42_s20 }
   0x6   :  { %p5005_p1 = scmp.lt.u32.totalorder %s5001_s23, %s6294_s3 }
   0x8   :  { %p5007_p2 = pnand %p5005_p1, %p5002_p0 }
   0xa   :  { %5010 = shalt.err (!%p5007_p2)
}
   0xb   :  { %s5011_s8 = scalar_lea.vmem %s43_s20, 6144  ;;  %p5016_p4 = scmp.lt.s32.totalorder %s43_s20, %s43_s20 }
   0xc   :  { %p5012_p3 = scmp.ne.s32.totalorder %s43_s20, %s5011_s8  ;;  %p5017_p5 = scmp.lt.s32.totalorder %s5011_s8, %s5011_s8 }
   0xe   :  { %p5018_p6 = por %p5017_p5, %p5016_p4 }
  0x10   :  { %p5019_p7 = pnand %p5018_p6, %p5012_p3 }
  0x12   :  { %5022 = shalt.err (!%p5019_p7)
}
  0x13   :  { %s5072_s28 = smov 384   ;;  %s5073_s29 = smov 24  }
  0x14   :  { %48 = dma.hbm_to_vmem [thread:$0]  %s6294_s3, 6144, %s43_s20, [#allocation9], %s5072_s28, %s5072_s28, %s5073_s29  }
  0x15   :  { %s5074_s13 = smov [#allocation6]   ;;  %s5023_s17 = scalar_lea.hbm %s6293_s2, 12288 }
  0x16   :  { %s30_s14 = sshll.u32 %s5074_s13, 4  ;;  %p5024_p8 = scmp.ne.s32.totalorder %s6293_s2, %s5023_s17  ;;  %s31_s14 = int_to_ptr.vmem [resolvable:$true] %s30_s14 }
  0x17   :  { %p5027_p9 = scmp.lt.u32.totalorder %s5023_s17, %s6293_s2 }
  0x19   :  { %p5029_p10 = pnand %p5027_p9, %p5024_p8 }
  0x1b   :  { %5032 = shalt.err (!%p5029_p10)
}
  0x1c   :  { %s5033_s23 = scalar_lea.vmem %s31_s14, 12288  ;;  %p5038_p12 = scmp.lt.s32.totalorder %s31_s14, %s31_s14 }
  0x1d   :  { %p5034_p11 = scmp.ne.s32.totalorder %s31_s14, %s5033_s23  ;;  %p5039_p13 = scmp.lt.s32.totalorder %s5033_s23, %s5033_s23 }
  0x1f   :  { %p5040_p0 = por %p5039_p13, %p5038_p12 }
  0x21   :  { %p5041_p1 = pnand %p5040_p0, %p5034_p11 }
  0x23   :  { %5044 = shalt.err (!%p5041_p1)
}
  0x24   :  { %s5075_s3 = smov 768   ;;  %s5076_s20 = smov 48  }
  0x25   :  { %36 = dma.hbm_to_vmem [thread:$0]  %s6293_s2, 12288, %s31_s14, [#allocation7], %s5075_s3, %s5075_s3, %s5076_s20  }
  0x26   :  { %s5077_s26 = smov [#allocation10]   ;;  %s5045_s12 = scalar_lea.hbm %s6295_s4, 6144 }
  0x27   :  { %s54_s27 = sshll.u32 %s5077_s26, 4  ;;  %p5046_p2 = scmp.ne.s32.totalorder %s6295_s4, %s5045_s12  ;;  %s55_s27 = int_to_ptr.vmem [resolvable:$true] %s54_s27 }
  0x28   :  { %p5049_p3 = scmp.lt.u32.totalorder %s5045_s12, %s6295_s4 }
  0x2a   :  { %p5051_p4 = pnand %p5049_p3, %p5046_p2 }
  0x2c   :  { %5054 = shalt.err (!%p5051_p4)
}
  0x2d   :  { %s5055_s18 = scalar_lea.vmem %s55_s27, 6144  ;;  %p5060_p6 = scmp.lt.s32.totalorder %s55_s27, %s55_s27 }
  0x2e   :  { %p5056_p5 = scmp.ne.s32.totalorder %s55_s27, %s5055_s18  ;;  %p5061_p7 = scmp.lt.s32.totalorder %s5055_s18, %s5055_s18 }
  0x30   :  { %p5062_p8 = por %p5061_p7, %p5060_p6 }
  0x32   :  { %p5063_p9 = pnand %p5062_p8, %p5056_p5 }
  0x34   :  { %5066 = shalt.err (!%p5063_p9)
}
  0x35   :  { %60 = dma.hbm_to_vmem [thread:$0]  %s6295_s4, 6144, %s55_s27, [#allocation9], %s5072_s28, %s5072_s28, %s5073_s29  }
  0x36   :  { %5067 = dma.done.wait [#allocation7], 12288  }
  0x37   :  { %5068 = vsyncadd [#allocation7], 4294955008 }
  0x38   :  { %5069 = dma.done.wait [#allocation9], 12288  }
  0x39   :  { %5070 = vsyncadd [#allocation9], 4294955008  ;;  %v6304_v1 = vmov 0.0   ;;  %v85_v2 = vld [vmem:[#allocation6 + $0x8] sm:$0xff]  ;;  %v91_v3 = vld [vmem:[#allocation6 + $0x38] sm:$0xff]  ;;  %vm5080_vm0 = vmmov 0  }
  0x3a   :  { %276 = vmatprep.mubr.f32.mxu0 %v6304_v1  ;;  %377 = vmatprep.mubr.f32.mxu1 %v6304_v1  ;;  %v87_v4 = vld [vmem:[#allocation6 + $0x18] sm:$0xff]  ;;  %v4048_v5 = vpack.c.bf16 %v91_v3, %v85_v2  ;;  %v93_v6 = vld [vmem:[#allocation6 + $0x48] sm:$0xff]  ;;  %v84_v7 = vld [vmem:[#allocation6] sm:$0xff]  ;;  %vm1016_vm1 = vcmask 7168   ;;  %vm3352_vm2 = vcmask 1041409   ;;  %vm3354_vm3 = vcmask 1042434  }
  0x3b   :  { %v90_v8 = vld [vmem:[#allocation6 + $0x30] sm:$0xff]  ;;  %v4080_v9 = vpack.c.bf16 %v93_v6, %v87_v4  ;;  %v92_v12 = vld [vmem:[#allocation6 + $0x40] sm:$0xff]  ;;  %v97_v13 = vld [vmem:[#allocation6 + $0x68] sm:$0xff]  ;;  %vm3356_vm4 = vcmask 1043459   ;;  %vm3358_vm5 = vcmask 1044484   ;;  %vm3360_vm6 = vcmask 1045509  }
  0x3c   :  { %v4050_v10 = vpack.c.bf16 %v90_v8, %v84_v7  ;;  %v86_v11 = vld [vmem:[#allocation6 + $0x10] sm:$0xff]  ;;  %4049 = vmatprep.subr.bf16.mxu0 %v4048_v5  ;;  %v103_v15 = vld [vmem:[#allocation6 + $0x98] sm:$0xff]  ;;  %v105_v17 = vld [vmem:[#allocation6 + $0xa8] sm:$0xff]  ;;  %vm3363_vm7 = vcmask 62464  }
  0x3d   :  { %v4082_v14 = vpack.c.bf16 %v92_v12, %v86_v11  ;;  %v99_v16 = vld [vmem:[#allocation6 + $0x78] sm:$0xff]  ;;  %4081 = vmatprep.subr.bf16.mxu1 %v4080_v9  ;;  %v4052_v18 = vpack.c.bf16 %v103_v15, %v97_v13  ;;  %v96_v20 = vld [vmem:[#allocation6 + $0x60] sm:$0xff]  ;;  %v102_v21 = vld [vmem:[#allocation6 + $0x90] sm:$0xff] }
  0x3e   :  { %4051 = vmatpush1.bf16.msra.mxu0 %v4050_v10  ;;  %v4084_v19 = vpack.c.bf16 %v105_v17, %v99_v16  ;;  %v98_v22 = vld [vmem:[#allocation6 + $0x70] sm:$0xff]  ;;  %v4054_v23 = vpack.c.bf16 %v102_v21, %v96_v20  ;;  %v104_v24 = vld [vmem:[#allocation6 + $0xa0] sm:$0xff]  ;;  %v109_v25 = vld [vmem:[#allocation6 + $0xc8] sm:$0xff] }
  0x3f   :  { %4083 = vmatpush1.bf16.msra.mxu1 %v4082_v14  ;;  %v115_v26 = vld [vmem:[#allocation6 + $0xf8] sm:$0xff]  ;;  %4053 = vmatprep.subr.bf16.mxu0 %v4052_v18  ;;  %v4086_v27 = vpack.c.bf16 %v104_v24, %v98_v22  ;;  %v117_v30 = vld [vmem:[#allocation6 + $0x108] sm:$0xff]  ;;  %v108_v31 = vld [vmem:[#allocation6 + $0xc0] sm:$0xff] }
  0x40   :  { %4085 = vmatprep.subr.bf16.mxu1 %v4084_v19  ;;  %v4056_v28 = vpack.c.bf16 %v115_v26, %v109_v25  ;;  %v111_v29 = vld [vmem:[#allocation6 + $0xd8] sm:$0xff]  ;;  %v114_v33 = vld [vmem:[#allocation6 + $0xf0] sm:$0xff]  ;;  %v116_v35 = vld [vmem:[#allocation6 + $0x100] sm:$0xff] }
  0x41   :  { %v4088_v32 = vpack.c.bf16 %v117_v30, %v111_v29  ;;  %v110_v34 = vld [vmem:[#allocation6 + $0xd0] sm:$0xff]  ;;  %v4058_v36 = vpack.c.bf16 %v114_v33, %v108_v31  ;;  %v121_v37 = vld [vmem:[#allocation6 + $0x128] sm:$0xff]  ;;  %v127_v38 = vld [vmem:[#allocation6 + $0x158] sm:$0xff] }
  0x42   :  { %4055 = vmatpush1.bf16.msra.mxu0 %v4054_v23  ;;  %v123_v39 = vld [vmem:[#allocation6 + $0x138] sm:$0xff]  ;;  %v4090_v40 = vpack.c.bf16 %v116_v35, %v110_v34  ;;  %v4060_v41 = vpack.c.bf16 %v127_v38, %v121_v37  ;;  %v129_v42 = vld [vmem:[#allocation6 + $0x168] sm:$0xff]  ;;  %v120_v43 = vld [vmem:[#allocation6 + $0x120] sm:$0xff] }
  0x43   :  { %4087 = vmatpush1.bf16.msra.mxu1 %v4086_v27  ;;  %4057 = vmatprep.subr.bf16.mxu0 %v4056_v28  ;;  %v126_v44 = vld [vmem:[#allocation6 + $0x150] sm:$0xff]  ;;  %v4092_v45 = vpack.c.bf16 %v129_v42, %v123_v39  ;;  %v128_v47 = vld [vmem:[#allocation6 + $0x160] sm:$0xff]  ;;  %v133_v48 = vld [vmem:[#allocation6 + $0x188] sm:$0xff] }
  0x44   :  { %4089 = vmatprep.subr.bf16.mxu1 %v4088_v32  ;;  %v122_v46 = vld [vmem:[#allocation6 + $0x130] sm:$0xff]  ;;  %v139_v49 = vld [vmem:[#allocation6 + $0x1b8] sm:$0xff]  ;;  %v141_v51 = vld [vmem:[#allocation6 + $0x1c8] sm:$0xff]  ;;  %v4062_v52 = vpack.c.bf16 %v126_v44, %v120_v43 }
  0x45   :  { %v135_v50 = vld [vmem:[#allocation6 + $0x198] sm:$0xff]  ;;  %v4094_v53 = vpack.c.bf16 %v128_v47, %v122_v46  ;;  %v4064_v54 = vpack.c.bf16 %v139_v49, %v133_v48  ;;  %v132_v55 = vld [vmem:[#allocation6 + $0x180] sm:$0xff]  ;;  %v138_v56 = vld [vmem:[#allocation6 + $0x1b0] sm:$0xff] }
  0x46   :  { %4059 = vmatpush1.bf16.msra.mxu0 %v4058_v36  ;;  %v134_v57 = vld [vmem:[#allocation6 + $0x190] sm:$0xff]  ;;  %v4096_v58 = vpack.c.bf16 %v141_v51, %v135_v50  ;;  %v140_v59 = vld [vmem:[#allocation6 + $0x1c0] sm:$0xff]  ;;  %v145_v60 = vld [vmem:[#allocation6 + $0x1e8] sm:$0xff]  ;;  %v4066_v0 = vpack.c.bf16 %v138_v56, %v132_v55  ;;  %v6306_v51 = vmov 0.0|0.0  }
  0x47   :  { %4091 = vmatpush1.bf16.msra.mxu1 %v4090_v40  ;;  %4061 = vmatprep.subr.bf16.mxu0 %v4060_v41  ;;  %v151_v61 = vld [vmem:[#allocation6 + $0x218] sm:$0xff]  ;;  %v153_v63 = vld [vmem:[#allocation6 + $0x228] sm:$0xff]  ;;  %v4098_v2 = vpack.c.bf16 %v140_v59, %v134_v57  ;;  %v144_v4 = vld [vmem:[#allocation6 + $0x1e0] sm:$0xff] }
  0x48   :  { %4093 = vmatprep.subr.bf16.mxu1 %v4092_v45  ;;  %v147_v62 = vld [vmem:[#allocation6 + $0x1f8] sm:$0xff]  ;;  %v4068_v3 = vpack.c.bf16 %v151_v61, %v145_v60  ;;  %v150_v5 = vld [vmem:[#allocation6 + $0x210] sm:$0xff]  ;;  %v152_v8 = vld [vmem:[#allocation6 + $0x220] sm:$0xff] }
  0x49   :  { %v146_v6 = vld [vmem:[#allocation6 + $0x1f0] sm:$0xff]  ;;  %v4100_v7 = vpack.c.bf16 %v153_v63, %v147_v62  ;;  %v157_v9 = vld [vmem:[#allocation6 + $0x248] sm:$0xff]  ;;  %v163_v10 = vld [vmem:[#allocation6 + $0x278] sm:$0xff]  ;;  %v4070_v13 = vpack.c.bf16 %v150_v5, %v144_v4 }
  0x4a   :  { %4063 = vmatpush1.bf16.msra.mxu0 %v4062_v52  ;;  %v159_v11 = vld [vmem:[#allocation6 + $0x258] sm:$0xff]  ;;  %v165_v12 = vld [vmem:[#allocation6 + $0x288] sm:$0xff]  ;;  %v4102_v14 = vpack.c.bf16 %v152_v8, %v146_v6  ;;  %v4072_v15 = vpack.c.bf16 %v163_v10, %v157_v9  ;;  %v156_v16 = vld [vmem:[#allocation6 + $0x240] sm:$0xff] }
  0x4b   :  { %4095 = vmatpush1.bf16.msra.mxu1 %v4094_v53  ;;  %4065 = vmatprep.subr.bf16.mxu0 %v4064_v54  ;;  %v162_v17 = vld [vmem:[#allocation6 + $0x270] sm:$0xff]  ;;  %v4104_v19 = vpack.c.bf16 %v165_v12, %v159_v11  ;;  %v164_v20 = vld [vmem:[#allocation6 + $0x280] sm:$0xff]  ;;  %v169_v21 = vld [vmem:[#allocation6 + $0x2a8] sm:$0xff] }
  0x4c   :  { %4097 = vmatprep.subr.bf16.mxu1 %v4096_v58  ;;  %v158_v18 = vld [vmem:[#allocation6 + $0x250] sm:$0xff]  ;;  %v175_v22 = vld [vmem:[#allocation6 + $0x2d8] sm:$0xff]  ;;  %v177_v24 = vld [vmem:[#allocation6 + $0x2e8] sm:$0xff]  ;;  %v4074_v25 = vpack.c.bf16 %v162_v17, %v156_v16 }
  0x4d   :  { %v171_v23 = vld [vmem:[#allocation6 + $0x2b8] sm:$0xff]  ;;  %v4106_v26 = vpack.c.bf16 %v164_v20, %v158_v18  ;;  %v4076_v27 = vpack.c.bf16 %v175_v22, %v169_v21  ;;  %v168_v28 = vld [vmem:[#allocation6 + $0x2a0] sm:$0xff]  ;;  %v174_v29 = vld [vmem:[#allocation6 + $0x2d0] sm:$0xff] }
  0x4e   :  { %4067 = vmatpush1.bf16.msra.mxu0 %v4066_v0  ;;  %v170_v30 = vld [vmem:[#allocation6 + $0x2b0] sm:$0xff]  ;;  %v4108_v31 = vpack.c.bf16 %v177_v24, %v171_v23  ;;  %v176_v32 = vld [vmem:[#allocation6 + $0x2e0] sm:$0xff]  ;;  %v89_v33 = vld [vmem:[#allocation6 + $0x28] sm:$0xff]  ;;  %v4078_v35 = vpack.c.bf16 %v174_v29, %v168_v28 }
  0x4f   :  { %4099 = vmatpush1.bf16.msra.mxu1 %v4098_v2  ;;  %4069 = vmatprep.subr.bf16.mxu0 %v4068_v3  ;;  %v95_v34 = vld [vmem:[#allocation6 + $0x58] sm:$0xff]  ;;  %v4110_v36 = vpack.c.bf16 %v176_v32, %v170_v30  ;;  %v88_v38 = vld [vmem:[#allocation6 + $0x20] sm:$0xff]  ;;  %v94_v39 = vld [vmem:[#allocation6 + $0x50] sm:$0xff] }
  0x50   :  { %4101 = vmatprep.subr.bf16.mxu1 %v4100_v7  ;;  %v4112_v37 = vpack.c.bf16 %v95_v34, %v89_v33  ;;  %v590_v40 = vld [vmem:[#allocation8 + $0x10] sm:$0xff]  ;;  %v593_v41 = vld [vmem:[#allocation8 + $0x28] sm:$0xff]  ;;  %v107_v43 = vld [vmem:[#allocation6 + $0xb8] sm:$0xff]  ;;  %v4114_v45 = vpack.c.bf16 %v94_v39, %v88_v38 }
  0x51   :  { %v101_v42 = vld [vmem:[#allocation6 + $0x88] sm:$0xff]  ;;  %v5192_v44 = vld [vmem:[%s6291_s0] sm:$0xff]  ;;  %v5194_v46 = vpack.c.bf16 %v593_v41, %v590_v40  ;;  %v106_v49 = vld [vmem:[#allocation6 + $0xb0] sm:$0xff] }
  0x52   :  { %4071 = vmatpush1.bf16.msra.mxu0 %v4070_v13  ;;  %v4116_v47 = vpack.c.bf16 %v107_v43, %v101_v42  ;;  %v100_v48 = vld [vmem:[#allocation6 + $0x80] sm:$0xff]  ;;  %v599_v52 = vld [vmem:[#allocation8 + $0x58] sm:$0xff]  ;;  %v113_v53 = vld [vmem:[#allocation6 + $0xe8] sm:$0xff] }
  0x53   :  { %4103 = vmatpush1.bf16.msra.mxu1 %v4102_v14  ;;  %4073 = vmatprep.subr.bf16.mxu0 %v4072_v15  ;;  %v596_v50 = vld [vmem:[#allocation8 + $0x40] sm:$0xff]  ;;  %v119_v54 = vld [vmem:[#allocation6 + $0x118] sm:$0xff]  ;;  %v4118_v55 = vpack.c.bf16 %v106_v49, %v100_v48  ;;  %v118_v60 = vld [vmem:[#allocation6 + $0x110] sm:$0xff] }
  0x54   :  { %4105 = vmatprep.subr.bf16.mxu1 %v4104_v19  ;;  %v5202_v56 = vld [vmem:[%s6291_s0 + $0x8] sm:$0xff]  ;;  %v5205_v57 = vpack.c.bf16 %v599_v52, %v596_v50  ;;  %v4120_v58 = vpack.c.bf16 %v119_v54, %v113_v53  ;;  %v602_v61 = vld [vmem:[#allocation8 + $0x70] sm:$0xff]  ;;  %v131_v0 = vld [vmem:[#allocation6 + $0x178] sm:$0xff] }
  0x55   :  { %v112_v59 = vld [vmem:[#allocation6 + $0xe0] sm:$0xff]  ;;  %v605_v62 = vld [vmem:[#allocation8 + $0x88] sm:$0xff]  ;;  %v130_v7 = vld [vmem:[#allocation6 + $0x170] sm:$0xff] }
  0x56   :  { %4075 = vmatpush1.bf16.msra.mxu0 %v4074_v25  ;;  %v125_v63 = vld [vmem:[#allocation6 + $0x148] sm:$0xff]  ;;  %v4122_v2 = vpack.c.bf16 %v118_v60, %v112_v59  ;;  %v5218_v4 = vpack.c.bf16 %v605_v62, %v602_v61  ;;  %v124_v6 = vld [vmem:[#allocation6 + $0x140] sm:$0xff]  ;;  %v611_v9 = vld [vmem:[#allocation8 + $0xb8] sm:$0xff] }
  0x57   :  { %4107 = vmatpush1.bf16.msra.mxu1 %v4106_v26  ;;  %4077 = vmatprep.subr.bf16.mxu0 %v4076_v27  ;;  %v5215_v3 = vld [vmem:[%s6291_s0 + $0x10] sm:$0xff]  ;;  %v4124_v5 = vpack.c.bf16 %v131_v0, %v125_v63  ;;  %v608_v8 = vld [vmem:[#allocation8 + $0xa0] sm:$0xff]  ;;  %v143_v11 = vld [vmem:[#allocation6 + $0x1d8] sm:$0xff]  ;;  %v4126_v12 = vpack.c.bf16 %v130_v7, %v124_v6 }
  0x58   :  { %4109 = vmatprep.subr.bf16.mxu1 %v4108_v31  ;;  %v137_v10 = vld [vmem:[#allocation6 + $0x1a8] sm:$0xff]  ;;  %v5228_v13 = vld [vmem:[%s6291_s0 + $0x18] sm:$0xff]  ;;  %v5231_v14 = vpack.c.bf16 %v611_v9, %v608_v8  ;;  %v136_v16 = vld [vmem:[#allocation6 + $0x1a0] sm:$0xff] }
  0x59   :  { %v4128_v15 = vpack.c.bf16 %v143_v11, %v137_v10  ;;  %v142_v17 = vld [vmem:[#allocation6 + $0x1d0] sm:$0xff]  ;;  %v617_v19 = vld [vmem:[#allocation8 + $0xe8] sm:$0xff]  ;;  %v155_v21 = vld [vmem:[#allocation6 + $0x238] sm:$0xff] }
  0x5a   :  { %4079 = vmatpush1.bf16.msra.mxu0 %v4078_v35  ;;  %v614_v18 = vld [vmem:[#allocation8 + $0xd0] sm:$0xff]  ;;  %v149_v20 = vld [vmem:[#allocation6 + $0x208] sm:$0xff]  ;;  %v4130_v22 = vpack.c.bf16 %v142_v17, %v136_v16  ;;  %v5241_v23 = vld [vmem:[%s6291_s0 + $0x20] sm:$0xff] }
  0x5b   :  { %4111 = vmatpush1.bf16.msra.mxu1 %v4110_v36  ;;  %4113 = vmatprep.subr.bf16.mxu0 %v4112_v37  ;;  %v5244_v24 = vpack.c.bf16 %v617_v19, %v614_v18  ;;  %v4132_v25 = vpack.c.bf16 %v155_v21, %v149_v20  ;;  %v148_v26 = vld [vmem:[#allocation6 + $0x200] sm:$0xff]  ;;  %v154_v27 = vld [vmem:[#allocation6 + $0x230] sm:$0xff]  ;;  %v623_v29 = vld [vmem:[#allocation8 + $0x118] sm:$0xff] }
  0x5c   :  { %4176 = vmatprep.subr.bf16.mxu1 %v6306_v51  ;;  %v620_v28 = vld [vmem:[#allocation8 + $0x100] sm:$0xff]  ;;  %v161_v30 = vld [vmem:[#allocation6 + $0x268] sm:$0xff]  ;;  %v167_v31 = vld [vmem:[#allocation6 + $0x298] sm:$0xff]  ;;  %v4134_v32 = vpack.c.bf16 %v154_v27, %v148_v26 }
  0x5d   :  { %277 = vmatmul.mubr.f32.vlgmr.msra.gmra.mrb[0].mxu0 %v5192_v44  ;;  %v5254_v33 = vld [vmem:[%s6291_s0 + $0x28] sm:$0xff]  ;;  %v5257_v34 = vpack.c.bf16 %v623_v29, %v620_v28  ;;  %v4136_v35 = vpack.c.bf16 %v167_v31, %v161_v30  ;;  %v166_v37 = vld [vmem:[#allocation6 + $0x290] sm:$0xff]  ;;  %v179_v41 = vld [vmem:[#allocation6 + $0x2f8] sm:$0xff] }
  0x5e   :  { %378 = vmatmul.mubr.f32.vlgmr.msra.gmra.mrb[0].mxu1 %v5192_v44  ;;  %4115 = vmatpush1.bf16.msra.mxu0 %v4114_v45  ;;  %v160_v36 = vld [vmem:[#allocation6 + $0x260] sm:$0xff]  ;;  %v626_v38 = vld [vmem:[#allocation8 + $0x130] sm:$0xff]  ;;  %v629_v39 = vld [vmem:[#allocation8 + $0x148] sm:$0xff] }
  0x5f   :  { %4178 = vmatpush3.bf16.msra.mxu1 %v5194_v46  ;;  %4117 = vmatprep.subr.bf16.mxu0 %v4116_v47  ;;  %v173_v40 = vld [vmem:[#allocation6 + $0x2c8] sm:$0xff]  ;;  %v4138_v42 = vpack.c.bf16 %v166_v37, %v160_v36  ;;  %v5265_v43 = vpack.c.bf16 %v629_v39, %v626_v38  ;;  %v172_v47 = vld [vmem:[#allocation6 + $0x2c0] sm:$0xff]  ;;  %v178_v48 = vld [vmem:[#allocation6 + $0x2f0] sm:$0xff] }
  0x60   :  { %4179 = vmatprep.subr.bf16.mxu1 %v6306_v51  ;;  %282 = vmatprep.mubr.f32.mxu0 %v6304_v1  ;;  %v4140_v45 = vpack.c.bf16 %v179_v41, %v173_v40  ;;  %v632_v49 = vld [vmem:[#allocation8 + $0x160] sm:$0xff]  ;;  %v635_v50 = vld [vmem:[#allocation8 + $0x178] sm:$0xff]  ;;  %v589_v52 = vld [vmem:[#allocation8 + $0x8] sm:$0xff] }
  0x61   :  { %283 = vmatmul.mubr.f32.gmra.mrb[2].mxu0 %v5202_v56  ;;  %383 = vmatprep.mubr.f32.mxu1 %v6304_v1  ;;  %v592_v53 = vld [vmem:[#allocation8 + $0x20] sm:$0xff]  ;;  %v778_v54 = vld [vmem:[#allocation10 + $0x8] sm:$0xff]  ;;  %v5272_v59 = vpack.c.bf16 %v635_v50, %v632_v49  ;;  %v591_v62 = vld [vmem:[#allocation8 + $0x18] sm:$0xff] }
  0x62   :  { %4119 = vmatpush1.bf16.msra.mxu0 %v4118_v55  ;;  %384 = vmatmul.mubr.f32.gmra.mrb[2].mxu1 %v5202_v56  ;;  %v781_v55 = vld [vmem:[#allocation10 + $0x20] sm:$0xff]  ;;  %v5274_v60 = vpack.c.bf16 %v592_v53, %v589_v52  ;;  %v598_v6 = vld [vmem:[#allocation8 + $0x50] sm:$0xff]  ;;  %v784_v7 = vld [vmem:[#allocation10 + $0x38] sm:$0xff] }
  0x63   :  { %4181 = vmatpush3.bf16.msra.mxu1 %v5205_v57  ;;  %4121 = vmatprep.subr.bf16.mxu0 %v4120_v58  ;;  %v4142_v58 = vpack.c.bf16 %v178_v48, %v172_v47  ;;  %v588_v61 = vld [vmem:[#allocation8] sm:$0xff]  ;;  %v5277_v0 = vpack.c.bf16 %v781_v55, %v778_v54  ;;  %v787_v8 = vld [vmem:[#allocation10 + $0x50] sm:$0xff]  ;;  %v597_v16 = vld [vmem:[#allocation8 + $0x48] sm:$0xff] }
  0x64   :  { %4182 = vmatprep.subr.bf16.mxu1 %v6306_v51  ;;  %288 = vmatprep.mubr.f32.mxu0 %v6304_v1  ;;  %v777_v63 = vld [vmem:[#allocation10] sm:$0xff]  ;;  %v5279_v9 = vpack.c.bf16 %v591_v62, %v588_v61  ;;  %v783_v17 = vld [vmem:[#allocation10 + $0x30] sm:$0xff]  ;;  %v5293_v18 = vpack.c.bf16 %v787_v8, %v784_v7  ;;  %v786_v19 = vld [vmem:[#allocation10 + $0x48] sm:$0xff] }
  0x65   :  { %289 = vmatmul.mubr.f32.gmra.mrb[4].mxu0 %v5215_v3  ;;  %389 = vmatprep.mubr.f32.mxu1 %v6304_v1  ;;  %v5284_v10 = vld [vmem:[%s6292_s1] sm:$0xff]  ;;  %v601_v20 = vld [vmem:[#allocation8 + $0x68] sm:$0xff]  ;;  %v5302_v27 = vpack.c.bf16 %v786_v19, %v783_v17  ;;  %v610_v36 = vld [vmem:[#allocation8 + $0xb0] sm:$0xff] }
  0x66   :  { %4123 = vmatpush1.bf16.msra.mxu0 %v4122_v2  ;;  %390 = vmatmul.mubr.f32.gmra.mrb[4].mxu1 %v5215_v3  ;;  %v780_v2 = vld [vmem:[#allocation10 + $0x18] sm:$0xff]  ;;  %v604_v21 = vld [vmem:[#allocation8 + $0x80] sm:$0xff]  ;;  %v799_v38 = vld [vmem:[#allocation10 + $0xb0] sm:$0xff] }
  0x67   :  { %4184 = vmatpush3.bf16.msra.mxu1 %v5218_v4  ;;  %4125 = vmatprep.subr.bf16.mxu0 %v4124_v5  ;;  %v595_v5 = vld [vmem:[#allocation8 + $0x38] sm:$0xff]  ;;  %v5288_v11 = vpack.c.bf16 %v780_v2, %v777_v63  ;;  %v5304_v28 = vpack.c.bf16 %v604_v21, %v601_v20  ;;  %v600_v29 = vld [vmem:[#allocation8 + $0x60] sm:$0xff]  ;;  %v798_v48 = vld [vmem:[#allocation10 + $0xa8] sm:$0xff] }
  0x68   :  { %4185 = vmatprep.subr.bf16.mxu1 %v6306_v51  ;;  %294 = vmatprep.mubr.f32.mxu0 %v6304_v1  ;;  %v603_v30 = vld [vmem:[#allocation8 + $0x78] sm:$0xff]  ;;  %v789_v31 = vld [vmem:[#allocation10 + $0x60] sm:$0xff]  ;;  %v613_v49 = vld [vmem:[#allocation8 + $0xc8] sm:$0xff] }
  0x69   :  { %295 = vmatmul.mubr.f32.gmra.mrb[6].mxu0 %v5228_v13  ;;  %395 = vmatprep.mubr.f32.mxu1 %v6304_v1  ;;  %v796_v37 = vld [vmem:[#allocation10 + $0x98] sm:$0xff]  ;;  %v5313_v39 = vpack.c.bf16 %v603_v30, %v600_v29  ;;  %v616_v50 = vld [vmem:[#allocation8 + $0xe0] sm:$0xff]  ;;  %v802_v52 = vld [vmem:[#allocation10 + $0xc8] sm:$0xff] }
  0x6a   :  { %4127 = vmatpush1.bf16.msra.mxu0 %v4126_v12  ;;  %396 = vmatmul.mubr.f32.gmra.mrb[6].mxu1 %v5228_v13  ;;  %v5290_v12 = vpack.c.bf16 %v598_v6, %v595_v5  ;;  %v5323_v47 = vpack.c.bf16 %v799_v38, %v796_v37  ;;  %v805_v53 = vld [vmem:[#allocation10 + $0xe0] sm:$0xff]  ;;  %v615_v62 = vld [vmem:[#allocation8 + $0xd8] sm:$0xff]  ;;  %v622_v6 = vld [vmem:[#allocation8 + $0x110] sm:$0xff] }
  0x6b   :  { %4187 = vmatpush3.bf16.msra.mxu1 %v5231_v14  ;;  %4129 = vmatprep.subr.bf16.mxu0 %v4128_v15  ;;  %v594_v15 = vld [vmem:[#allocation8 + $0x30] sm:$0xff]  ;;  %v612_v61 = vld [vmem:[#allocation8 + $0xc0] sm:$0xff]  ;;  %v804_v2 = vld [vmem:[#allocation10 + $0xd8] sm:$0xff] }
  0x6c   :  { %4188 = vmatprep.subr.bf16.mxu1 %v6306_v51  ;;  %300 = vmatprep.mubr.f32.mxu0 %v6304_v1  ;;  %v5298_v26 = vpack.c.bf16 %v597_v16, %v594_v15  ;;  %v801_v63 = vld [vmem:[#allocation10 + $0xc0] sm:$0xff]  ;;  %v619_v5 = vld [vmem:[#allocation8 + $0xf8] sm:$0xff]  ;;  %v811_v8 = vld [vmem:[#allocation10 + $0x110] sm:$0xff]  ;;  %v5341_v15 = vpack.c.bf16 %v615_v62, %v612_v61 }
  0x6d   :  { %301 = vmatmul.mubr.f32.gmra.mrb[8].mxu0 %v5241_v23  ;;  %401 = vmatprep.mubr.f32.mxu1 %v6304_v1  ;;  %v808_v7 = vld [vmem:[#allocation10 + $0xf8] sm:$0xff]  ;;  %v5346_v16 = vpack.c.bf16 %v804_v2, %v801_v63  ;;  %v5348_v17 = vpack.c.bf16 %v622_v6, %v619_v5  ;;  %v618_v19 = vld [vmem:[#allocation8 + $0xf0] sm:$0xff]  ;;  %v621_v20 = vld [vmem:[#allocation8 + $0x108] sm:$0xff] }
  0x6e   :  { %4131 = vmatpush1.bf16.msra.mxu0 %v4130_v22  ;;  %402 = vmatmul.mubr.f32.gmra.mrb[8].mxu1 %v5241_v23  ;;  %v790_v22 = vld [vmem:[#allocation10 + $0x68] sm:$0xff]  ;;  %v807_v21 = vld [vmem:[#allocation10 + $0xf0] sm:$0xff]  ;;  %v628_v29 = vld [vmem:[#allocation8 + $0x140] sm:$0xff] }
  0x6f   :  { %4190 = vmatpush3.bf16.msra.mxu1 %v5244_v24  ;;  %4133 = vmatprep.subr.bf16.mxu0 %v4132_v25  ;;  %v793_v25 = vld [vmem:[#allocation10 + $0x80] sm:$0xff]  ;;  %v814_v30 = vld [vmem:[#allocation10 + $0x128] sm:$0xff]  ;;  %v627_v38 = vld [vmem:[#allocation8 + $0x138] sm:$0xff] }
  0x70   :  { %4191 = vmatprep.subr.bf16.mxu1 %v6306_v51  ;;  %306 = vmatprep.mubr.f32.mxu0 %v6304_v1  ;;  %v624_v37 = vld [vmem:[#allocation8 + $0x120] sm:$0xff]  ;;  %v630_v62 = vld [vmem:[#allocation8 + $0x150] sm:$0xff]  ;;  %v633_v63 = vld [vmem:[#allocation8 + $0x168] sm:$0xff] }
  0x71   :  { %307 = vmatmul.mubr.f32.gmra.mrb[10].mxu0 %v5254_v33  ;;  %407 = vmatprep.mubr.f32.mxu1 %v6304_v1  ;;  %v819_v2 = vld [vmem:[#allocation10 + $0x150] sm:$0xff]  ;;  %v822_v5 = vld [vmem:[#allocation10 + $0x168] sm:$0xff]  ;;  %v5382_v6 = vpack.c.bf16 %v633_v63, %v630_v62 }
  0x72   :  { %4135 = vmatpush1.bf16.msra.mxu0 %v4134_v32  ;;  %408 = vmatmul.mubr.f32.gmra.mrb[10].mxu1 %v5254_v33  ;;  %v792_v32 = vld [vmem:[#allocation10 + $0x78] sm:$0xff]  ;;  %v818_v62 = vld [vmem:[#allocation10 + $0x148] sm:$0xff] }
  0x73   :  { %4193 = vmatpush3.bf16.msra.mxu1 %v5257_v34  ;;  %4137 = vmatprep.subr.bf16.mxu0 %v4136_v35  ;;  %v607_v35 = vld [vmem:[#allocation8 + $0x98] sm:$0xff]  ;;  %v5318_v40 = vpack.c.bf16 %v792_v32, %v789_v31  ;;  %v817_v31 = vld [vmem:[#allocation10 + $0x140] sm:$0xff]  ;;  %v5355_v32 = vpack.c.bf16 %v621_v20, %v618_v19  ;;  %v782_v19 = vld [vmem:[#allocation10 + $0x28] sm:$0xff] }
  0x74   :  { %4194 = vmatprep.subr.bf16.mxu1 %v6306_v51  ;;  %478 = vmatprep.mubr.f32.mxu0 %v6304_v1  ;;  %v5320_v41 = vpack.c.bf16 %v610_v36, %v607_v35 }
  0x75   :  { %3660 = vmatprep.mubr.msk.f32.mxu1 %vm5080_vm0, %v6304_v1 }
  0x76   :  { %4139 = vmatpush1.bf16.msra.mxu0 %v4138_v42  ;;  %v606_v42 = vld [vmem:[#allocation8 + $0x90] sm:$0xff] }
  0x77   :  { %4196 = vmatpush3.bf16.msra.mxu1 %v5265_v43  ;;  %4141 = vmatprep.subr.bf16.mxu0 %v4140_v45  ;;  %v795_v45 = vld [vmem:[#allocation10 + $0x90] sm:$0xff] }
  0x78   :  { %4197 = vmatprep.subr.bf16.mxu1 %v6306_v51  ;;  %v5332_v55 = vpack.c.bf16 %v798_v48, %v795_v45  ;;  %v631_v45 = vld [vmem:[#allocation8 + $0x158] sm:$0xff]  ;;  %v634_v48 = vld [vmem:[#allocation8 + $0x170] sm:$0xff] }
  0x79   :  { %v5376_v61 = vpack.c.bf16 %v634_v48, %v631_v45  ;;  %v806_v45 = vld [vmem:[#allocation10 + $0xe8] sm:$0xff] }
  0x7a   :  { %4143 = vmatpush1.bf16.msra.mxu0 %v4142_v58  ;;  %v5334_v58 = vpack.c.bf16 %v616_v50, %v613_v49  ;;  %v820_v49 = vld [vmem:[#allocation10 + $0x158] sm:$0xff]  ;;  %v823_v50 = vld [vmem:[#allocation10 + $0x170] sm:$0xff] }
  0x7b   :  { %4199 = vmatpush3.bf16.msra.mxu1 %v5272_v59  ;;  %4145 = vmatprep.subr.bf16.mxu0 %v5274_v60 }
  0x7c   :  { %4201 = vmatprep.subr.bf16.mxu1 %v5277_v0 }
  0x7d   :  { %479 = vmatmul.mubr.f32.vlgmr.msra.gmra.mrb[12].mxu0 %v5192_v44  ;;  %v5307_v44 = vpack.c.bf16 %v793_v25, %v790_v22  ;;  %v810_v22 = vld [vmem:[#allocation10 + $0x108] sm:$0xff] }
  0x7e   :  { %4147 = vmatpush1.bf16.msra.mxu0 %v5279_v9  ;;  %3661 = vmatmul.mubr.f32.vlgmr.msra.gmra.mrb[12].mxu1 %v5284_v10  ;;  %v625_v25 = vld [vmem:[#allocation8 + $0x128] sm:$0xff]  ;;  %v5360_v35 = vpack.c.bf16 %v810_v22, %v807_v21  ;;  %v785_v22 = vld [vmem:[#allocation10 + $0x40] sm:$0xff] }
  0x7f   :  { %4203 = vmatpush1.bf16.msra.mxu1 %v5288_v11  ;;  %4149 = vmatprep.subr.bf16.mxu0 %v5290_v12  ;;  %v5362_v36 = vpack.c.bf16 %v628_v29, %v625_v25  ;;  %v5396_v21 = vld [vmem:[%s6292_s1 + $0x8] sm:$0xff]  ;;  %v788_v25 = vld [vmem:[#allocation10 + $0x58] sm:$0xff] }
  0x80   :  { %4205 = vmatprep.subr.bf16.mxu1 %v5293_v18  ;;  %484 = vmatprep.mubr.f32.mxu0 %v6304_v1  ;;  %v5403_v29 = vpack.c.bf16 %v788_v25, %v785_v22 }
  0x81   :  { %485 = vmatmul.mubr.f32.gmra.mrb[14].mxu0 %v5202_v56  ;;  %889 = vmatprep.mubr.f32.mxu1 %v6304_v1  ;;  %v609_v56 = vld [vmem:[#allocation8 + $0xa8] sm:$0xff] }
  0x82   :  { %4151 = vmatpush1.bf16.msra.mxu0 %v5298_v26  ;;  %490 = vmatprep.mubr.f32.mxu0 %v6304_v1  ;;  %v5327_v54 = vpack.c.bf16 %v609_v56, %v606_v42  ;;  %v813_v42 = vld [vmem:[#allocation10 + $0x120] sm:$0xff]  ;;  %v816_v56 = vld [vmem:[#allocation10 + $0x138] sm:$0xff] }
  0x83   :  { %4207 = vmatpush1.bf16.msra.mxu1 %v5302_v27  ;;  %4153 = vmatprep.subr.bf16.mxu0 %v5304_v28 }
  0x84   :  { %4209 = vmatprep.subr.bf16.mxu1 %v5307_v44 }
  0x85   :  { %491 = vmatmul.mubr.f32.gmra.mrb[16].mxu0 %v5215_v3  ;;  %v5337_v3 = vpack.c.bf16 %v805_v53, %v802_v52  ;;  %v5369_v52 = vpack.c.bf16 %v627_v38, %v624_v37  ;;  %v5374_v53 = vpack.c.bf16 %v816_v56, %v813_v42  ;;  %v797_v38 = vld [vmem:[#allocation10 + $0xa0] sm:$0xff]  ;;  %v800_v42 = vld [vmem:[#allocation10 + $0xb8] sm:$0xff]  ;;  %v803_v56 = vld [vmem:[#allocation10 + $0xd0] sm:$0xff] }
  0x86   :  { %4155 = vmatpush1.bf16.msra.mxu0 %v5313_v39  ;;  %496 = vmatprep.mubr.f32.mxu0 %v6304_v1  ;;  %v5425_v48 = vpack.c.bf16 %v806_v45, %v803_v56 }
  0x87   :  { %4211 = vmatpush1.bf16.msra.mxu1 %v5318_v40  ;;  %4157 = vmatprep.subr.bf16.mxu0 %v5320_v41 }
  0x88   :  { %4213 = vmatprep.subr.bf16.mxu1 %v5323_v47 }
  0x89   :  { %497 = vmatmul.mubr.f32.gmra.mrb[18].mxu0 %v5228_v13  ;;  %v5351_v13 = vpack.c.bf16 %v811_v8, %v808_v7  ;;  %v5386_v7 = vpack.c.bf16 %v822_v5, %v819_v2  ;;  %v779_v8 = vld [vmem:[#allocation10 + $0x10] sm:$0xff]  ;;  %v824_v2 = vld [vmem:[#allocation10 + $0x178] sm:$0xff] }
  0x8a   :  { %4159 = vmatpush1.bf16.msra.mxu0 %v5327_v54  ;;  %502 = vmatprep.mubr.f32.mxu0 %v6304_v1  ;;  %v5390_v20 = vpack.c.bf16 %v782_v19, %v779_v8 }
  0x8b   :  { %4215 = vmatpush1.bf16.msra.mxu1 %v5332_v55  ;;  %4161 = vmatprep.subr.bf16.mxu0 %v5334_v58 }
  0x8c   :  { %4217 = vmatprep.subr.bf16.mxu1 %v5337_v3 }
  0x8d   :  { %503 = vmatmul.mubr.f32.gmra.mrb[20].mxu0 %v5241_v23  ;;  %v5365_v23 = vpack.c.bf16 %v817_v31, %v814_v30  ;;  %v791_v30 = vld [vmem:[#allocation10 + $0x70] sm:$0xff]  ;;  %v794_v31 = vld [vmem:[#allocation10 + $0x88] sm:$0xff] }
  0x8e   :  { %4163 = vmatpush1.bf16.msra.mxu0 %v5341_v15  ;;  %508 = vmatprep.mubr.f32.mxu0 %v6304_v1  ;;  %v5413_v37 = vpack.c.bf16 %v794_v31, %v791_v30 }
  0x8f   :  { %4219 = vmatpush1.bf16.msra.mxu1 %v5346_v16  ;;  %4165 = vmatprep.subr.bf16.mxu0 %v5348_v17 }
  0x90   :  { %4221 = vmatprep.subr.bf16.mxu1 %v5351_v13 }
  0x91   :  { %509 = vmatmul.mubr.f32.gmra.mrb[22].mxu0 %v5254_v33  ;;  %v5379_v33 = vpack.c.bf16 %v823_v50, %v820_v49  ;;  %v812_v49 = vld [vmem:[#allocation10 + $0x118] sm:$0xff] }
  0x92   :  { %4167 = vmatpush1.bf16.msra.mxu0 %v5355_v32  ;;  %700 = vmatprep.mubr.f32.mxu0 %v6304_v1 }
  0x93   :  { %4223 = vmatpush1.bf16.msra.mxu1 %v5360_v35  ;;  %4169 = vmatprep.subr.bf16.mxu0 %v5362_v36 }
  0x94   :  { %4225 = vmatprep.subr.bf16.mxu1 %v5365_v23 }
  0x96   :  { %4171 = vmatpush1.bf16.msra.mxu0 %v5369_v52 }
  0x97   :  { %4227 = vmatpush1.bf16.msra.mxu1 %v5374_v53  ;;  %4173 = vmatprep.subr.bf16.mxu0 %v5376_v61 }
  0x98   :  { %4229 = vmatprep.subr.bf16.mxu1 %v5379_v33 }
  0x9a   :  { %4175 = vmatpush1.bf16.msra.mxu0 %v5382_v6 }
  0x9b   :  { %4231 = vmatpush1.bf16.msra.mxu1 %v5386_v7  ;;  %4232 = vmatprep.subr.bf16.mxu0 %v6306_v51 }
  0x9c   :  { %4288 = vmatprep.subr.bf16.mxu1 %v6306_v51 }
  0x9d   :  { %701 = vmatmul.mubr.f32.vlgmr.msra.gmra.mrb[0].mxu0 %v5284_v10 }
  0x9e   :  { %890 = vmatmul.mubr.f32.vlgmr.msra.gmra.mrb[14].mxu1 %v5396_v21  ;;  %4234 = vmatpush3.bf16.msra.mxu0 %v5390_v20 }
  0x9f   :  { %4235 = vmatprep.subr.bf16.mxu0 %v6306_v51  ;;  %3695 = vmatprep.mubr.msk.f32.mxu0 %vm5080_vm0, %v6304_v1 }
  0xa0   :  { %4290 = vmatpush3.bf16.msra.mxu1 %v5194_v46  ;;  %3730 = vmatprep.mubr.msk.f32.mxu1 %vm5080_vm0, %v6304_v1  ;;  %v5419_v46 = vpack.c.bf16 %v800_v42, %v797_v38 }
  0xa1   :  { %4291 = vmatprep.subr.bf16.mxu1 %v6306_v51 }
  0xa2   :  { %4237 = vmatpush3.bf16.msra.mxu0 %v5403_v29 }
  0xa3   :  { %4238 = vmatprep.subr.bf16.mxu0 %v6306_v51 }
  0xa4   :  { %4293 = vmatpush3.bf16.msra.mxu1 %v5205_v57  ;;  %v809_v57 = vld [vmem:[#allocation10 + $0x100] sm:$0xff] }
  0xa5   :  { %4294 = vmatprep.subr.bf16.mxu1 %v6306_v51  ;;  %v5431_v50 = vpack.c.bf16 %v812_v49, %v809_v57 }
  0xa6   :  { %4240 = vmatpush3.bf16.msra.mxu0 %v5413_v37 }
  0xa7   :  { %4241 = vmatprep.subr.bf16.mxu0 %v6306_v51 }
  0xa8   :  { %4296 = vmatpush3.bf16.msra.mxu1 %v5218_v4  ;;  %v815_v4 = vld [vmem:[#allocation10 + $0x130] sm:$0xff] }
  0xa9   :  { %4297 = vmatprep.subr.bf16.mxu1 %v6306_v51  ;;  %v5437_v63 = vpack.c.bf16 %v818_v62, %v815_v4 }
  0xaa   :  { %4243 = vmatpush3.bf16.msra.mxu0 %v5419_v46 }
  0xab   :  { %4244 = vmatprep.subr.bf16.mxu0 %v6306_v51 }
  0xac   :  { %4299 = vmatpush3.bf16.msra.mxu1 %v5231_v14  ;;  %v821_v14 = vld [vmem:[#allocation10 + $0x160] sm:$0xff] }
  0xad   :  { %4300 = vmatprep.subr.bf16.mxu1 %v6306_v51  ;;  %v5443_v5 = vpack.c.bf16 %v824_v2, %v821_v14 }
  0xae   :  { %4246 = vmatpush3.bf16.msra.mxu0 %v5425_v48 }
  0xaf   :  { %4247 = vmatprep.subr.bf16.mxu0 %v6306_v51 }
  0xb0   :  { %4302 = vmatpush3.bf16.msra.mxu1 %v5244_v24  ;;  %v6303_v24 = vlaneseq }
  0xb1   :  { %4303 = vmatprep.subr.bf16.mxu1 %v6306_v51 }
  0xb2   :  { %4249 = vmatpush3.bf16.msra.mxu0 %v5431_v50 }
  0xb3   :  { %4250 = vmatprep.subr.bf16.mxu0 %v6306_v51 }
  0xb4   :  { %4305 = vmatpush3.bf16.msra.mxu1 %v5257_v34  ;;  %v5471_v34 = vshrl.u32 %v6303_v24, 7 }
  0xb5   :  { %4306 = vmatprep.subr.bf16.mxu1 %v6306_v51 }
  0xb6   :  { %4252 = vmatpush3.bf16.msra.mxu0 %v5437_v63  ;;  %6319 = vst [vmem:[#allocation13_spill] sm:$0xff] %v5471_v34  ;;  %v200_v56 = vsub.s32 4, %v5471_v34  ;;  %v204_v45 = vsub.s32 5, %v5471_v34  ;;  %v184_v24 = vsub.s32 0, %v5471_v34 }
  0xb7   :  { %4253 = vmatprep.subr.bf16.mxu0 %v6306_v51 }
  0xb8   :  { %4308 = vmatpush3.bf16.msra.mxu1 %v5265_v43  ;;  %v196_v43 = vsub.s32 3, %v5471_v34 }
  0xb9   :  { %4309 = vmatprep.subr.bf16.mxu1 %v6306_v51 }
  0xba   :  { %4255 = vmatpush3.bf16.msra.mxu0 %v5443_v5 }
  0xbb   :  { %4257 = vmatprep.subr.bf16.mxu0 %v5274_v60 }
  0xbc   :  { %4311 = vmatpush3.bf16.msra.mxu1 %v5272_v59  ;;  %v180_v59 = vld [vmem:[%s6296_s5] sm:$0x3f] }
  0xbd   :  { %3696 = vmatmul.mubr.f32.vlgmr.msra.gmra.mrb[24].mxu0 %v5396_v21  ;;  %4313 = vmatprep.subr.bf16.mxu1 %v5277_v0  ;;  %v197_v60 = vrot.slane %v180_v59, %v196_v43  ;;  %v192_v0 = vsub.s32 2, %v5471_v34  ;;  %v201_v57 = vrot.slane %v180_v59, %v200_v56  ;;  %v5509_v49 = vrot.slane %v180_v59, %v204_v45 }
  0xbe   :  { %4259 = vmatpush1.bf16.msra.mxu0 %v5279_v9  ;;  %1143 = vmatprep.mubr.f32.mxu0 %v6304_v1  ;;  %v5538_v1 = vrot.slane %v180_v59, %v184_v24 }
  0xbf   :  { %4261 = vmatprep.subr.bf16.mxu0 %v5290_v12 }
  0xc2   :  { %4263 = vmatpush1.bf16.msra.mxu0 %v5298_v26 }
  0xc3   :  { %4265 = vmatprep.subr.bf16.mxu0 %v5304_v28  ;;  %v5482_v28 = vrot.slane %v180_v59, %v192_v0 }
  0xc6   :  { %4267 = vmatpush1.bf16.msra.mxu0 %v5313_v39 }
  0xc7   :  { %4269 = vmatprep.subr.bf16.mxu0 %v5320_v41 }
  0xca   :  { %4271 = vmatpush1.bf16.msra.mxu0 %v5327_v54 }
  0xcb   :  { %4273 = vmatprep.subr.bf16.mxu0 %v5334_v58 }
  0xce   :  { %4275 = vmatpush1.bf16.msra.mxu0 %v5341_v15 }
  0xcf   :  { %4277 = vmatprep.subr.bf16.mxu0 %v5348_v17 }
  0xd2   :  { %4279 = vmatpush1.bf16.msra.mxu0 %v5355_v32 }
  0xd3   :  { %4281 = vmatprep.subr.bf16.mxu0 %v5362_v36 }
  0xd6   :  { %4283 = vmatpush1.bf16.msra.mxu0 %v5369_v52 }
  0xd7   :  { %4285 = vmatprep.subr.bf16.mxu0 %v5376_v61 }
  0xda   :  { %4287 = vmatpush1.bf16.msra.mxu0 %v5382_v6 }
  0xdb   :  { %4344 = vmatprep.subr.bf16.mxu0 %v6306_v51 }
 0x131   :  { %v5478_v9 = vpop.f32.mrb[0].mxu1 }
 0x132   :  { %v381_v12 = vpop.f32.mrb[1].mxu1 }
 0x133   :  { %v5480_v26 = vadd.f32 %v381_v12, %v197_v60 }
 0x135   :  { %6320 = vst [vmem:[#allocation14_spill] sm:$0xff] %v5480_v26  ;;  %v385_v39 = vpop.f32.mrb[2].mxu1 }
 0x136   :  { %v5485_v41 = vadd.f32 %v385_v39, %v5482_v28  ;;  %v387_v54 = vpop.f32.mrb[3].mxu1 }
 0x137   :  { %v5487_v58 = vadd.f32 %v387_v54, %v197_v60 }
 0x139   :  { %6321 = vst [vmem:[#allocation15_spill] sm:$0xff] %v5487_v58  ;;  %v391_v15 = vpop.f32.mrb[4].mxu1 }
 0x13a   :  { %v5490_v17 = vadd.f32 %v391_v15, %v5482_v28  ;;  %v393_v32 = vpop.f32.mrb[5].mxu1 }
 0x13b   :  { %v5492_v36 = vadd.f32 %v393_v32, %v197_v60 }
 0x13d   :  { %6322 = vst [vmem:[#allocation16_spill] sm:$0xff] %v5492_v36  ;;  %v397_v52 = vpop.f32.mrb[6].mxu1  ;;  %v1677_v36 = vld [vmem:[#allocation10 + $0x68] sm:$0xff] }
 0x13e   :  { %v5495_v61 = vadd.f32 %v397_v52, %v5482_v28  ;;  %v399_v6 = vpop.f32.mrb[7].mxu1 }
 0x13f   :  { %v5497_v8 = vadd.f32 %v399_v6, %v197_v60 }
 0x140   :  { %6323 = vst [vmem:[#allocation17_spill] sm:$0xff] %v5495_v61  ;;  %v1680_v61 = vld [vmem:[#allocation10 + $0x80] sm:$0xff] }
 0x141   :  { %v403_v19 = vpop.f32.mrb[8].mxu1 }
 0x142   :  { %v5500_v22 = vadd.f32 %v403_v19, %v5482_v28  ;;  %v405_v25 = vpop.f32.mrb[9].mxu1 }
 0x143   :  { %v5502_v30 = vadd.f32 %v405_v25, %v197_v60 }
 0x144   :  { %6324 = vst [vmem:[#allocation18_spill] sm:$0xff] %v5500_v22 }
 0x145   :  { %v409_v31 = vpop.f32.mrb[10].mxu1 }
 0x146   :  { %v5505_v38 = vadd.f32 %v409_v31, %v5482_v28  ;;  %v411_v42 = vpop.f32.mrb[11].mxu1 }
 0x148   :  { %6325 = vst [vmem:[#allocation19_spill] sm:$0xff] %v5505_v38 }
 0x150   :  { %v480_v4 = vpop.f32.mrb[12].mxu0 }
 0x151   :  { %v5511_v62 = vadd.f32 %v480_v4, %v201_v57  ;;  %v482_v14 = vpop.f32.mrb[13].mxu0  ;;  %v773_v2 = vpop.f32.mrb[12].mxu1 }
 0x152   :  { %v5514_v43 = vadd.f32 %v482_v14, %v5509_v49  ;;  %v3662_v0 = vpop.f32.mrb[13].mxu1 }
 0x153   :  { %6326 = vst [vmem:[#allocation20_spill] sm:$0xff] %v5511_v62 }
 0x154   :  { %6327 = vst [vmem:[#allocation21_spill] sm:$0xff] %v5514_v43  ;;  %v486_v12 = vpop.f32.mrb[14].mxu0 }
 0x155   :  { %v5516_v39 = vadd.f32 %v486_v12, %v201_v57  ;;  %v488_v54 = vpop.f32.mrb[15].mxu0 }
 0x156   :  { %v5519_v15 = vadd.f32 %v488_v54, %v5509_v49 }
 0x157   :  { %6328 = vst [vmem:[#allocation22_spill] sm:$0xff] %v5516_v39 }
 0x158   :  { %6329 = vst [vmem:[#allocation23_spill] sm:$0xff] %v5519_v15  ;;  %v492_v32 = vpop.f32.mrb[16].mxu0 }
 0x159   :  { %v5521_v52 = vadd.f32 %v492_v32, %v201_v57  ;;  %v494_v6 = vpop.f32.mrb[17].mxu0 }
 0x15a   :  { %v5524_v19 = vadd.f32 %v494_v6, %v5509_v49  ;;  %v188_v6 = vsub.s32 1, %v5471_v34  ;;  %v1674_v34 = vld [vmem:[#allocation10 + $0x50] sm:$0xff] }
 0x15b   :  { %6330 = vst [vmem:[#allocation24_spill] sm:$0xff] %v5521_v52 }
 0x15c   :  { %6331 = vst [vmem:[#allocation25_spill] sm:$0xff] %v5524_v19  ;;  %v498_v25 = vpop.f32.mrb[18].mxu0  ;;  %v5540_v43 = vrot.slane %v180_v59, %v188_v6  ;;  %v1675_v19 = vld [vmem:[#allocation10 + $0x58] sm:$0xff] }
 0x15d   :  { %v5526_v31 = vadd.f32 %v498_v25, %v201_v57  ;;  %v500_v56 = vpop.f32.mrb[19].mxu0  ;;  %v412_v25 = vadd.f32 %v411_v42, %v197_v60 }
 0x15e   :  { %v5529_v45 = vadd.f32 %v500_v56, %v5509_v49 }
 0x160   :  { %6332 = vst [vmem:[#allocation26_spill] sm:$0xff] %v5529_v45  ;;  %v504_v4 = vpop.f32.mrb[20].mxu0 }
 0x161   :  { %v5531_v14 = vadd.f32 %v504_v4, %v201_v57  ;;  %v506_v0 = vpop.f32.mrb[21].mxu0 }
 0x162   :  { %v5534_v12 = vadd.f32 %v506_v0, %v5509_v49 }
 0x164   :  { %v510_v54 = vpop.f32.mrb[22].mxu0 }
 0x165   :  { %v512_v32 = vpop.f32.mrb[23].mxu0  ;;  %v511_v56 = vadd.f32 %v510_v54, %v201_v57  ;;  %v5555_v54 = vld [vmem:[%s6297_s6 + $0x1] ss:$0 sm:$0xff] }
 0x166   :  { %6333 = vst [vmem:[#allocation27_spill] sm:$0xff] %v5555_v54 }
 0x170   :  { %v702_v51 = vpop.f32.mrb[0].mxu0 }
 0x171   :  { %v4816_v4 = vadd.f32 %v702_v51, %v5538_v1  ;;  %v891_v62 = vpop.f32.mrb[14].mxu1  ;;  %v704_v26 = vpop.f32.mrb[1].mxu0 }
 0x172   :  { %v988_v38 = vadd.f32 %v891_v62, %v412_v25  ;;  %v893_v0 = vpop.f32.mrb[15].mxu1  ;;  %v4817_v22 = vadd.f32 %v704_v26, %v5540_v43  ;;  %v5547_v62 = vld [vmem:[%s6297_s6] ss:$0 sm:$0xff] }
 0x173   :  { %v3383_v15 = vmul.f32 -1.442695, %v4816_v4  ;;  %v995_v39 = vadd.f32 %v893_v0, %v511_v56 }
 0x174   :  { %v3385_v58 = vmul.f32 -1.442695, %v988_v38  ;;  %v3384_v24 = vmul.f32 -1.442695, %v4817_v22 }
 0x175   :  { %4853 = vpow2.f32 %v3383_v15  ;;  %v3386_v60 = vmul.f32 -1.442695, %v995_v39  ;;  %v380_v39 = vadd.f32 %v5478_v9, %v5482_v28 }
 0x176   :  { %4855 = vpow2.f32 %v3385_v58  ;;  %v980_v58 = vadd.f32 %v5547_v62, %v773_v2  ;;  %v513_v2 = vadd.f32 %v512_v32, %v5509_v49 }
 0x177   :  { %4857 = vpow2.f32 %v3384_v24 }
 0x178   :  { %4859 = vpow2.f32 %v3386_v60 }
 0x17f   :  { %v4854_v42 = vpop.eup %4853 }
 0x180   :  { %v970_v59 = vadd.f32 1.0, %v4854_v42  ;;  %v4856_v6 = vpop.eup %4855 }
 0x181   :  { %v992_v51 = vadd.f32 1.0, %v4856_v6  ;;  %v4858_v57 = vpop.eup %4857 }
 0x182   :  { %4861 = vrcp.f32 %v970_v59  ;;  %v977_v38 = vadd.f32 1.0, %v4858_v57  ;;  %v4860_v26 = vpop.eup %4859 }
 0x183   :  { %4863 = vrcp.f32 %v992_v51  ;;  %v999_v56 = vadd.f32 1.0, %v4860_v26  ;;  %v5563_v26 = vld [vmem:[%s6298_s7] ss:$0 sm:$0xff] }
 0x184   :  { %4865 = vrcp.f32 %v977_v38 }
 0x18c   :  { %v4862_v22 = vpop.eup %4861 }
 0x18d   :  { %v981_v15 = vmul.f32 %v4862_v22, %v980_v58  ;;  %v4864_v60 = vpop.eup %4863 }
 0x18e   :  { %v4866_v28 = vpop.eup %4865 }
 0x18f   :  { %v982_v25 = vadd.f32 %v981_v15, %v380_v39  ;;  %v984_v59 = vsub.f32 1.0, %v4866_v28  ;;  %v986_v57 = vmul.f32 %v4866_v28, %v5284_v10  ;;  %v6334_v15 = vmov 0.0|0.0  }
 0x190   :  { %v962_v4 = vpop.f32.mrb[24].mxu0 }
 0x191   :  { %4867 = vtanh.f32 %v982_v25  ;;  %v1002_v0 = vadd.f32 %v5555_v54, %v962_v4  ;;  %v3697_v24 = vpop.f32.mrb[25].mxu0  ;;  %v5583_v25 = vld [vmem:[%s6298_s7 + $0x1] ss:$0 sm:$0xff] }
 0x192   :  { %4869 = vrcp.f32 %v999_v56  ;;  %v6335_v56 = vmov 0.0  }
 0x193   :  { %v1003_v42 = vmul.f32 %v4864_v60, %v1002_v0  ;;  %v1489_v0 = vld [vmem:[#allocation8 + $0x70] sm:$0xff]  ;;  %v1492_v60 = vld [vmem:[#allocation8 + $0x88] sm:$0xff] }
 0x195   :  { %v1004_v9 = vadd.f32 %v1003_v42, %v513_v2  ;;  %v5653_v2 = vpack.c.bf16 %v1492_v60, %v1489_v0  ;;  %v1494_v42 = vld [vmem:[#allocation8 + $0x98] sm:$0xff]  ;;  %v1511_v0 = vld [vmem:[#allocation8 + $0x120] sm:$0xff] }
 0x196   :  { %v1514_v60 = vld [vmem:[#allocation8 + $0x138] sm:$0xff] }
 0x197   :  { %4871 = vtanh.f32 %v1004_v9  ;;  %v1497_v9 = vld [vmem:[#allocation8 + $0xb0] sm:$0xff] }
 0x198   :  { %v5657_v28 = vpack.c.bf16 %v1497_v9, %v1494_v42  ;;  %v1513_v42 = vld [vmem:[#allocation8 + $0x130] sm:$0xff]  ;;  %v5690_v9 = vpack.c.bf16 %v1514_v60, %v1511_v0 }
 0x19b   :  { %v4868_v6 = vpop.eup %4867 }
 0x19c   :  { %v985_v51 = vmul.f32 %v4868_v6, %v984_v59  ;;  %v4870_v38 = vpop.eup %4869  ;;  %v1493_v59 = vld [vmem:[#allocation8 + $0x90] sm:$0xff]  ;;  %v1496_v6 = vld [vmem:[#allocation8 + $0xa8] sm:$0xff] }
 0x19d   :  { %v1006_v22 = vsub.f32 1.0, %v4870_v38  ;;  %v1008_v32 = vmul.f32 %v4870_v38, %v5396_v21  ;;  %v1498_v38 = vld [vmem:[#allocation8 + $0xb8] sm:$0xff] }
 0x19e   :  { %v5565_v58 = vadd.f32 %v986_v57, %v985_v51  ;;  %v1495_v51 = vld [vmem:[#allocation8 + $0xa0] sm:$0xff]  ;;  %v5660_v57 = vpack.c.bf16 %v1496_v6, %v1493_v59  ;;  %v1516_v59 = vld [vmem:[#allocation8 + $0x148] sm:$0xff] }
 0x19f   :  { %v5693_v6 = vpack.c.bf16 %v1516_v59, %v1513_v42 }
 0x1a0   :  { %1010 = vst [vmem:[%s6301_s10] sm:$0xff] %v5565_v58  ;;  %1144 = vmatmul.mubr.f32.vlgmr.msra.gmra.mrb[2].mxu0 %v5565_v58  ;;  %3731 = vmatmul.mubr.f32.vlgmr.msra.gmra.mrb[16].mxu1 %v5565_v58  ;;  %v1013_v10 = vmul.f32 %v5563_v26, %v5565_v58 }
 0x1a1   :  { %v4872_v49 = vpop.eup %4871  ;;  %4315 = vmatpush1.bf16.msra.mxu1 %v5288_v11  ;;  %4346 = vmatpush3.bf16.msra.mxu0 %v5390_v20  ;;  %v1483_v20 = vld [vmem:[#allocation8 + $0x40] sm:$0xff] }
 0x1a2   :  { %1014 = vadd.xlane.f32.xlu0 %v1013_v10  ;;  %4317 = vmatprep.subr.bf16.mxu1 %v5293_v18  ;;  %v1007_v39 = vmul.f32 %v4872_v49, %v1006_v22  ;;  %v1476_v18 = vld [vmem:[#allocation8 + $0x8] sm:$0xff]  ;;  %v5663_v22 = vpack.c.bf16 %v1498_v38, %v1495_v51  ;;  %v1503_v49 = vld [vmem:[#allocation8 + $0xe0] sm:$0xff]  ;;  %v1518_v51 = vld [vmem:[#allocation8 + $0x158] sm:$0xff] }
 0x1a3   :  { %4347 = vmatprep.subr.bf16.mxu0 %v6334_v15  ;;  %1332 = vmatprep.mubr.f32.mxu1 %v6335_v56  ;;  %v1500_v10 = vld [vmem:[#allocation8 + $0xc8] sm:$0xff]  ;;  %v1521_v38 = vld [vmem:[#allocation8 + $0x170] sm:$0xff] }
 0x1a4   :  { %v5586_v4 = vadd.f32 %v1008_v32, %v1007_v39  ;;  %3765 = vmatprep.mubr.msk.f32.mxu0 %vm5080_vm0, %v6335_v56  ;;  %v5667_v32 = vpack.c.bf16 %v1503_v49, %v1500_v10  ;;  %v1499_v39 = vld [vmem:[#allocation8 + $0xc0] sm:$0xff]  ;;  %v5697_v10 = vpack.c.bf16 %v1521_v38, %v1518_v51  ;;  %v1517_v49 = vld [vmem:[#allocation8 + $0x150] sm:$0xff] }
 0x1a5   :  { %4319 = vmatpush1.bf16.msra.mxu1 %v5302_v27  ;;  %4349 = vmatpush3.bf16.msra.mxu0 %v5403_v29  ;;  %v1479_v27 = vld [vmem:[#allocation8 + $0x20] sm:$0xff]  ;;  %v1486_v29 = vld [vmem:[#allocation8 + $0x58] sm:$0xff] }
 0x1a6   :  { %4321 = vmatprep.subr.bf16.mxu1 %v5307_v44  ;;  %4350 = vmatprep.subr.bf16.mxu0 %v6334_v15  ;;  %v1018_v11 = vmul.f32 %v5583_v25, %v5586_v4  ;;  %3387 = vst [vmem:[%s6301_s10 + $0x58] sm:$0xff] %v5586_v4  ;;  %v5628_v44 = vpack.c.bf16 %v1479_v27, %v1476_v18  ;;  %v1501_v18 = vld [vmem:[#allocation8 + $0xd0] sm:$0xff] }
 0x1a8   :  { %1019 = vadd.xlane.f32.xlu0 %v1018_v11  ;;  %v1502_v11 = vld [vmem:[#allocation8 + $0xd8] sm:$0xff] }
 0x1a9   :  { %4323 = vmatpush1.bf16.msra.mxu1 %v5318_v40  ;;  %4352 = vmatpush3.bf16.msra.mxu0 %v5413_v37  ;;  %v1475_v40 = vld [vmem:[#allocation8] sm:$0xff]  ;;  %v5643_v37 = vpack.c.bf16 %v1486_v29, %v1483_v20  ;;  %v5670_v27 = vpack.c.bf16 %v1502_v11, %v1499_v39  ;;  %v1510_v29 = vld [vmem:[#allocation8 + $0x118] sm:$0xff]  ;;  %v1520_v39 = vld [vmem:[#allocation8 + $0x168] sm:$0xff] }
 0x1aa   :  { %4325 = vmatprep.subr.bf16.mxu1 %v5323_v47  ;;  %4353 = vmatprep.subr.bf16.mxu0 %v6334_v15  ;;  %v1478_v47 = vld [vmem:[#allocation8 + $0x18] sm:$0xff]  ;;  %v1519_v11 = vld [vmem:[#allocation8 + $0x160] sm:$0xff] }
 0x1ad   :  { %4327 = vmatpush1.bf16.msra.mxu1 %v5332_v55  ;;  %4355 = vmatpush3.bf16.msra.mxu0 %v5419_v46  ;;  %v1477_v55 = vld [vmem:[#allocation8 + $0x10] sm:$0xff]  ;;  %v1488_v46 = vld [vmem:[#allocation8 + $0x68] sm:$0xff] }
 0x1ae   :  { %4329 = vmatprep.subr.bf16.mxu1 %v5337_v3  ;;  %4356 = vmatprep.subr.bf16.mxu0 %v6334_v15  ;;  %v5630_v3 = vpack.c.bf16 %v1478_v47, %v1475_v40  ;;  %v1504_v40 = vld [vmem:[#allocation8 + $0xe8] sm:$0xff] }
 0x1af   :  { %v5673_v47 = vpack.c.bf16 %v1504_v40, %v1501_v18  ;;  %v5700_v18 = vpack.c.bf16 %v1520_v39, %v1517_v49  ;;  %v1522_v40 = vld [vmem:[#allocation8 + $0x178] sm:$0xff] }
 0x1b1   :  { %4331 = vmatpush1.bf16.msra.mxu1 %v5346_v16  ;;  %4358 = vmatpush3.bf16.msra.mxu0 %v5425_v48  ;;  %v1480_v16 = vld [vmem:[#allocation8 + $0x28] sm:$0xff]  ;;  %v1491_v48 = vld [vmem:[#allocation8 + $0x80] sm:$0xff] }
 0x1b2   :  { %4333 = vmatprep.subr.bf16.mxu1 %v5351_v13  ;;  %4359 = vmatprep.subr.bf16.mxu0 %v6334_v15  ;;  %v5633_v13 = vpack.c.bf16 %v1480_v16, %v1477_v55  ;;  %v1506_v55 = vld [vmem:[#allocation8 + $0xf8] sm:$0xff]  ;;  %v1509_v16 = vld [vmem:[#allocation8 + $0x110] sm:$0xff] }
 0x1b5   :  { %4335 = vmatpush1.bf16.msra.mxu1 %v5360_v35  ;;  %4361 = vmatpush3.bf16.msra.mxu0 %v5431_v50  ;;  %v1482_v35 = vld [vmem:[#allocation8 + $0x38] sm:$0xff]  ;;  %v5647_v50 = vpack.c.bf16 %v1491_v48, %v1488_v46  ;;  %v1512_v48 = vld [vmem:[#allocation8 + $0x128] sm:$0xff] }
 0x1b6   :  { %4337 = vmatprep.subr.bf16.mxu1 %v5365_v23  ;;  %4362 = vmatprep.subr.bf16.mxu0 %v6334_v15  ;;  %v1485_v23 = vld [vmem:[#allocation8 + $0x50] sm:$0xff] }
 0x1b9   :  { %4339 = vmatpush1.bf16.msra.mxu1 %v5374_v53  ;;  %4364 = vmatpush3.bf16.msra.mxu0 %v5437_v63  ;;  %v5637_v53 = vpack.c.bf16 %v1485_v23, %v1482_v35  ;;  %v1487_v63 = vld [vmem:[#allocation8 + $0x60] sm:$0xff]  ;;  %v5677_v35 = vpack.c.bf16 %v1509_v16, %v1506_v55  ;;  %v1505_v23 = vld [vmem:[#allocation8 + $0xf0] sm:$0xff]  ;;  %v5703_v55 = vpack.c.bf16 %v1522_v40, %v1519_v11  ;;  %v1665_v16 = vld [vmem:[#allocation10 + $0x8] sm:$0xff] }
 0x1ba   :  { %4341 = vmatprep.subr.bf16.mxu1 %v5379_v33  ;;  %4365 = vmatprep.subr.bf16.mxu0 %v6334_v15  ;;  %v1481_v33 = vld [vmem:[#allocation8 + $0x30] sm:$0xff] }
 0x1bd   :  { %4343 = vmatpush1.bf16.msra.mxu1 %v5386_v7  ;;  %4367 = vmatpush3.bf16.msra.mxu0 %v5443_v5  ;;  %v1484_v7 = vld [vmem:[#allocation8 + $0x48] sm:$0xff]  ;;  %v1490_v5 = vld [vmem:[#allocation8 + $0x78] sm:$0xff] }
 0x1be   :  { %4400 = vmatprep.subr.bf16.mxu1 %v6334_v15  ;;  %4369 = vmatprep.subr.bf16.mxu0 %v5628_v44  ;;  %v5640_v21 = vpack.c.bf16 %v1484_v7, %v1481_v33  ;;  %v5650_v24 = vpack.c.bf16 %v1490_v5, %v1487_v63  ;;  %v1508_v33 = vld [vmem:[#allocation8 + $0x108] sm:$0xff]  ;;  %v1507_v7 = vld [vmem:[#allocation8 + $0x100] sm:$0xff] }
 0x1bf   :  { %v5680_v20 = vpack.c.bf16 %v1508_v33, %v1505_v23  ;;  %v5683_v46 = vpack.c.bf16 %v1510_v29, %v1507_v7  ;;  %v1515_v63 = vld [vmem:[#allocation8 + $0x140] sm:$0xff] }
 0x1c0   :  { %1333 = vmatmul.mubr.f32.vlgmr.msra.gmra.mrb[18].mxu1 %v5586_v4  ;;  %3766 = vmatmul.mubr.f32.vlgmr.msra.gmra.mrb[26].mxu0 %v5586_v4  ;;  %v5687_v5 = vpack.c.bf16 %v1515_v63, %v1512_v48  ;;  %v1668_v23 = vld [vmem:[#allocation10 + $0x20] sm:$0xff] }
 0x1c1   :  { %1587 = vmatprep.mubr.f32.mxu0 %v6335_v56  ;;  %3800 = vmatprep.mubr.msk.f32.mxu1 %vm5080_vm0, %v6335_v56  ;;  %v5707_v33 = vpack.c.bf16 %v1668_v23, %v1665_v16 }
 0x1c2   :  { %4371 = vmatpush1.bf16.msra.mxu0 %v5630_v3  ;;  %4402 = vmatpush3.bf16.msra.mxu1 %v5633_v13 }
 0x1c3   :  { %4403 = vmatprep.subr.bf16.mxu1 %v6334_v15  ;;  %4373 = vmatprep.subr.bf16.mxu0 %v5637_v53 }
 0x1c6   :  { %4375 = vmatpush1.bf16.msra.mxu0 %v5640_v21  ;;  %4405 = vmatpush3.bf16.msra.mxu1 %v5643_v37 }
 0x1c7   :  { %4406 = vmatprep.subr.bf16.mxu1 %v6334_v15  ;;  %4377 = vmatprep.subr.bf16.mxu0 %v5647_v50 }
 0x1ca   :  { %4379 = vmatpush1.bf16.msra.mxu0 %v5650_v24  ;;  %4408 = vmatpush3.bf16.msra.mxu1 %v5653_v2 }
 0x1cb   :  { %4409 = vmatprep.subr.bf16.mxu1 %v6334_v15  ;;  %4381 = vmatprep.subr.bf16.mxu0 %v5657_v28 }
 0x1ce   :  { %4383 = vmatpush1.bf16.msra.mxu0 %v5660_v57  ;;  %4411 = vmatpush3.bf16.msra.mxu1 %v5663_v22 }
 0x1cf   :  { %4412 = vmatprep.subr.bf16.mxu1 %v6334_v15  ;;  %4385 = vmatprep.subr.bf16.mxu0 %v5667_v32 }
 0x1d2   :  { %4387 = vmatpush1.bf16.msra.mxu0 %v5670_v27  ;;  %4414 = vmatpush3.bf16.msra.mxu1 %v5673_v47 }
 0x1d3   :  { %4415 = vmatprep.subr.bf16.mxu1 %v6334_v15  ;;  %4389 = vmatprep.subr.bf16.mxu0 %v5677_v35 }
 0x1d6   :  { %4391 = vmatpush1.bf16.msra.mxu0 %v5680_v20  ;;  %4417 = vmatpush3.bf16.msra.mxu1 %v5683_v46 }
 0x1d7   :  { %4418 = vmatprep.subr.bf16.mxu1 %v6334_v15  ;;  %4393 = vmatprep.subr.bf16.mxu0 %v5687_v5 }
 0x1da   :  { %4395 = vmatpush1.bf16.msra.mxu0 %v5690_v9  ;;  %4420 = vmatpush3.bf16.msra.mxu1 %v5693_v6 }
 0x1db   :  { %4421 = vmatprep.subr.bf16.mxu1 %v6334_v15  ;;  %4397 = vmatprep.subr.bf16.mxu0 %v5697_v10 }
 0x1de   :  { %4399 = vmatpush1.bf16.msra.mxu0 %v5700_v18  ;;  %4423 = vmatpush3.bf16.msra.mxu1 %v5703_v55 }
 0x1df   :  { %4456 = vmatprep.subr.bf16.mxu0 %v6334_v15  ;;  %4425 = vmatprep.subr.bf16.mxu1 %v5707_v33 }
 0x22f   :  { %v1015_v7 = vpop.xlane.xlu0 %1014 }
 0x230   :  { %1017 = vst.msk [vmem:[#allocation3] sm:$0xff] %vm1016_vm1, %v1015_v7 }
 0x235   :  { %v1020_v29 = vpop.xlane.xlu0 %1019 }
 0x236   :  { %1022 = vst.msk [vmem:[#allocation4 + $0x28] sm:$0xff] %vm1016_vm1, %v1020_v29 }
 0x273   :  { %v1145_v48 = vpop.f32.mrb[2].mxu0  ;;  %v1216_v63 = vpop.f32.mrb[16].mxu1 }
 0x274   :  { %v4818_v0 = vadd.f32 %v1145_v48, %v5538_v1  ;;  %v1147_v60 = vpop.f32.mrb[3].mxu0  ;;  %v3732_v42 = vpop.f32.mrb[17].mxu1  ;;  %v1423_v16 = vadd.f32 %v5547_v62, %v1216_v63  ;;  %v1664_v63 = vld [vmem:[#allocation10] sm:$0xff] }
 0x275   :  { %v4819_v51 = vadd.f32 %v1147_v60, %v5540_v43 }
 0x276   :  { %v3388_v59 = vmul.f32 -1.442695, %v4818_v0 }
 0x277   :  { %v3389_v38 = vmul.f32 -1.442695, %v4819_v51 }
 0x278   :  { %4873 = vpow2.f32 %v3388_v59 }
 0x279   :  { %4875 = vpow2.f32 %v3389_v38 }
 0x282   :  { %v4874_v49 = vpop.eup %4873 }
 0x283   :  { %v1413_v39 = vadd.f32 1.0, %v4874_v49  ;;  %v4876_v11 = vpop.eup %4875 }
 0x284   :  { %v1420_v40 = vadd.f32 1.0, %v4876_v11 }
 0x285   :  { %4877 = vrcp.f32 %v1413_v39 }
 0x286   :  { %4879 = vrcp.f32 %v1420_v40  ;;  %v1666_v40 = vld [vmem:[#allocation10 + $0x10] sm:$0xff] }
 0x28f   :  { %v4878_v23 = vpop.eup %4877 }
 0x290   :  { %v1424_v7 = vmul.f32 %v4878_v23, %v1423_v16  ;;  %v4880_v49 = vpop.eup %4879  ;;  %v1667_v16 = vld [vmem:[#allocation10 + $0x18] sm:$0xff]  ;;  %v1669_v23 = vld [vmem:[#allocation10 + $0x28] sm:$0xff] }
 0x291   :  { %v1427_v11 = vsub.f32 1.0, %v4880_v49 }
 0x292   :  { %v1425_v29 = vadd.f32 %v1424_v7, %v5485_v41  ;;  %v1671_v7 = vld [vmem:[#allocation10 + $0x38] sm:$0xff] }
 0x293   :  { %v1334_v48 = vpop.f32.mrb[18].mxu1  ;;  %v5717_v42 = vpop.f32.mrb[26].mxu0 }
 0x294   :  { %4881 = vtanh.f32 %v1425_v29  ;;  %v1431_v0 = vadd.f32 %v1334_v48, %v5502_v30  ;;  %v1336_v60 = vpop.f32.mrb[19].mxu1  ;;  %v3767_v59 = vpop.f32.mrb[27].mxu0  ;;  %v1429_v30 = vmul.f32 %v4880_v49, %v5565_v58  ;;  %v5722_v48 = vpack.c.bf16 %v1667_v16, %v1664_v63  ;;  %v1679_v63 = vld [vmem:[#allocation10 + $0x78] sm:$0xff]  ;;  %v1681_v16 = vld [vmem:[#allocation10 + $0x88] sm:$0xff] }
 0x295   :  { %v1438_v51 = vadd.f32 %v1336_v60, %v5531_v14  ;;  %v5724_v59 = vpack.c.bf16 %v1669_v23, %v1666_v40  ;;  %v1670_v14 = vld [vmem:[#allocation10 + $0x30] sm:$0xff]  ;;  %v5728_v60 = vpack.c.bf16 %v1674_v34, %v1671_v7  ;;  %v1683_v40 = vld [vmem:[#allocation10 + $0x98] sm:$0xff]  ;;  %v1685_v7 = vld [vmem:[#allocation10 + $0xa8] sm:$0xff] }
 0x296   :  { %v3390_v38 = vmul.f32 -1.442695, %v1431_v0  ;;  %v1686_v23 = vld [vmem:[#allocation10 + $0xb0] sm:$0xff] }
 0x297   :  { %v3391_v39 = vmul.f32 -1.442695, %v1438_v51  ;;  %v1673_v51 = vld [vmem:[#allocation10 + $0x48] sm:$0xff] }
 0x298   :  { %4883 = vpow2.f32 %v3390_v38  ;;  %v1672_v38 = vld [vmem:[#allocation10 + $0x40] sm:$0xff]  ;;  %v5740_v58 = vpack.c.bf16 %v1673_v51, %v1670_v14  ;;  %v1689_v14 = vld [vmem:[#allocation10 + $0xc8] sm:$0xff] }
 0x299   :  { %4885 = vpow2.f32 %v3391_v39  ;;  %v5742_v49 = vpack.c.bf16 %v1675_v19, %v1672_v38  ;;  %v5745_v39 = vpack.c.bf16 %v1680_v61, %v1677_v36  ;;  %v1682_v61 = vld [vmem:[#allocation10 + $0x90] sm:$0xff]  ;;  %v1692_v51 = vld [vmem:[#allocation10 + $0xe0] sm:$0xff] }
 0x29b   :  { %6336 = vst [vmem:[#allocation28_spill] sm:$0xff] %v5745_v39 }
 0x29e   :  { %v4882_v41 = vpop.eup %4881 }
 0x29f   :  { %v1428_v29 = vmul.f32 %v4882_v41, %v1427_v11  ;;  %v1678_v11 = vld [vmem:[#allocation10 + $0x70] sm:$0xff]  ;;  %v5759_v41 = vpack.c.bf16 %v1686_v23, %v1683_v40  ;;  %v1693_v23 = vld [vmem:[#allocation10 + $0xe8] sm:$0xff] }
 0x2a0   :  { %v5755_v36 = vpack.c.bf16 %v1681_v16, %v1678_v11  ;;  %v5769_v11 = vpack.c.bf16 %v1692_v51, %v1689_v14  ;;  %v1691_v16 = vld [vmem:[#allocation10 + $0xd8] sm:$0xff]  ;;  %v1690_v40 = vld [vmem:[#allocation10 + $0xd0] sm:$0xff]  ;;  %v1696_v51 = vld [vmem:[#allocation10 + $0x100] sm:$0xff] }
 0x2a1   :  { %v5726_v0 = vadd.f32 %v1429_v30, %v1428_v29  ;;  %v1684_v29 = vld [vmem:[#allocation10 + $0xa0] sm:$0xff]  ;;  %v1687_v30 = vld [vmem:[#allocation10 + $0xb8] sm:$0xff] }
 0x2a2   :  { %v4884_v52 = vpop.eup %4883  ;;  %6338 = vst [vmem:[#allocation30_spill] sm:$0xff] %v5755_v36 }
 0x2a3   :  { %v1435_v45 = vadd.f32 1.0, %v4884_v52  ;;  %3392 = vst [vmem:[%s6301_s10 + $0x10] sm:$0xff] %v5726_v0  ;;  %1588 = vmatmul.mubr.f32.vlgmr.msra.gmra.mrb[4].mxu0 %v5726_v0  ;;  %3801 = vmatmul.mubr.f32.vlgmr.msra.gmra.mrb[20].mxu1 %v5726_v0  ;;  %v1457_v34 = vmul.f32 %v5563_v26, %v5726_v0  ;;  %v1676_v52 = vld [vmem:[#allocation10 + $0x60] sm:$0xff] }
 0x2a4   :  { %4427 = vmatpush1.bf16.msra.mxu1 %v5722_v48  ;;  %4458 = vmatpush3.bf16.msra.mxu0 %v5724_v59  ;;  %v5753_v19 = vpack.c.bf16 %v1679_v63, %v1676_v52  ;;  %v5765_v52 = vpack.c.bf16 %v1687_v30, %v1684_v29  ;;  %v1688_v63 = vld [vmem:[#allocation10 + $0xc0] sm:$0xff]  ;;  %v5777_v29 = vpack.c.bf16 %v1693_v23, %v1690_v40  ;;  %v1694_v30 = vld [vmem:[#allocation10 + $0xf0] sm:$0xff]  ;;  %v1705_v23 = vld [vmem:[#allocation10 + $0x148] sm:$0xff] }
 0x2a5   :  { %4887 = vrcp.f32 %v1435_v45  ;;  %1458 = vadd.xlane.f32.xlu0 %v1457_v34  ;;  %4429 = vmatprep.subr.bf16.mxu1 %v5728_v60  ;;  %v4886_v45 = vpop.eup %4885  ;;  %v5763_v34 = vpack.c.bf16 %v1685_v7, %v1682_v61  ;;  %v5775_v7 = vpack.c.bf16 %v1691_v16, %v1688_v63  ;;  %v1700_v40 = vld [vmem:[#allocation10 + $0x120] sm:$0xff] }
 0x2a6   :  { %4459 = vmatprep.subr.bf16.mxu0 %v6334_v15  ;;  %1776 = vmatprep.mubr.f32.mxu1 %v6335_v56  ;;  %6337 = vst [vmem:[#allocation29_spill] sm:$0xff] %v5753_v19  ;;  %v1442_v38 = vadd.f32 1.0, %v4886_v45  ;;  %v1445_v45 = vadd.f32 %v5555_v54, %v5717_v42  ;;  %6339 = vst [vmem:[#allocation31_spill] sm:$0xff] %v5777_v29  ;;  %v1697_v42 = vld [vmem:[#allocation10 + $0x108] sm:$0xff]  ;;  %v1699_v54 = vld [vmem:[#allocation10 + $0x118] sm:$0xff] }
 0x2a7   :  { %3835 = vmatprep.mubr.msk.f32.mxu0 %vm5080_vm0, %v6335_v56  ;;  %v5786_v63 = vpack.c.bf16 %v1697_v42, %v1694_v30  ;;  %v5788_v16 = vpack.c.bf16 %v1699_v54, %v1696_v51  ;;  %v1706_v42 = vld [vmem:[#allocation10 + $0x150] sm:$0xff] }
 0x2a8   :  { %4431 = vmatpush1.bf16.msra.mxu1 %v5740_v58  ;;  %4461 = vmatpush3.bf16.msra.mxu0 %v5742_v49  ;;  %4889 = vrcp.f32 %v1442_v38  ;;  %v1701_v38 = vld [vmem:[#allocation10 + $0x128] sm:$0xff] }
 0x2a9   :  { %4433 = vmatprep.subr.bf16.mxu1 %v5745_v39  ;;  %4462 = vmatprep.subr.bf16.mxu0 %v6334_v15  ;;  %v1698_v39 = vld [vmem:[#allocation10 + $0x110] sm:$0xff]  ;;  %6341 = vst [vmem:[#allocation33_spill] sm:$0xff] %v5788_v16 }
 0x2ac   :  { %4435 = vmatpush1.bf16.msra.mxu1 %v5753_v19  ;;  %4464 = vmatpush3.bf16.msra.mxu0 %v5755_v36  ;;  %v1695_v19 = vld [vmem:[#allocation10 + $0xf8] sm:$0xff] }
 0x2ad   :  { %4437 = vmatprep.subr.bf16.mxu1 %v5759_v41  ;;  %4465 = vmatprep.subr.bf16.mxu0 %v6334_v15  ;;  %v5781_v14 = vpack.c.bf16 %v1698_v39, %v1695_v19  ;;  %v1703_v19 = vld [vmem:[#allocation10 + $0x138] sm:$0xff] }
 0x2ae   :  { %v5796_v30 = vpack.c.bf16 %v1703_v19, %v1700_v40 }
 0x2af   :  { %v4888_v36 = vpop.eup %4887  ;;  %6340 = vst [vmem:[#allocation32_spill] sm:$0xff] %v5781_v14 }
 0x2b0   :  { %v1446_v61 = vmul.f32 %v4888_v36, %v1445_v45  ;;  %4439 = vmatpush1.bf16.msra.mxu1 %v5763_v34  ;;  %4467 = vmatpush3.bf16.msra.mxu0 %v5765_v52  ;;  %v1704_v45 = vld [vmem:[#allocation10 + $0x140] sm:$0xff] }
 0x2b1   :  { %4441 = vmatprep.subr.bf16.mxu1 %v5769_v11  ;;  %4468 = vmatprep.subr.bf16.mxu0 %v6334_v15  ;;  %v5792_v39 = vpack.c.bf16 %v1704_v45, %v1701_v38  ;;  %v1709_v38 = vld [vmem:[#allocation10 + $0x168] sm:$0xff]  ;;  %v1708_v45 = vld [vmem:[#allocation10 + $0x160] sm:$0xff] }
 0x2b2   :  { %v1447_v36 = vadd.f32 %v1446_v61, %v5534_v12  ;;  %v1702_v12 = vld [vmem:[#allocation10 + $0x130] sm:$0xff]  ;;  %v1707_v61 = vld [vmem:[#allocation10 + $0x158] sm:$0xff] }
 0x2b3   :  { %v5798_v54 = vpack.c.bf16 %v1705_v23, %v1702_v12 }
 0x2b4   :  { %4891 = vtanh.f32 %v1447_v36  ;;  %4443 = vmatpush1.bf16.msra.mxu1 %v5775_v7  ;;  %4470 = vmatpush3.bf16.msra.mxu0 %v5777_v29  ;;  %v1710_v36 = vld [vmem:[#allocation10 + $0x170] sm:$0xff]  ;;  %v4890_v29 = vpop.eup %4889 }
 0x2b5   :  { %4445 = vmatprep.subr.bf16.mxu1 %v5781_v14  ;;  %4471 = vmatprep.subr.bf16.mxu0 %v6334_v15  ;;  %v5802_v51 = vpack.c.bf16 %v1710_v36, %v1707_v61  ;;  %v1711_v14 = vld [vmem:[#allocation10 + $0x178] sm:$0xff]  ;;  %v1449_v19 = vsub.f32 1.0, %v4890_v29  ;;  %v1451_v61 = vmul.f32 %v4890_v29, %v5586_v4 }
 0x2b6   :  { %v5808_v40 = vpack.c.bf16 %v1711_v14, %v1708_v45 }
 0x2b8   :  { %4447 = vmatpush1.bf16.msra.mxu1 %v5786_v63  ;;  %4473 = vmatpush3.bf16.msra.mxu0 %v5788_v16  ;;  %v5806_v16 = vpack.c.bf16 %v1709_v38, %v1706_v42 }
 0x2b9   :  { %4449 = vmatprep.subr.bf16.mxu1 %v5792_v39  ;;  %4474 = vmatprep.subr.bf16.mxu0 %v6334_v15 }
 0x2bc   :  { %4451 = vmatpush1.bf16.msra.mxu1 %v5796_v30  ;;  %4476 = vmatpush3.bf16.msra.mxu0 %v5798_v54 }
 0x2bd   :  { %4453 = vmatprep.subr.bf16.mxu1 %v5802_v51  ;;  %4477 = vmatprep.subr.bf16.mxu0 %v6334_v15 }
 0x2be   :  { %v4892_v12 = vpop.eup %4891 }
 0x2bf   :  { %v1450_v23 = vmul.f32 %v4892_v12, %v1449_v19 }
 0x2c0   :  { %4455 = vmatpush1.bf16.msra.mxu1 %v5806_v16  ;;  %4479 = vmatpush3.bf16.msra.mxu0 %v5808_v40 }
 0x2c1   :  { %v5815_v36 = vadd.f32 %v1451_v61, %v1450_v23  ;;  %4481 = vmatprep.subr.bf16.mxu0 %v5628_v44  ;;  %4512 = vmatprep.subr.bf16.mxu1 %v6334_v15 }
 0x2c3   :  { %3393 = vst [vmem:[%s6301_s10 + $0x48] sm:$0xff] %v5815_v36  ;;  %1777 = vmatmul.mubr.f32.vlgmr.msra.gmra.mrb[22].mxu1 %v5815_v36  ;;  %3836 = vmatmul.mubr.f32.vlgmr.msra.gmra.mrb[28].mxu0 %v5815_v36  ;;  %v1462_v4 = vmul.f32 %v5583_v25, %v5815_v36 }
 0x2c4   :  { %4483 = vmatpush1.bf16.msra.mxu0 %v5630_v3  ;;  %4514 = vmatpush3.bf16.msra.mxu1 %v5633_v13 }
 0x2c5   :  { %1463 = vadd.xlane.f32.xlu0 %v1462_v4  ;;  %4485 = vmatprep.subr.bf16.mxu0 %v5637_v53 }
 0x2c6   :  { %4515 = vmatprep.subr.bf16.mxu1 %v6334_v15  ;;  %2029 = vmatprep.mubr.f32.mxu0 %v6335_v56 }
 0x2c7   :  { %3870 = vmatprep.mubr.msk.f32.mxu1 %vm5080_vm0, %v6335_v56 }
 0x2c8   :  { %4487 = vmatpush1.bf16.msra.mxu0 %v5640_v21  ;;  %4517 = vmatpush3.bf16.msra.mxu1 %v5643_v37 }
 0x2c9   :  { %4489 = vmatprep.subr.bf16.mxu0 %v5647_v50  ;;  %4518 = vmatprep.subr.bf16.mxu1 %v6334_v15 }
 0x2cc   :  { %4491 = vmatpush1.bf16.msra.mxu0 %v5650_v24  ;;  %4520 = vmatpush3.bf16.msra.mxu1 %v5653_v2 }
 0x2cd   :  { %4493 = vmatprep.subr.bf16.mxu0 %v5657_v28  ;;  %4521 = vmatprep.subr.bf16.mxu1 %v6334_v15 }
 0x2d0   :  { %4495 = vmatpush1.bf16.msra.mxu0 %v5660_v57  ;;  %4523 = vmatpush3.bf16.msra.mxu1 %v5663_v22 }
 0x2d1   :  { %4497 = vmatprep.subr.bf16.mxu0 %v5667_v32  ;;  %4524 = vmatprep.subr.bf16.mxu1 %v6334_v15 }
 0x2d4   :  { %4499 = vmatpush1.bf16.msra.mxu0 %v5670_v27  ;;  %4526 = vmatpush3.bf16.msra.mxu1 %v5673_v47 }
 0x2d5   :  { %4501 = vmatprep.subr.bf16.mxu0 %v5677_v35  ;;  %4527 = vmatprep.subr.bf16.mxu1 %v6334_v15 }
 0x2d8   :  { %4503 = vmatpush1.bf16.msra.mxu0 %v5680_v20  ;;  %4529 = vmatpush3.bf16.msra.mxu1 %v5683_v46 }
 0x2d9   :  { %4505 = vmatprep.subr.bf16.mxu0 %v5687_v5  ;;  %4530 = vmatprep.subr.bf16.mxu1 %v6334_v15 }
 0x2dc   :  { %4507 = vmatpush1.bf16.msra.mxu0 %v5690_v9  ;;  %4532 = vmatpush3.bf16.msra.mxu1 %v5693_v6 }
 0x2dd   :  { %4509 = vmatprep.subr.bf16.mxu0 %v5697_v10  ;;  %4533 = vmatprep.subr.bf16.mxu1 %v6334_v15 }
 0x2e0   :  { %4511 = vmatpush1.bf16.msra.mxu0 %v5700_v18  ;;  %4535 = vmatpush3.bf16.msra.mxu1 %v5703_v55 }
 0x2e1   :  { %4537 = vmatprep.subr.bf16.mxu1 %v5707_v33  ;;  %4568 = vmatprep.subr.bf16.mxu0 %v6334_v15 }
 0x332   :  { %v1459_v44 = vpop.xlane.xlu0 %1458 }
 0x333   :  { %1461 = vst.msk [vmem:[#allocation3 + $0x8] sm:$0xff] %vm1016_vm1, %v1459_v44  ;;  %v6348_v44 = vld [vmem:[#allocation32_spill] sm:$0xff] }
 0x352   :  { %v1464_v3 = vpop.xlane.xlu0 %1463 }
 0x353   :  { %1466 = vst.msk [vmem:[#allocation4 + $0x20] sm:$0xff] %vm1016_vm1, %v1464_v3 }
 0x376   :  { %v1589_v13 = vpop.f32.mrb[4].mxu0  ;;  %v1660_v53 = vpop.f32.mrb[20].mxu1 }
 0x377   :  { %v4820_v21 = vadd.f32 %v1589_v13, %v5538_v1  ;;  %v1591_v37 = vpop.f32.mrb[5].mxu0  ;;  %v3802_v50 = vpop.f32.mrb[21].mxu1  ;;  %v1867_v47 = vadd.f32 %v5547_v62, %v1660_v53  ;;  %v2359_v13 = vld [vmem:[#allocation8 + $0x10] sm:$0xff] }
 0x378   :  { %v4821_v2 = vadd.f32 %v1591_v37, %v5540_v43  ;;  %v2367_v50 = vld [vmem:[#allocation8 + $0x50] sm:$0xff] }
 0x379   :  { %v3394_v24 = vmul.f32 -1.442695, %v4820_v21  ;;  %v2362_v21 = vld [vmem:[#allocation8 + $0x28] sm:$0xff] }
 0x37a   :  { %v3395_v28 = vmul.f32 -1.442695, %v4821_v2  ;;  %v5936_v37 = vpack.c.bf16 %v2362_v21, %v2359_v13  ;;  %v2363_v2 = vld [vmem:[#allocation8 + $0x30] sm:$0xff]  ;;  %v2400_v21 = vld [vmem:[#allocation8 + $0x158] sm:$0xff] }
 0x37b   :  { %4893 = vpow2.f32 %v3394_v24 }
 0x37c   :  { %4895 = vpow2.f32 %v3395_v28  ;;  %v2366_v28 = vld [vmem:[#allocation8 + $0x48] sm:$0xff] }
 0x385   :  { %v4894_v57 = vpop.eup %4893 }
 0x386   :  { %v1857_v22 = vadd.f32 1.0, %v4894_v57  ;;  %v4896_v32 = vpop.eup %4895  ;;  %v2365_v57 = vld [vmem:[#allocation8 + $0x40] sm:$0xff] }
 0x387   :  { %v1864_v27 = vadd.f32 1.0, %v4896_v32  ;;  %v2368_v32 = vld [vmem:[#allocation8 + $0x58] sm:$0xff] }
 0x388   :  { %4897 = vrcp.f32 %v1857_v22  ;;  %v5943_v22 = vpack.c.bf16 %v2366_v28, %v2363_v2  ;;  %v2399_v2 = vld [vmem:[#allocation8 + $0x150] sm:$0xff]  ;;  %v2402_v28 = vld [vmem:[#allocation8 + $0x168] sm:$0xff] }
 0x389   :  { %4899 = vrcp.f32 %v1864_v27  ;;  %v5946_v27 = vpack.c.bf16 %v2368_v32, %v2365_v57  ;;  %v2401_v57 = vld [vmem:[#allocation8 + $0x160] sm:$0xff]  ;;  %v6003_v32 = vpack.c.bf16 %v2402_v28, %v2399_v2  ;;  %v6352_v28 = vld [vmem:[#allocation24_spill] sm:$0xff] }
 0x392   :  { %v4898_v35 = vpop.eup %4897 }
 0x393   :  { %v1868_v20 = vmul.f32 %v4898_v35, %v1867_v47  ;;  %v4900_v29 = vpop.eup %4899  ;;  %v2370_v47 = vld [vmem:[#allocation8 + $0x68] sm:$0xff]  ;;  %v2373_v35 = vld [vmem:[#allocation8 + $0x80] sm:$0xff] }
 0x394   :  { %v1871_v42 = vsub.f32 1.0, %v4900_v29  ;;  %v1873_v45 = vmul.f32 %v4900_v29, %v5726_v0  ;;  %v6344_v0 = vld [vmem:[#allocation30_spill] sm:$0xff] }
 0x395   :  { %v1869_v46 = vadd.f32 %v1868_v20, %v5490_v17  ;;  %v5950_v20 = vpack.c.bf16 %v2373_v35, %v2370_v47  ;;  %v2404_v47 = vld [vmem:[#allocation8 + $0x178] sm:$0xff] }
 0x396   :  { %v1778_v5 = vpop.f32.mrb[22].mxu1  ;;  %v1849_v9 = vpop.f32.mrb[28].mxu0  ;;  %v6006_v35 = vpack.c.bf16 %v2404_v47, %v2401_v57 }
 0x397   :  { %4901 = vtanh.f32 %v1869_v46  ;;  %v1875_v6 = vadd.f32 %v1778_v5, %v5497_v8  ;;  %v1780_v10 = vpop.f32.mrb[23].mxu1  ;;  %v3837_v18 = vpop.f32.mrb[29].mxu0  ;;  %v2369_v46 = vld [vmem:[#allocation8 + $0x60] sm:$0xff]  ;;  %v2372_v5 = vld [vmem:[#allocation8 + $0x78] sm:$0xff] }
 0x398   :  { %v1882_v55 = vadd.f32 %v1780_v10, %v5526_v31  ;;  %v2374_v10 = vld [vmem:[#allocation8 + $0x88] sm:$0xff] }
 0x399   :  { %v3396_v33 = vmul.f32 -1.442695, %v1875_v6  ;;  %v5953_v6 = vpack.c.bf16 %v2372_v5, %v2369_v46  ;;  %v2547_v46 = vld [vmem:[#allocation10 + $0x8] sm:$0xff]  ;;  %v2550_v5 = vld [vmem:[#allocation10 + $0x20] sm:$0xff] }
 0x39a   :  { %v3397_v14 = vmul.f32 -1.442695, %v1882_v55  ;;  %v2376_v55 = vld [vmem:[#allocation8 + $0x98] sm:$0xff] }
 0x39b   :  { %4903 = vpow2.f32 %v3396_v33  ;;  %v2379_v33 = vld [vmem:[#allocation8 + $0xb0] sm:$0xff] }
 0x39c   :  { %4905 = vpow2.f32 %v3397_v14  ;;  %v5960_v29 = vpack.c.bf16 %v2379_v33, %v2376_v55  ;;  %v2375_v14 = vld [vmem:[#allocation8 + $0x90] sm:$0xff]  ;;  %v3417_v55 = vld [vmem:[#allocation5] ss:$0 sm:$0xff]  ;;  %v5081_v33 = vmov 0  }
 0x39d   :  { %4851 = vset.pattern.permute.xlu0 %v5081_v33  ;;  %4852 = vset.pattern.permute.xlu1 %v5081_v33  ;;  %v2549_v33 = vld [vmem:[#allocation10 + $0x18] sm:$0xff] }
 0x3a1   :  { %v4902_v62 = vpop.eup %4901 }
 0x3a2   :  { %v1872_v38 = vmul.f32 %v4902_v62, %v1871_v42  ;;  %v2378_v42 = vld [vmem:[#allocation8 + $0xa8] sm:$0xff]  ;;  %v2377_v62 = vld [vmem:[#allocation8 + $0xa0] sm:$0xff] }
 0x3a4   :  { %v5871_v17 = vadd.f32 %v1873_v45, %v1872_v38  ;;  %v5963_v38 = vpack.c.bf16 %v2378_v42, %v2375_v14  ;;  %v2380_v45 = vld [vmem:[#allocation8 + $0xb8] sm:$0xff] }
 0x3a5   :  { %v4904_v19 = vpop.eup %4903 }
 0x3a6   :  { %v1879_v12 = vadd.f32 1.0, %v4904_v19  ;;  %3398 = vst [vmem:[%s6301_s10 + $0x20] sm:$0xff] %v5871_v17  ;;  %2030 = vmatmul.mubr.f32.vlgmr.msra.gmra.mrb[6].mxu0 %v5871_v17  ;;  %3871 = vmatmul.mubr.f32.vlgmr.msra.gmra.mrb[24].mxu1 %v5871_v17  ;;  %v1901_v8 = vmul.f32 %v5563_v26, %v5871_v17  ;;  %v4906_v31 = vpop.eup %4905  ;;  %v6342_v26 = vld [vmem:[#allocation28_spill] sm:$0xff]  ;;  %v5966_v19 = vpack.c.bf16 %v2380_v45, %v2377_v62 }
 0x3a7   :  { %4539 = vmatpush1.bf16.msra.mxu1 %v5722_v48  ;;  %4570 = vmatpush3.bf16.msra.mxu0 %v5724_v59  ;;  %v1886_v48 = vadd.f32 1.0, %v4906_v31  ;;  %v6343_v59 = vld [vmem:[#allocation29_spill] sm:$0xff] }
 0x3a8   :  { %4907 = vrcp.f32 %v1879_v12  ;;  %1902 = vadd.xlane.f32.xlu0 %v1901_v8  ;;  %4541 = vmatprep.subr.bf16.mxu1 %v5728_v60  ;;  %v6345_v60 = vld [vmem:[#allocation27_spill] sm:$0xff]  ;;  %v2382_v12 = vld [vmem:[#allocation8 + $0xc8] sm:$0xff]  ;;  %v2385_v8 = vld [vmem:[#allocation8 + $0xe0] sm:$0xff] }
 0x3a9   :  { %4571 = vmatprep.subr.bf16.mxu0 %v6334_v15  ;;  %2218 = vmatprep.mubr.f32.mxu1 %v6335_v56  ;;  %v1889_v23 = vadd.f32 %v6345_v60, %v1849_v9  ;;  %4909 = vrcp.f32 %v1886_v48  ;;  %v2371_v9 = vld [vmem:[#allocation8 + $0x70] sm:$0xff]  ;;  %v5970_v31 = vpack.c.bf16 %v2385_v8, %v2382_v12  ;;  %v2384_v48 = vld [vmem:[#allocation8 + $0xd8] sm:$0xff]  ;;  %v2386_v60 = vld [vmem:[#allocation8 + $0xe8] sm:$0xff] }
 0x3aa   :  { %3905 = vmatprep.mubr.msk.f32.mxu0 %vm5080_vm0, %v6335_v56  ;;  %v5956_v18 = vpack.c.bf16 %v2374_v10, %v2371_v9  ;;  %v6010_v9 = vpack.c.bf16 %v2550_v5, %v2547_v46 }
 0x3ab   :  { %4543 = vmatpush1.bf16.msra.mxu1 %v5740_v58  ;;  %4573 = vmatpush3.bf16.msra.mxu0 %v5742_v49  ;;  %v6346_v49 = vld [vmem:[#allocation26_spill] sm:$0xff] }
 0x3ac   :  { %4545 = vmatprep.subr.bf16.mxu1 %v6342_v26  ;;  %4574 = vmatprep.subr.bf16.mxu0 %v6334_v15  ;;  %v2381_v26 = vld [vmem:[#allocation8 + $0xc0] sm:$0xff] }
 0x3af   :  { %4547 = vmatpush1.bf16.msra.mxu1 %v6343_v59  ;;  %4576 = vmatpush3.bf16.msra.mxu0 %v6344_v0  ;;  %v2383_v59 = vld [vmem:[#allocation8 + $0xd0] sm:$0xff]  ;;  %v5973_v0 = vpack.c.bf16 %v2384_v48, %v2381_v26 }
 0x3b0   :  { %4549 = vmatprep.subr.bf16.mxu1 %v5759_v41  ;;  %4577 = vmatprep.subr.bf16.mxu0 %v6334_v15  ;;  %v6347_v41 = vld [vmem:[#allocation31_spill] sm:$0xff] }
 0x3b2   :  { %v4908_v61 = vpop.eup %4907 }
 0x3b3   :  { %v1890_v58 = vmul.f32 %v4908_v61, %v1889_v23  ;;  %4551 = vmatpush1.bf16.msra.mxu1 %v5763_v34  ;;  %4579 = vmatpush3.bf16.msra.mxu0 %v5765_v52  ;;  %v6349_v34 = vld [vmem:[#allocation33_spill] sm:$0xff]  ;;  %v4910_v52 = vpop.eup %4909  ;;  %v5976_v23 = vpack.c.bf16 %v2386_v60, %v2383_v59  ;;  %v2388_v61 = vld [vmem:[#allocation8 + $0xf8] sm:$0xff] }
 0x3b4   :  { %4553 = vmatprep.subr.bf16.mxu1 %v5769_v11  ;;  %4580 = vmatprep.subr.bf16.mxu0 %v6334_v15  ;;  %v1893_v11 = vsub.f32 1.0, %v4910_v52 }
 0x3b5   :  { %v1891_v4 = vadd.f32 %v1890_v58, %v6346_v49  ;;  %v2391_v58 = vld [vmem:[#allocation8 + $0x110] sm:$0xff] }
 0x3b6   :  { %v5980_v49 = vpack.c.bf16 %v2391_v58, %v2388_v61 }
 0x3b7   :  { %4911 = vtanh.f32 %v1891_v4  ;;  %4555 = vmatpush1.bf16.msra.mxu1 %v5775_v7  ;;  %4582 = vmatpush3.bf16.msra.mxu0 %v6347_v41  ;;  %v2387_v4 = vld [vmem:[#allocation8 + $0xf0] sm:$0xff]  ;;  %v2390_v41 = vld [vmem:[#allocation8 + $0x108] sm:$0xff] }
 0x3b8   :  { %4557 = vmatprep.subr.bf16.mxu1 %v6348_v44  ;;  %4583 = vmatprep.subr.bf16.mxu0 %v6334_v15  ;;  %v2389_v44 = vld [vmem:[#allocation8 + $0x100] sm:$0xff] }
 0x3bb   :  { %4559 = vmatpush1.bf16.msra.mxu1 %v5786_v63  ;;  %4585 = vmatpush3.bf16.msra.mxu0 %v6349_v34  ;;  %v1895_v63 = vmul.f32 %v4910_v52, %v5815_v36  ;;  %v2360_v36 = vld [vmem:[#allocation8 + $0x18] sm:$0xff]  ;;  %v5983_v34 = vpack.c.bf16 %v2390_v41, %v2387_v4 }
 0x3bc   :  { %4561 = vmatprep.subr.bf16.mxu1 %v5792_v39  ;;  %4586 = vmatprep.subr.bf16.mxu0 %v6334_v15  ;;  %v2392_v52 = vld [vmem:[#allocation8 + $0x118] sm:$0xff] }
 0x3bd   :  { %v6021_v41 = vld [vmem:[%s6297_s6] ss:$0 sm:$0xff] }
 0x3bf   :  { %4563 = vmatpush1.bf16.msra.mxu1 %v5796_v30  ;;  %4588 = vmatpush3.bf16.msra.mxu0 %v5798_v54  ;;  %v2361_v54 = vld [vmem:[#allocation8 + $0x20] sm:$0xff] }
 0x3c0   :  { %4565 = vmatprep.subr.bf16.mxu1 %v5802_v51  ;;  %4589 = vmatprep.subr.bf16.mxu0 %v6334_v15 }
 0x3c1   :  { %v4912_v7 = vpop.eup %4911 }
 0x3c2   :  { %v1894_v3 = vmul.f32 %v4912_v7, %v1893_v11  ;;  %v5986_v11 = vpack.c.bf16 %v2392_v52, %v2389_v44  ;;  %v2394_v7 = vld [vmem:[#allocation8 + $0x128] sm:$0xff] }
 0x3c3   :  { %4567 = vmatpush1.bf16.msra.mxu1 %v5806_v16  ;;  %4591 = vmatpush3.bf16.msra.mxu0 %v5808_v40  ;;  %v2358_v16 = vld [vmem:[#allocation8 + $0x8] sm:$0xff]  ;;  %v2357_v40 = vld [vmem:[#allocation8] sm:$0xff] }
 0x3c4   :  { %v5917_v39 = vadd.f32 %v1895_v63, %v1894_v3  ;;  %4624 = vmatprep.subr.bf16.mxu1 %v6334_v15  ;;  %v5931_v51 = vpack.c.bf16 %v2361_v54, %v2358_v16  ;;  %v5933_v53 = vpack.c.bf16 %v2360_v36, %v2357_v40  ;;  %v2397_v3 = vld [vmem:[#allocation8 + $0x140] sm:$0xff]  ;;  %v2396_v16 = vld [vmem:[#allocation8 + $0x138] sm:$0xff]  ;;  %v2395_v54 = vld [vmem:[#allocation8 + $0x130] sm:$0xff] }
 0x3c5   :  { %v5990_v63 = vpack.c.bf16 %v2397_v3, %v2394_v7  ;;  %v2398_v36 = vld [vmem:[#allocation8 + $0x148] sm:$0xff]  ;;  %v6350_v3 = vld [vmem:[#allocation17_spill] sm:$0xff] }
 0x3c6   :  { %3399 = vst [vmem:[%s6301_s10 + $0x38] sm:$0xff] %v5917_v39  ;;  %2219 = vmatmul.mubr.f32.vlgmr.msra.gmra.mrb[26].mxu1 %v5917_v39  ;;  %3906 = vmatmul.mubr.f32.vlgmr.msra.gmra.mrb[30].mxu0 %v5917_v39  ;;  %v1906_v30 = vmul.f32 %v5583_v25, %v5917_v39  ;;  %v2364_v25 = vld [vmem:[#allocation8 + $0x38] sm:$0xff]  ;;  %v5996_v13 = vpack.c.bf16 %v2398_v36, %v2395_v54 }
 0x3c7   :  { %2469 = vmatprep.mubr.f32.mxu0 %v6335_v56  ;;  %3940 = vmatprep.mubr.msk.f32.mxu1 %vm5080_vm0, %v6335_v56  ;;  %v5940_v24 = vpack.c.bf16 %v2367_v50, %v2364_v25  ;;  %v2403_v25 = vld [vmem:[#allocation8 + $0x170] sm:$0xff]  ;;  %v6351_v36 = vld [vmem:[#allocation16_spill] sm:$0xff] }
 0x3c8   :  { %1907 = vadd.xlane.f32.xlu0 %v1906_v30  ;;  %4593 = vmatprep.subr.bf16.mxu0 %v5931_v51  ;;  %v2393_v30 = vld [vmem:[#allocation8 + $0x120] sm:$0xff]  ;;  %v6000_v50 = vpack.c.bf16 %v2403_v25, %v2400_v21 }
 0x3c9   :  { %4595 = vmatpush1.bf16.msra.mxu0 %v5933_v53  ;;  %4626 = vmatpush3.bf16.msra.mxu1 %v5936_v37  ;;  %v5993_v40 = vpack.c.bf16 %v2396_v16, %v2393_v30 }
 0x3ca   :  { %4627 = vmatprep.subr.bf16.mxu1 %v6334_v15  ;;  %4597 = vmatprep.subr.bf16.mxu0 %v5940_v24 }
 0x3cd   :  { %4599 = vmatpush1.bf16.msra.mxu0 %v5943_v22  ;;  %4629 = vmatpush3.bf16.msra.mxu1 %v5946_v27 }
 0x3ce   :  { %4630 = vmatprep.subr.bf16.mxu1 %v6334_v15  ;;  %4601 = vmatprep.subr.bf16.mxu0 %v5950_v20 }
 0x3d1   :  { %4603 = vmatpush1.bf16.msra.mxu0 %v5953_v6  ;;  %4632 = vmatpush3.bf16.msra.mxu1 %v5956_v18 }
 0x3d2   :  { %4633 = vmatprep.subr.bf16.mxu1 %v6334_v15  ;;  %4605 = vmatprep.subr.bf16.mxu0 %v5960_v29 }
 0x3d5   :  { %4607 = vmatpush1.bf16.msra.mxu0 %v5963_v38  ;;  %4635 = vmatpush3.bf16.msra.mxu1 %v5966_v19 }
 0x3d6   :  { %4636 = vmatprep.subr.bf16.mxu1 %v6334_v15  ;;  %4609 = vmatprep.subr.bf16.mxu0 %v5970_v31 }
 0x3d9   :  { %4611 = vmatpush1.bf16.msra.mxu0 %v5973_v0  ;;  %4638 = vmatpush3.bf16.msra.mxu1 %v5976_v23 }
 0x3da   :  { %4639 = vmatprep.subr.bf16.mxu1 %v6334_v15  ;;  %4613 = vmatprep.subr.bf16.mxu0 %v5980_v49 }
 0x3dd   :  { %4615 = vmatpush1.bf16.msra.mxu0 %v5983_v34  ;;  %4641 = vmatpush3.bf16.msra.mxu1 %v5986_v11 }
 0x3de   :  { %4642 = vmatprep.subr.bf16.mxu1 %v6334_v15  ;;  %4617 = vmatprep.subr.bf16.mxu0 %v5990_v63 }
 0x3df   :  { %3257 = vperm.xlu0 %4851, %v3417_v55  }
 0x3e1   :  { %4619 = vmatpush1.bf16.msra.mxu0 %v5993_v40  ;;  %4644 = vmatpush3.bf16.msra.mxu1 %v5996_v13 }
 0x3e2   :  { %4645 = vmatprep.subr.bf16.mxu1 %v6334_v15  ;;  %4621 = vmatprep.subr.bf16.mxu0 %v6000_v50 }
 0x3e5   :  { %4623 = vmatpush1.bf16.msra.mxu0 %v6003_v32  ;;  %4647 = vmatpush3.bf16.msra.mxu1 %v6006_v35 }
 0x3e6   :  { %4680 = vmatprep.subr.bf16.mxu0 %v6334_v15  ;;  %4649 = vmatprep.subr.bf16.mxu1 %v6010_v9 }
 0x435   :  { %v1903_v10 = vpop.xlane.xlu0 %1902 }
 0x436   :  { %1905 = vst.msk [vmem:[#allocation3 + $0x10] sm:$0xff] %vm1016_vm1, %v1903_v10  ;;  %v2546_v10 = vld [vmem:[#allocation10] sm:$0xff] }
 0x455   :  { %v1908_v14 = vpop.xlane.xlu0 %1907 }
 0x456   :  { %1910 = vst.msk [vmem:[#allocation4 + $0x18] sm:$0xff] %vm1016_vm1, %v1908_v14  ;;  %v2548_v14 = vld [vmem:[#allocation10 + $0x10] sm:$0xff] }
 0x479   :  { %v2031_v42 = vpop.f32.mrb[6].mxu0  ;;  %v2102_v62 = vpop.f32.mrb[24].mxu1 }
 0x47a   :  { %v4822_v45 = vadd.f32 %v2031_v42, %v5538_v1  ;;  %v2033_v12 = vpop.f32.mrb[7].mxu0  ;;  %v3872_v8 = vpop.f32.mrb[25].mxu1  ;;  %v2309_v44 = vadd.f32 %v6021_v41, %v2102_v62  ;;  %v2551_v42 = vld [vmem:[#allocation10 + $0x28] sm:$0xff] }
 0x47b   :  { %v4823_v48 = vadd.f32 %v2033_v12, %v5540_v43  ;;  %v2556_v12 = vld [vmem:[#allocation10 + $0x50] sm:$0xff] }
 0x47c   :  { %v3400_v26 = vmul.f32 -1.442695, %v4822_v45  ;;  %v2553_v45 = vld [vmem:[#allocation10 + $0x38] sm:$0xff] }
 0x47d   :  { %v3401_v59 = vmul.f32 -1.442695, %v4823_v48  ;;  %v6030_v48 = vpack.c.bf16 %v2549_v33, %v2546_v10  ;;  %v2568_v10 = vld [vmem:[#allocation10 + $0xb0] sm:$0xff] }
 0x47e   :  { %4913 = vpow2.f32 %v3400_v26 }
 0x47f   :  { %4915 = vpow2.f32 %v3401_v59  ;;  %v6032_v59 = vpack.c.bf16 %v2551_v42, %v2548_v14  ;;  %v2564_v14 = vld [vmem:[#allocation10 + $0x90] sm:$0xff] }
 0x488   :  { %v4914_v60 = vpop.eup %4913 }
 0x489   :  { %v2299_v61 = vadd.f32 1.0, %v4914_v60  ;;  %v4916_v58 = vpop.eup %4915  ;;  %v2552_v60 = vld [vmem:[#allocation10 + $0x30] sm:$0xff] }
 0x48a   :  { %v2306_v4 = vadd.f32 1.0, %v4916_v58  ;;  %v6036_v58 = vpack.c.bf16 %v2556_v12, %v2553_v45  ;;  %v2567_v45 = vld [vmem:[#allocation10 + $0xa8] sm:$0xff]  ;;  %v2566_v12 = vld [vmem:[#allocation10 + $0xa0] sm:$0xff] }
 0x48b   :  { %4917 = vrcp.f32 %v2299_v61 }
 0x48c   :  { %4919 = vrcp.f32 %v2306_v4  ;;  %v2555_v4 = vld [vmem:[#allocation10 + $0x48] sm:$0xff] }
 0x495   :  { %v4918_v52 = vpop.eup %4917 }
 0x496   :  { %v2310_v7 = vmul.f32 %v4918_v52, %v2309_v44  ;;  %v4920_v46 = vpop.eup %4919  ;;  %v2554_v44 = vld [vmem:[#allocation10 + $0x40] sm:$0xff]  ;;  %v2557_v52 = vld [vmem:[#allocation10 + $0x58] sm:$0xff] }
 0x497   :  { %v2313_v55 = vsub.f32 1.0, %v4920_v46  ;;  %v2315_v26 = vmul.f32 %v4920_v46, %v5871_v17  ;;  %v6047_v17 = vld [vmem:[%s6298_s7] ss:$0 sm:$0xff]  ;;  %v2563_v46 = vld [vmem:[#allocation10 + $0x88] sm:$0xff] }
 0x498   :  { %v2311_v30 = vadd.f32 %v2310_v7, %v6350_v3  ;;  %v2559_v3 = vld [vmem:[#allocation10 + $0x68] sm:$0xff] }
 0x499   :  { %v2220_v16 = vpop.f32.mrb[26].mxu1  ;;  %v6025_v54 = vpop.f32.mrb[30].mxu0 }
 0x49a   :  { %4921 = vtanh.f32 %v2311_v30  ;;  %v2317_v21 = vadd.f32 %v2220_v16, %v6351_v36  ;;  %v2222_v25 = vpop.f32.mrb[27].mxu1  ;;  %v3907_v2 = vpop.f32.mrb[31].mxu0  ;;  %v2562_v30 = vld [vmem:[#allocation10 + $0x80] sm:$0xff] }
 0x49b   :  { %v2324_v57 = vadd.f32 %v2222_v25, %v6352_v28  ;;  %v6055_v25 = vpack.c.bf16 %v2557_v52, %v2554_v44  ;;  %v2558_v2 = vld [vmem:[#allocation10 + $0x60] sm:$0xff]  ;;  %v6058_v28 = vpack.c.bf16 %v2562_v30, %v2559_v3  ;;  %v6076_v44 = vpack.c.bf16 %v2567_v45, %v2564_v14  ;;  %v2573_v30 = vld [vmem:[#allocation10 + $0xd8] sm:$0xff]  ;;  %v2576_v45 = vld [vmem:[#allocation10 + $0xf0] sm:$0xff] }
 0x49c   :  { %v3402_v47 = vmul.f32 -1.442695, %v2317_v21  ;;  %v6053_v21 = vpack.c.bf16 %v2555_v4, %v2552_v60  ;;  %v2574_v60 = vld [vmem:[#allocation10 + $0xe0] sm:$0xff] }
 0x49d   :  { %v3403_v5 = vmul.f32 -1.442695, %v2324_v57  ;;  %v2561_v57 = vld [vmem:[#allocation10 + $0x78] sm:$0xff] }
 0x49e   :  { %4923 = vpow2.f32 %v3402_v47  ;;  %v2560_v47 = vld [vmem:[#allocation10 + $0x70] sm:$0xff] }
 0x49f   :  { %4925 = vpow2.f32 %v3403_v5  ;;  %v2565_v5 = vld [vmem:[#allocation10 + $0x98] sm:$0xff]  ;;  %v6068_v33 = vpack.c.bf16 %v2563_v46, %v2560_v47  ;;  %v2580_v46 = vld [vmem:[#allocation10 + $0x110] sm:$0xff] }
 0x4a0   :  { %v2577_v47 = vld [vmem:[#allocation10 + $0xf8] sm:$0xff] }
 0x4a4   :  { %v4922_v62 = vpop.eup %4921 }
 0x4a5   :  { %v2314_v8 = vmul.f32 %v4922_v62, %v2313_v55  ;;  %v6066_v55 = vpack.c.bf16 %v2561_v57, %v2558_v2  ;;  %v6072_v62 = vpack.c.bf16 %v2568_v10, %v2565_v5  ;;  %v6087_v2 = vld [vmem:[%s6297_s6 + $0x1] ss:$0 sm:$0xff] }
 0x4a6   :  { %v2331_v57 = vadd.f32 %v6087_v2, %v6025_v54  ;;  %v2579_v54 = vld [vmem:[#allocation10 + $0x108] sm:$0xff] }
 0x4a7   :  { %v6034_v61 = vadd.f32 %v2315_v26, %v2314_v8  ;;  %v2569_v8 = vld [vmem:[#allocation10 + $0xb8] sm:$0xff]  ;;  %v2571_v26 = vld [vmem:[#allocation10 + $0xc8] sm:$0xff] }
 0x4a8   :  { %v4924_v7 = vpop.eup %4923  ;;  %v6078_v52 = vpack.c.bf16 %v2569_v8, %v2566_v12  ;;  %v6082_v3 = vpack.c.bf16 %v2574_v60, %v2571_v26  ;;  %v6099_v12 = vpack.c.bf16 %v2580_v46, %v2577_v47  ;;  %v2578_v8 = vld [vmem:[#allocation10 + $0x100] sm:$0xff]  ;;  %v2581_v26 = vld [vmem:[#allocation10 + $0x118] sm:$0xff]  ;;  %v2584_v46 = vld [vmem:[#allocation10 + $0x130] sm:$0xff] }
 0x4a9   :  { %v2321_v16 = vadd.f32 1.0, %v4924_v7  ;;  %3404 = vst [vmem:[%s6301_s10 + $0x30] sm:$0xff] %v6034_v61  ;;  %2470 = vmatmul.mubr.f32.vlgmr.msra.gmra.mrb[8].mxu0 %v6034_v61  ;;  %3941 = vmatmul.mubr.f32.vlgmr.msra.gmra.mrb[28].mxu1 %v6034_v61  ;;  %v2341_v36 = vmul.f32 %v6047_v17, %v6034_v61  ;;  %v4926_v42 = vpop.eup %4925  ;;  %v2570_v7 = vld [vmem:[#allocation10 + $0xc0] sm:$0xff]  ;;  %v2585_v47 = vld [vmem:[#allocation10 + $0x138] sm:$0xff] }
 0x4aa   :  { %4651 = vmatpush1.bf16.msra.mxu1 %v6030_v48  ;;  %4682 = vmatpush3.bf16.msra.mxu0 %v6032_v59  ;;  %v2328_v4 = vadd.f32 1.0, %v4926_v42  ;;  %v6093_v14 = vpack.c.bf16 %v2573_v30, %v2570_v7  ;;  %6354 = vst [vmem:[#allocation29_spill] sm:$0xff] %v6099_v12  ;;  %v6355_v60 = vld [vmem:[#allocation25_spill] sm:$0xff]  ;;  %v6104_v7 = vpack.c.bf16 %v2579_v54, %v2576_v45 }
 0x4ab   :  { %4927 = vrcp.f32 %v2321_v16  ;;  %2342 = vadd.xlane.f32.xlu1 %v2341_v36  ;;  %4653 = vmatprep.subr.bf16.mxu1 %v6036_v58  ;;  %v2572_v16 = vld [vmem:[#allocation10 + $0xd0] sm:$0xff]  ;;  %v2575_v36 = vld [vmem:[#allocation10 + $0xe8] sm:$0xff]  ;;  %v6106_v30 = vpack.c.bf16 %v2581_v26, %v2578_v8 }
 0x4ac   :  { %4683 = vmatprep.subr.bf16.mxu0 %v6334_v15  ;;  %2658 = vmatprep.mubr.f32.mxu1 %v6335_v56  ;;  %4929 = vrcp.f32 %v2328_v4  ;;  %v6095_v42 = vpack.c.bf16 %v2575_v36, %v2572_v16  ;;  %v2582_v16 = vld [vmem:[#allocation10 + $0x120] sm:$0xff]  ;;  %v2588_v8 = vld [vmem:[#allocation10 + $0x150] sm:$0xff] }
 0x4ad   :  { %3975 = vmatprep.mubr.msk.f32.mxu0 %vm5080_vm0, %v6335_v56  ;;  %6356 = vst [vmem:[#allocation30_spill] sm:$0xff] %v6106_v30  ;;  %v6114_v45 = vpack.c.bf16 %v2585_v47, %v2582_v16 }
 0x4ae   :  { %4655 = vmatpush1.bf16.msra.mxu1 %v6053_v21  ;;  %4685 = vmatpush3.bf16.msra.mxu0 %v6055_v25  ;;  %6353 = vst [vmem:[#allocation28_spill] sm:$0xff] %v6095_v42 }
 0x4af   :  { %4657 = vmatprep.subr.bf16.mxu1 %v6058_v28  ;;  %4686 = vmatprep.subr.bf16.mxu0 %v6334_v15 }
 0x4b2   :  { %4659 = vmatpush1.bf16.msra.mxu1 %v6066_v55  ;;  %4688 = vmatpush3.bf16.msra.mxu0 %v6068_v33 }
 0x4b3   :  { %4661 = vmatprep.subr.bf16.mxu1 %v6072_v62  ;;  %4689 = vmatprep.subr.bf16.mxu0 %v6334_v15 }
 0x4b5   :  { %v4928_v5 = vpop.eup %4927 }
 0x4b6   :  { %v2332_v10 = vmul.f32 %v4928_v5, %v2331_v57  ;;  %4663 = vmatpush1.bf16.msra.mxu1 %v6076_v44  ;;  %4691 = vmatpush3.bf16.msra.mxu0 %v6078_v52  ;;  %v2583_v57 = vld [vmem:[#allocation10 + $0x128] sm:$0xff]  ;;  %v2586_v5 = vld [vmem:[#allocation10 + $0x140] sm:$0xff] }
 0x4b7   :  { %4665 = vmatprep.subr.bf16.mxu1 %v6082_v3  ;;  %4692 = vmatprep.subr.bf16.mxu0 %v6334_v15  ;;  %v6110_v36 = vpack.c.bf16 %v2586_v5, %v2583_v57  ;;  %v2591_v57 = vld [vmem:[#allocation10 + $0x168] sm:$0xff]  ;;  %v2590_v5 = vld [vmem:[#allocation10 + $0x160] sm:$0xff] }
 0x4b8   :  { %v2333_v4 = vadd.f32 %v2332_v10, %v6355_v60  ;;  %v2587_v10 = vld [vmem:[#allocation10 + $0x148] sm:$0xff]  ;;  %v2589_v60 = vld [vmem:[#allocation10 + $0x158] sm:$0xff] }
 0x4b9   :  { %v6116_v54 = vpack.c.bf16 %v2587_v10, %v2584_v46 }
 0x4ba   :  { %4931 = vtanh.f32 %v2333_v4  ;;  %4667 = vmatpush1.bf16.msra.mxu1 %v6093_v14  ;;  %4694 = vmatpush3.bf16.msra.mxu0 %v6095_v42  ;;  %v2592_v4 = vld [vmem:[#allocation10 + $0x170] sm:$0xff]  ;;  %v4930_v42 = vpop.eup %4929 }
 0x4bb   :  { %4669 = vmatprep.subr.bf16.mxu1 %v6099_v12  ;;  %4695 = vmatprep.subr.bf16.mxu0 %v6334_v15  ;;  %v6120_v26 = vpack.c.bf16 %v2592_v4, %v2589_v60  ;;  %v2593_v12 = vld [vmem:[#allocation10 + $0x178] sm:$0xff]  ;;  %v2335_v47 = vsub.f32 1.0, %v4930_v42  ;;  %v2337_v60 = vmul.f32 %v4930_v42, %v5917_v39  ;;  %v6146_v39 = vld [vmem:[%s6298_s7 + $0x1] ss:$0 sm:$0xff] }
 0x4bc   :  { %v6126_v16 = vpack.c.bf16 %v2593_v12, %v2590_v5  ;;  %v6359_v12 = vld [vmem:[#allocation22_spill] sm:$0xff] }
 0x4be   :  { %4671 = vmatpush1.bf16.msra.mxu1 %v6104_v7  ;;  %4697 = vmatpush3.bf16.msra.mxu0 %v6106_v30  ;;  %v6124_v30 = vpack.c.bf16 %v2591_v57, %v2588_v8 }
 0x4bf   :  { %4673 = vmatprep.subr.bf16.mxu1 %v6110_v36  ;;  %4698 = vmatprep.subr.bf16.mxu0 %v6334_v15 }
 0x4c2   :  { %4675 = vmatpush1.bf16.msra.mxu1 %v6114_v45  ;;  %4700 = vmatpush3.bf16.msra.mxu0 %v6116_v54 }
 0x4c3   :  { %4677 = vmatprep.subr.bf16.mxu1 %v6120_v26  ;;  %4701 = vmatprep.subr.bf16.mxu0 %v6334_v15 }
 0x4c4   :  { %v4932_v46 = vpop.eup %4931 }
 0x4c5   :  { %v2336_v10 = vmul.f32 %v4932_v46, %v2335_v47 }
 0x4c6   :  { %4679 = vmatpush1.bf16.msra.mxu1 %v6124_v30  ;;  %4703 = vmatpush3.bf16.msra.mxu0 %v6126_v16 }
 0x4c7   :  { %v6133_v4 = vadd.f32 %v2337_v60, %v2336_v10  ;;  %4705 = vmatprep.subr.bf16.mxu0 %v5931_v51  ;;  %4736 = vmatprep.subr.bf16.mxu1 %v6334_v15 }
 0x4c9   :  { %3405 = vst [vmem:[%s6301_s10 + $0x28] sm:$0xff] %v6133_v4  ;;  %2659 = vmatmul.mubr.f32.vlgmr.msra.gmra.mrb[30].mxu1 %v6133_v4  ;;  %3976 = vmatmul.mubr.f32.vlgmr.msra.gmra.mrb[32].mxu0 %v6133_v4  ;;  %v2346_v42 = vmul.f32 %v6146_v39, %v6133_v4 }
 0x4ca   :  { %4707 = vmatpush1.bf16.msra.mxu0 %v5933_v53  ;;  %4738 = vmatpush3.bf16.msra.mxu1 %v5936_v37 }
 0x4cb   :  { %2347 = vadd.xlane.f32.xlu1 %v2346_v42  ;;  %4709 = vmatprep.subr.bf16.mxu0 %v5940_v24 }
 0x4cc   :  { %4739 = vmatprep.subr.bf16.mxu1 %v6334_v15  ;;  %2909 = vmatprep.mubr.f32.mxu0 %v6335_v56 }
 0x4cd   :  { %4010 = vmatprep.mubr.msk.f32.mxu1 %vm5080_vm0, %v6335_v56 }
 0x4ce   :  { %4711 = vmatpush1.bf16.msra.mxu0 %v5943_v22  ;;  %4741 = vmatpush3.bf16.msra.mxu1 %v5946_v27 }
 0x4cf   :  { %4713 = vmatprep.subr.bf16.mxu0 %v5950_v20  ;;  %4742 = vmatprep.subr.bf16.mxu1 %v6334_v15 }
 0x4d2   :  { %4715 = vmatpush1.bf16.msra.mxu0 %v5953_v6  ;;  %4744 = vmatpush3.bf16.msra.mxu1 %v5956_v18 }
 0x4d3   :  { %4717 = vmatprep.subr.bf16.mxu0 %v5960_v29  ;;  %4745 = vmatprep.subr.bf16.mxu1 %v6334_v15 }
 0x4d6   :  { %4719 = vmatpush1.bf16.msra.mxu0 %v5963_v38  ;;  %4747 = vmatpush3.bf16.msra.mxu1 %v5966_v19 }
 0x4d7   :  { %4721 = vmatprep.subr.bf16.mxu0 %v5970_v31  ;;  %4748 = vmatprep.subr.bf16.mxu1 %v6334_v15 }
 0x4da   :  { %4723 = vmatpush1.bf16.msra.mxu0 %v5973_v0  ;;  %4750 = vmatpush3.bf16.msra.mxu1 %v5976_v23 }
 0x4db   :  { %4725 = vmatprep.subr.bf16.mxu0 %v5980_v49  ;;  %4751 = vmatprep.subr.bf16.mxu1 %v6334_v15 }
 0x4de   :  { %4727 = vmatpush1.bf16.msra.mxu0 %v5983_v34  ;;  %4753 = vmatpush3.bf16.msra.mxu1 %v5986_v11  ;;  %v6357_v11 = vld [vmem:[#allocation18_spill] sm:$0xff] }
 0x4df   :  { %4729 = vmatprep.subr.bf16.mxu0 %v5990_v63  ;;  %4754 = vmatprep.subr.bf16.mxu1 %v6334_v15 }
 0x4e2   :  { %4731 = vmatpush1.bf16.msra.mxu0 %v5993_v40  ;;  %4756 = vmatpush3.bf16.msra.mxu1 %v5996_v13 }
 0x4e3   :  { %4733 = vmatprep.subr.bf16.mxu0 %v6000_v50  ;;  %4757 = vmatprep.subr.bf16.mxu1 %v6334_v15  ;;  %v6358_v50 = vld [vmem:[#allocation15_spill] sm:$0xff] }
 0x4e6   :  { %4735 = vmatpush1.bf16.msra.mxu0 %v6003_v32  ;;  %4759 = vmatpush3.bf16.msra.mxu1 %v6006_v35 }
 0x4e7   :  { %4761 = vmatprep.subr.bf16.mxu1 %v6010_v9  ;;  %4792 = vmatprep.subr.bf16.mxu0 %v6334_v15 }
 0x538   :  { %v2343_v51 = vpop.xlane.xlu1 %2342 }
 0x539   :  { %2345 = vst.msk [vmem:[#allocation3 + $0x18] sm:$0xff] %vm1016_vm1, %v2343_v51 }
 0x558   :  { %v2348_v53 = vpop.xlane.xlu1 %2347 }
 0x559   :  { %2350 = vst.msk [vmem:[#allocation4 + $0x10] sm:$0xff] %vm1016_vm1, %v2348_v53 }
 0x57c   :  { %v2471_v37 = vpop.f32.mrb[8].mxu0  ;;  %v2542_v24 = vpop.f32.mrb[28].mxu1 }
 0x57d   :  { %v4824_v22 = vadd.f32 %v2471_v37, %v5538_v1  ;;  %v2473_v27 = vpop.f32.mrb[9].mxu0  ;;  %v3942_v20 = vpop.f32.mrb[29].mxu1  ;;  %v2749_v23 = vadd.f32 %v6021_v41, %v2542_v24 }
 0x57e   :  { %v4825_v18 = vadd.f32 %v2473_v27, %v5540_v43 }
 0x57f   :  { %v3406_v6 = vmul.f32 -1.442695, %v4824_v22 }
 0x580   :  { %v3407_v29 = vmul.f32 -1.442695, %v4825_v18 }
 0x581   :  { %4933 = vpow2.f32 %v3406_v6 }
 0x582   :  { %4935 = vpow2.f32 %v3407_v29 }
 0x58b   :  { %v4934_v38 = vpop.eup %4933 }
 0x58c   :  { %v2739_v19 = vadd.f32 1.0, %v4934_v38  ;;  %v4936_v31 = vpop.eup %4935 }
 0x58d   :  { %v2746_v0 = vadd.f32 1.0, %v4936_v31 }
 0x58e   :  { %4937 = vrcp.f32 %v2739_v19 }
 0x58f   :  { %4939 = vrcp.f32 %v2746_v0 }
 0x598   :  { %v4938_v49 = vpop.eup %4937 }
 0x599   :  { %v2750_v34 = vmul.f32 %v4938_v49, %v2749_v23  ;;  %v4940_v5 = vpop.eup %4939  ;;  %v6364_v23 = vld [vmem:[#allocation19_spill] sm:$0xff] }
 0x59a   :  { %v2753_v46 = vsub.f32 1.0, %v4940_v5  ;;  %v2755_v42 = vmul.f32 %v4940_v5, %v6034_v61 }
 0x59b   :  { %v2751_v63 = vadd.f32 %v2750_v34, %v6357_v11  ;;  %v6365_v11 = vld [vmem:[#allocation14_spill] sm:$0xff] }
 0x59c   :  { %v2660_v40 = vpop.f32.mrb[30].mxu1  ;;  %v2731_v13 = vpop.f32.mrb[32].mxu0 }
 0x59d   :  { %4941 = vtanh.f32 %v2751_v63  ;;  %v2757_v32 = vadd.f32 %v2660_v40, %v6358_v50  ;;  %v2662_v35 = vpop.f32.mrb[31].mxu1  ;;  %v3977_v9 = vpop.f32.mrb[33].mxu0 }
 0x59e   :  { %v2764_v8 = vadd.f32 %v2662_v35, %v6359_v12 }
 0x59f   :  { %v3408_v57 = vmul.f32 -1.442695, %v2757_v32 }
 0x5a0   :  { %v3409_v47 = vmul.f32 -1.442695, %v2764_v8 }
 0x5a1   :  { %4943 = vpow2.f32 %v3408_v57 }
 0x5a2   :  { %4945 = vpow2.f32 %v3409_v47 }
 0x5a7   :  { %v4942_v10 = vpop.eup %4941 }
 0x5a8   :  { %v2754_v60 = vmul.f32 %v4942_v10, %v2753_v46 }
 0x5aa   :  { %v6194_v51 = vadd.f32 %v2755_v42, %v2754_v60 }
 0x5ab   :  { %v4944_v53 = vpop.eup %4943 }
 0x5ac   :  { %v2761_v37 = vadd.f32 1.0, %v4944_v53  ;;  %3410 = vst [vmem:[%s6301_s10 + $0x40] sm:$0xff] %v6194_v51  ;;  %2910 = vmatmul.mubr.f32.vlgmr.msra.gmra.mrb[10].mxu0 %v6194_v51  ;;  %4011 = vmatmul.mubr.f32.vlgmr.msra.gmra.mrb[32].mxu1 %v6194_v51  ;;  %v2781_v24 = vmul.f32 %v6047_v17, %v6194_v51  ;;  %v4946_v61 = vpop.eup %4945 }
 0x5ad   :  { %4763 = vmatpush1.bf16.msra.mxu1 %v6030_v48  ;;  %4794 = vmatpush3.bf16.msra.mxu0 %v6032_v59  ;;  %v2768_v48 = vadd.f32 1.0, %v4946_v61  ;;  %v6367_v61 = vld [vmem:[#allocation21_spill] sm:$0xff] }
 0x5ae   :  { %4947 = vrcp.f32 %v2761_v37  ;;  %2782 = vadd.xlane.f32.xlu1 %v2781_v24  ;;  %4765 = vmatprep.subr.bf16.mxu1 %v6036_v58 }
 0x5af   :  { %4795 = vmatprep.subr.bf16.mxu0 %v6334_v15  ;;  %3098 = vmatprep.mubr.f32.mxu1 %v6335_v56  ;;  %4949 = vrcp.f32 %v2768_v48 }
 0x5b0   :  { %4045 = vmatprep.mubr.msk.f32.mxu0 %vm5080_vm0, %v6335_v56  ;;  %v2771_v56 = vadd.f32 %v6087_v2, %v2731_v13  ;;  %v6366_v13 = vld [vmem:[#allocation20_spill] sm:$0xff] }
 0x5b1   :  { %4767 = vmatpush1.bf16.msra.mxu1 %v6053_v21  ;;  %4797 = vmatpush3.bf16.msra.mxu0 %v6055_v25  ;;  %v6360_v21 = vld [vmem:[#allocation23_spill] sm:$0xff] }
 0x5b2   :  { %4769 = vmatprep.subr.bf16.mxu1 %v6058_v28  ;;  %4798 = vmatprep.subr.bf16.mxu0 %v6334_v15  ;;  %v6361_v28 = vld [vmem:[#allocation28_spill] sm:$0xff] }
 0x5b5   :  { %4771 = vmatpush1.bf16.msra.mxu1 %v6066_v55  ;;  %4800 = vmatpush3.bf16.msra.mxu0 %v6068_v33  ;;  %v6362_v55 = vld [vmem:[#allocation29_spill] sm:$0xff]  ;;  %v6363_v33 = vld [vmem:[#allocation30_spill] sm:$0xff] }
 0x5b6   :  { %4773 = vmatprep.subr.bf16.mxu1 %v6072_v62  ;;  %4801 = vmatprep.subr.bf16.mxu0 %v6334_v15 }
 0x5b8   :  { %v4948_v59 = vpop.eup %4947 }
 0x5b9   :  { %v2772_v58 = vmul.f32 %v4948_v59, %v2771_v56  ;;  %4775 = vmatpush1.bf16.msra.mxu1 %v6076_v44  ;;  %4803 = vmatpush3.bf16.msra.mxu0 %v6078_v52  ;;  %v4950_v62 = vpop.eup %4949  ;;  %v3240_v59 = vld [vmem:[#allocation4 + $0x10] sm:$0xff] }
 0x5ba   :  { %4777 = vmatprep.subr.bf16.mxu1 %v6082_v3  ;;  %4804 = vmatprep.subr.bf16.mxu0 %v6334_v15  ;;  %v2775_v44 = vsub.f32 1.0, %v4950_v62 }
 0x5bb   :  { %v2773_v25 = vadd.f32 %v2772_v58, %v6360_v21  ;;  %v6267_v58 = vpop.permute.xlu0 %3257  ;;  %v3234_v21 = vld [vmem:[#allocation3 + $0x10] sm:$0xff] }
 0x5bd   :  { %4951 = vtanh.f32 %v2773_v25  ;;  %4779 = vmatpush1.bf16.msra.mxu1 %v6093_v14  ;;  %4806 = vmatpush3.bf16.msra.mxu0 %v6361_v28  ;;  %v2777_v14 = vmul.f32 %v4950_v62, %v6133_v4  ;;  %v3246_v28 = vadd.f32 %v3240_v59, %v3234_v21 }
 0x5be   :  { %4781 = vmatprep.subr.bf16.mxu1 %v6362_v55  ;;  %4807 = vmatprep.subr.bf16.mxu0 %v6334_v15  ;;  %v3235_v55 = vld [vmem:[#allocation3 + $0x18] sm:$0xff] }
 0x5c1   :  { %4783 = vmatpush1.bf16.msra.mxu1 %v6104_v7  ;;  %4809 = vmatpush3.bf16.msra.mxu0 %v6363_v33  ;;  %v3241_v33 = vld [vmem:[#allocation4 + $0x18] sm:$0xff] }
 0x5c2   :  { %4785 = vmatprep.subr.bf16.mxu1 %v6110_v36  ;;  %4810 = vmatprep.subr.bf16.mxu0 %v6334_v15 }
 0x5c5   :  { %4787 = vmatpush1.bf16.msra.mxu1 %v6114_v45  ;;  %4812 = vmatpush3.bf16.msra.mxu0 %v6116_v54 }
 0x5c6   :  { %4789 = vmatprep.subr.bf16.mxu1 %v6120_v26  ;;  %4813 = vmatprep.subr.bf16.mxu0 %v6334_v15 }
 0x5c7   :  { %v4952_v52 = vpop.eup %4951 }
 0x5c8   :  { %v2776_v3 = vmul.f32 %v4952_v52, %v2775_v44  ;;  %v3262_v52 = vadd.f32 %v6267_v58, %v3246_v28 }
 0x5c9   :  { %4791 = vmatpush1.bf16.msra.mxu1 %v6124_v30  ;;  %4815 = vmatpush3.bf16.msra.mxu0 %v6126_v16 }
 0x5ca   :  { %v6240_v7 = vadd.f32 %v2777_v14, %v2776_v3 }
 0x5cc   :  { %3411 = vst [vmem:[%s6301_s10 + $0x18] sm:$0xff] %v6240_v7  ;;  %3099 = vmatmul.mubr.f32.vlgmr.msra.gmra.mrb[34].mxu1 %v6240_v7  ;;  %4046 = vmatmul.mubr.f32.vlgmr.msra.gmra.mrb[34].mxu0 %v6240_v7  ;;  %v2786_v15 = vmul.f32 %v6146_v39, %v6240_v7 }
 0x5ce   :  { %2787 = vadd.xlane.f32.xlu1 %v2786_v15  ;;  %v3242_v15 = vld [vmem:[#allocation4 + $0x20] sm:$0xff] }
 0x63b   :  { %v2783_v36 = vpop.xlane.xlu1 %2782 }
 0x63c   :  { %2785 = vst.msk [vmem:[#allocation3 + $0x20] sm:$0xff] %vm1016_vm1, %v2783_v36 }
 0x643   :  { %v3236_v3 = vld [vmem:[#allocation3 + $0x20] sm:$0xff] }
 0x65b   :  { %v2788_v30 = vpop.xlane.xlu1 %2787 }
 0x65c   :  { %2790 = vst.msk [vmem:[#allocation4 + $0x8] sm:$0xff] %vm1016_vm1, %v2788_v30 }
 0x663   :  { %v3239_v37 = vld [vmem:[#allocation4 + $0x8] sm:$0xff] }
 0x67f   :  { %v2911_v45 = vpop.f32.mrb[10].mxu0  ;;  %v2982_v54 = vpop.f32.mrb[32].mxu1 }
 0x680   :  { %v4826_v26 = vadd.f32 %v2911_v45, %v5538_v1  ;;  %v2913_v16 = vpop.f32.mrb[11].mxu0  ;;  %v4012_v4 = vpop.f32.mrb[33].mxu1  ;;  %v3189_v19 = vadd.f32 %v6021_v41, %v2982_v54  ;;  %v3420_v45 = vmul.f32 -1.442695, %v3262_v52  ;;  %v3248_v54 = vadd.f32 %v3242_v15, %v3236_v3 }
 0x681   :  { %v4827_v27 = vadd.f32 %v2913_v16, %v5540_v43 }
 0x682   :  { %v3412_v22 = vmul.f32 -1.442695, %v4826_v26 }
 0x683   :  { %v3413_v20 = vmul.f32 -1.442695, %v4827_v27  ;;  %v3264_v27 = vadd.f32 %v6267_v58, %v3248_v54 }
 0x684   :  { %4953 = vpow2.f32 %v3412_v22 }
 0x685   :  { %4955 = vpow2.f32 %v3413_v20 }
 0x68e   :  { %v4954_v6 = vpop.eup %4953 }
 0x68f   :  { %v3179_v18 = vadd.f32 1.0, %v4954_v6  ;;  %v4956_v29 = vpop.eup %4955  ;;  %v3422_v6 = vmul.f32 -1.442695, %v3264_v27 }
 0x690   :  { %v3186_v38 = vadd.f32 1.0, %v4956_v29 }
 0x691   :  { %4957 = vrcp.f32 %v3179_v18 }
 0x692   :  { %4959 = vrcp.f32 %v3186_v38 }
 0x69b   :  { %v4958_v31 = vpop.eup %4957 }
 0x69c   :  { %v3190_v0 = vmul.f32 %v4958_v31, %v3189_v19  ;;  %v4960_v35 = vpop.eup %4959 }
 0x69d   :  { %v3193_v12 = vsub.f32 1.0, %v4960_v35  ;;  %v3195_v57 = vmul.f32 %v4960_v35, %v6194_v51  ;;  %v3233_v51 = vld [vmem:[#allocation3 + $0x8] sm:$0xff]  ;;  %v3243_v35 = vld [vmem:[#allocation4 + $0x28] sm:$0xff] }
 0x69e   :  { %v3191_v1 = vadd.f32 %v3190_v0, %v6364_v23  ;;  %v3245_v56 = vadd.f32 %v3239_v37, %v3233_v51 }
 0x69f   :  { %v3100_v49 = vpop.f32.mrb[34].mxu1  ;;  %v3171_v34 = vpop.f32.mrb[34].mxu0 }
 0x6a0   :  { %4961 = vtanh.f32 %v3191_v1  ;;  %v3197_v43 = vadd.f32 %v3100_v49, %v6365_v11  ;;  %v3102_v63 = vpop.f32.mrb[35].mxu1  ;;  %v4047_v40 = vpop.f32.mrb[35].mxu0  ;;  %v3211_v42 = vadd.f32 %v6087_v2, %v3171_v34  ;;  %v3261_v25 = vadd.f32 %v6267_v58, %v3245_v56 }
 0x6a1   :  { %v3204_v50 = vadd.f32 %v3102_v63, %v6366_v13  ;;  %v3247_v2 = vadd.f32 %v3241_v33, %v3235_v55  ;;  %v3232_v63 = vld [vmem:[#allocation3] sm:$0xff] }
 0x6a2   :  { %v3414_v32 = vmul.f32 -1.442695, %v3197_v43  ;;  %v3419_v44 = vmul.f32 -1.442695, %v3261_v25 }
 0x6a3   :  { %v3415_v9 = vmul.f32 -1.442695, %v3204_v50  ;;  %v3263_v30 = vadd.f32 %v6267_v58, %v3247_v2 }
 0x6a4   :  { %4963 = vpow2.f32 %v3414_v32 }
 0x6a5   :  { %4965 = vpow2.f32 %v3415_v9  ;;  %v3421_v22 = vmul.f32 -1.442695, %v3263_v30 }
 0x6aa   :  { %v4962_v41 = vpop.eup %4961 }
 0x6ab   :  { %v3194_v8 = vmul.f32 %v4962_v41, %v3193_v12 }
 0x6ad   :  { %v3196_v5 = vadd.f32 %v3195_v57, %v3194_v8 }
 0x6ae   :  { %v4964_v47 = vpop.eup %4963 }
 0x6af   :  { %v3201_v46 = vadd.f32 1.0, %v4964_v47  ;;  %3416 = vst [vmem:[%s6301_s10 + $0x50] sm:$0xff] %v3196_v5  ;;  %3230 = vst [vmem:[%s6302_s11] sm:$0xff] %v3196_v5  ;;  %v4966_v10 = vpop.eup %4965 }
 0x6b0   :  { %v3208_v60 = vadd.f32 1.0, %v4966_v10 }
 0x6b1   :  { %4967 = vrcp.f32 %v3201_v46 }
 0x6b2   :  { %4969 = vrcp.f32 %v3208_v60 }
 0x6bb   :  { %v4968_v53 = vpop.eup %4967 }
 0x6bc   :  { %v3212_v24 = vmul.f32 %v4968_v53, %v3211_v42  ;;  %v4970_v62 = vpop.eup %4969 }
 0x6bd   :  { %v3215_v14 = vsub.f32 1.0, %v4970_v62  ;;  %v3217_v16 = vmul.f32 %v4970_v62, %v6240_v7  ;;  %v3221_v7 = vmul.f32 %v6047_v17, %v3196_v5 }
 0x6be   :  { %v3213_v48 = vadd.f32 %v3212_v24, %v6367_v61  ;;  %v6368_v24 = vlaneseq }
 0x6c0   :  { %4971 = vtanh.f32 %v3213_v48  ;;  %v3327_v51 = vand.u32 127, %v6368_v24  ;;  %v6369_v48 = vld [vmem:[#allocation13_spill] sm:$0xff] }
 0x6c1   :  { %4973 = vpow2.f32 %v3419_v44 }
 0x6c2   :  { %4975 = vpow2.f32 %v3420_v45  ;;  %v3330_v56 = vsub.s32 %v3327_v51, %v6369_v48 }
 0x6c3   :  { %4977 = vpow2.f32 %v3421_v22 }
 0x6c4   :  { %4979 = vpow2.f32 %v3422_v6 }
 0x6ca   :  { %v4972_v36 = vpop.eup %4971 }
 0x6cb   :  { %v3216_v26 = vmul.f32 %v4972_v36, %v3215_v14  ;;  %v4974_v18 = vpop.eup %4973 }
 0x6cc   :  { %v3285_v29 = vadd.f32 1.0, %v4974_v18  ;;  %v4976_v38 = vpop.eup %4975 }
 0x6cd   :  { %v3218_v4 = vadd.f32 %v3217_v16, %v3216_v26  ;;  %v4978_v19 = vpop.eup %4977 }
 0x6ce   :  { %4981 = vrcp.f32 %v3285_v29  ;;  %v3287_v31 = vadd.f32 1.0, %v4978_v19  ;;  %v4980_v0 = vpop.eup %4979 }
 0x6cf   :  { %v3226_v20 = vmul.f32 %v6146_v39, %v3218_v4  ;;  %3231 = vst [vmem:[%s6302_s11 + $0x8] sm:$0xff] %v3218_v4  ;;  %3220 = vst [vmem:[%s6301_s10 + $0x8] sm:$0xff] %v3218_v4  ;;  %v3286_v39 = vadd.f32 1.0, %v4976_v38  ;;  %v3288_v23 = vadd.f32 1.0, %v4980_v0 }
 0x6d1   :  { %3227 = vadd.xlane.f32.xlu1 %v3226_v20  ;;  %4983 = vrcp.f32 %v3286_v39 }
 0x6d2   :  { %4985 = vrcp.f32 %v3287_v31 }
 0x6d3   :  { %4987 = vrcp.f32 %v3288_v23 }
 0x6d5   :  { %3222 = vadd.xlane.f32.xlu1 %v3221_v7 }
 0x6d8   :  { %v4982_v1 = vpop.eup %4981 }
 0x6db   :  { %v4984_v49 = vpop.eup %4983 }
 0x6dc   :  { %v4986_v34 = vpop.eup %4985 }
 0x6dd   :  { %v4988_v17 = vpop.eup %4987 }
 0x6e6   :  { %3312 = vperm.xlu1 %4852, %v4982_v1  }
 0x6ea   :  { %3315 = vperm.xlu1 %4852, %v4984_v49  }
 0x6ee   :  { %3318 = vperm.xlu1 %4852, %v4986_v34  }
 0x6f2   :  { %3321 = vperm.xlu1 %4852, %v4988_v17  }
 0x75e   :  { %v3228_v11 = vpop.xlane.xlu1 %3227 }
 0x75f   :  { %3229 = vst.msk [vmem:[#allocation4] sm:$0xff] %vm1016_vm1, %v3228_v11 }
 0x762   :  { %v3223_v43 = vpop.xlane.xlu1 %3222 }
 0x763   :  { %3225 = vst.msk [vmem:[#allocation3 + $0x28] sm:$0xff] %vm1016_vm1, %v3223_v43 }
 0x766   :  { %v3238_v40 = vld [vmem:[#allocation4] sm:$0xff]  ;;  %v3313_v42 = vpop.permute.xlu1 %3312 }
 0x767   :  { %v3244_v13 = vadd.f32 %v3238_v40, %v3232_v63 }
 0x769   :  { %v3260_v50 = vadd.f32 %v6267_v58, %v3244_v13 }
 0x76a   :  { %v3237_v32 = vld [vmem:[#allocation3 + $0x28] sm:$0xff]  ;;  %v3316_v53 = vpop.permute.xlu1 %3315 }
 0x76b   :  { %v3418_v9 = vmul.f32 -1.442695, %v3260_v50  ;;  %v3249_v12 = vadd.f32 %v3243_v35, %v3237_v32  ;;  %v3339_v25 = vrot.slane %v3316_v53, %v3330_v56 }
 0x76d   :  { %4989 = vpow2.f32 %v3418_v9  ;;  %v3265_v41 = vadd.f32 %v6267_v58, %v3249_v12  ;;  %v3335_v58 = vrot.slane %v3313_v42, %v3330_v56 }
 0x76e   :  { %v3319_v37 = vpop.permute.xlu1 %3318 }
 0x76f   :  { %v3423_v8 = vmul.f32 -1.442695, %v3265_v41  ;;  %v3343_v28 = vrot.slane %v3319_v37, %v3330_v56 }
 0x771   :  { %4991 = vpow2.f32 %v3423_v8 }
 0x772   :  { %v3322_v61 = vpop.permute.xlu1 %3321 }
 0x773   :  { %v3347_v33 = vrot.slane %v3322_v61, %v3330_v56 }
 0x777   :  { %v4990_v57 = vpop.eup %4989 }
 0x778   :  { %v3284_v5 = vadd.f32 1.0, %v4990_v57 }
 0x77a   :  { %4993 = vrcp.f32 %v3284_v5 }
 0x77b   :  { %v4992_v47 = vpop.eup %4991 }
 0x77c   :  { %v3289_v46 = vadd.f32 1.0, %v4992_v47 }
 0x77e   :  { %4995 = vrcp.f32 %v3289_v46 }
 0x784   :  { %v4994_v10 = vpop.eup %4993 }
 0x785   :  { %3309 = vperm.xlu1 %4852, %v4994_v10  }
 0x788   :  { %v4996_v60 = vpop.eup %4995 }
 0x789   :  { %3324 = vperm.xlu1 %4852, %v4996_v60  }
 0x804   :  { %v3310_v59 = vpop.permute.xlu1 %3309 }
 0x805   :  { %v3331_v21 = vrot.slane %v3310_v59, %v3330_v56 }
 0x807   :  { %v3353_v55 = vsel %vm3352_vm2, %v3335_v58, %v3331_v21 }
 0x808   :  { %v3355_v62 = vsel %vm3354_vm3, %v3339_v25, %v3353_v55  ;;  %v3325_v2 = vpop.permute.xlu1 %3324 }
 0x809   :  { %v3357_v44 = vsel %vm3356_vm4, %v3343_v28, %v3355_v62  ;;  %v3351_v52 = vrot.slane %v3325_v2, %v3330_v56 }
 0x80a   :  { %v3359_v3 = vsel %vm3358_vm5, %v3347_v33, %v3357_v44 }
 0x80b   :  { %v3361_v14 = vsel %vm3360_vm6, %v3351_v52, %v3359_v3 }
 0x80c   :  { %3364 = vst.msk [vmem:[%s6300_s9] sm:$0x3f] %vm3363_vm7, %v3361_v14 }
 0x80d   :  { %3377 = vsyncpa [#allocation7], 1 }
 0x80e   :  { %3378 = vsyncpa [#allocation9], 1 }

</bundles_post_ra>
